<compile_context>
chip_gen: v6e
topology: v6e:2x2x1
jax: 0.10.0
libtpu: 0.0.40
codegen_flags: <defaults>
</compile_context>

<pallas_src>
import math
import jax
import jax.numpy as jnp
from jax.experimental import pallas as pl
from jax.experimental.pallas import tpu as pltpu

# ---- model hyper-parameters (small, consistent with the module __init__) ----
B          = 4     # graphs per call (batch)
N          = 16    # nodes per graph
F_NODE     = 8     # node_features
F_EDGE     = 4     # edge_features
D_RED      = 32    # embedding_size_reduced (body output dim)
D_EMB      = 32    # embedding_size (head hidden dim)
OUT        = 8     # output_size
MASS_SHIFT = 1.5   # mass_shift (fixed at module construction -> folded into bias)

# ---- packed weight slab layout: (128 rows x 128 lanes) f32, offsets 8-aligned
W_QKVS_OFF = 0     # rows   0:8    lanes 0:128  -> [wq | wk | wv | ws]   (8,128)
WE_OFF     = 8     # rows   8:12   lanes 0:32   -> we                    (4,32)
WFB_OFF    = 16    # rows  16:48   lanes 0:64   -> [wf | wb]             (32,64)
BFB_OFF    = 48    # row   48      lanes 0:64   -> [bf | bb]             (1,64)
WO_OFF     = 56    # rows  56:120  lanes 0:8    -> [wo1 ; wo2]           (64,8)
BO_OFF     = 120   # row   120     lanes 0:8    -> bo + mass_shift       (1,8)
W_ROWS     = 128
W_LANES    = 128

SCALE = 1.0 / math.sqrt(D_RED)


def combined_kernel(x_ref, e_ref, w_ref, out_ref):
    gb = x_ref.shape[0]            # graphs resident in this block (static)
    gn = gb * N                    # nodes resident in this block

    # -------- unpack weights (static slices of the single resident slab) -----
    w_qkvs = w_ref[W_QKVS_OFF:W_QKVS_OFF + F_NODE, :]                # [8, 128]
    w_e    = w_ref[WE_OFF:WE_OFF + F_EDGE, 0:D_RED]                  # [4, 32]
    w_fb   = w_ref[WFB_OFF:WFB_OFF + D_RED, 0:2 * D_EMB]             # [32, 64]
    b_fb   = w_ref[BFB_OFF:BFB_OFF + 1, 0:2 * D_EMB]                 # [1, 64]
    w_o    = w_ref[WO_OFF:WO_OFF + 2 * D_EMB, 0:OUT]                 # [64, 8]
    b_o    = w_ref[BO_OFF:BO_OFF + 1, 0:OUT]                         # [1, 8]

    # -------- shared projections, batched over every node / edge in block ----
    x = x_ref[...].reshape(gn, F_NODE)                               # [gn, 8]
    proj = jnp.dot(x, w_qkvs, preferred_element_type=jnp.float32)    # [gn, 128]
    q    = proj[:, 0 * D_RED:1 * D_RED]                              # [gn, D]
    k    = proj[:, 1 * D_RED:2 * D_RED]
    v    = proj[:, 2 * D_RED:3 * D_RED]
    skip = proj[:, 3 * D_RED:4 * D_RED]

    e_flat = e_ref[...].reshape(gb * N * N, F_EDGE)                  # [gb*N*N, 4]
    e_proj = jnp.dot(e_flat, w_e, preferred_element_type=jnp.float32)  # [gb*N*N, D]

    # -------- per-graph attention: short unrolled straight-line loop ---------
    emb_parts = []
    for g in range(gb):
        r0, r1 = g * N, (g + 1) * N
        qg, kg = q[r0:r1], k[r0:r1]                                  # [N, D]
        vg, sg = v[r0:r1], skip[r0:r1]
        e3 = e_proj[g * N * N:(g + 1) * N * N, :].reshape(N, N, D_RED)  # edge (j -> i)

        # scores[i, j] = (q_i . (k_j + e_ij)) * scale
        qk = jnp.dot(qg, kg.T, preferred_element_type=jnp.float32)   # [N, N]
        qe = jnp.sum(qg[:, None, :] * e3, axis=-1)                   # [N, N]
        scores = (qk + qe) * SCALE

        # row-wise softmax over source nodes j (exp + EUP approx reciprocal)
        m = jnp.max(scores, axis=-1, keepdims=True)                  # [N, 1]
        p = jnp.exp(scores - m)                                      # [N, N]
        alpha = p * pl.reciprocal(jnp.sum(p, axis=-1, keepdims=True), approx=True)

        # agg[i] = sum_j alpha[i,j] * (v_j + e_ij)
        agg = (jnp.dot(alpha, vg, preferred_element_type=jnp.float32)
               + jnp.sum(alpha[:, :, None] * e3, axis=1))            # [N, D]
        emb_parts.append(sg + agg)                                   # [N, D_RED]

    emb = emb_parts[0] if gb == 1 else jnp.concatenate(emb_parts, axis=0)  # [gn, D]

    # -------- BIDIRECTIONAL_HEAD, batched over all nodes in the block --------
    h = jnp.maximum(
        jnp.dot(emb, w_fb, preferred_element_type=jnp.float32) + b_fb, 0.0)   # [gn, 64]
    out = jnp.dot(h, w_o, preferred_element_type=jnp.float32) + b_o           # [gn, 8]
    out_ref[...] = out.reshape(gb, N, OUT)                                    # one store


def model_forward(x, edge_attr_flat, w_slab, graphs_per_block=None):
    b_graphs = x.shape[0]
    if graphs_per_block is None:
        kind = ""
        try:
            kind = jax.devices()[0].device_kind.lower()
        except Exception:
            pass
        # v7x has 2 TensorCores/chip -> two parallel blocks (one step per core);
        # v5e/v6e have a single TC -> one grid step (zero per-step overhead).
        if "v7" in kind and b_graphs % 2 == 0 and b_graphs >= 2:
            graphs_per_block = b_graphs // 2
        else:
            graphs_per_block = b_graphs
    assert b_graphs % graphs_per_block == 0
    num_blocks = b_graphs // graphs_per_block
    gpb = graphs_per_block

    flops = 2 * b_graphs * (N * F_NODE * 4 * D_RED        # fused qkvs projection
                            + N * N * F_EDGE * D_RED      # edge projection
                            + 4 * N * N * D_RED           # qk, qe, alpha@v, alpha.e
                            + N * D_RED * 2 * D_EMB       # head layer 1
                            + N * 2 * D_EMB * OUT)        # head layer 2
    bytes_accessed = 4 * (x.size + edge_attr_flat.size + w_slab.size
                          + b_graphs * N * OUT)

    return pl.pallas_call(
        combined_kernel,
        out_shape=jax.ShapeDtypeStruct((b_graphs, N, OUT), jnp.float32),
        grid_spec=pltpu.PrefetchScalarGridSpec(
            num_scalar_prefetch=0,
            grid=(num_blocks,),
            in_specs=[
                pl.BlockSpec((gpb, N, F_NODE), lambda g: (g, 0, 0)),
                pl.BlockSpec((gpb, N * N, F_EDGE), lambda g: (g, 0, 0)),
                pl.BlockSpec((W_ROWS, W_LANES), lambda g: (0, 0)),
            ],
            out_specs=pl.BlockSpec((gpb, N, OUT), lambda g: (g, 0, 0)),
        ),
        compiler_params=pltpu.CompilerParams(
            dimension_semantics=("parallel",)),
        cost_estimate=pl.CostEstimate(flops=flops,
                                      transcendentals=b_graphs * N * N,
                                      bytes_accessed=bytes_accessed),
    )(x, edge_attr_flat, w_slab)


def init_params(key):
    ks = jax.random.split(key, 12)
    r = lambda k, shape, s=0.1: (s * jax.random.normal(k, shape)).astype(jnp.float32)
    return {
        # TransformerConv body
        "wq": r(ks[0], (F_NODE, D_RED)),
        "wk": r(ks[1], (F_NODE, D_RED)),
        "wv": r(ks[2], (F_NODE, D_RED)),
        "ws": r(ks[3], (F_NODE, D_RED)),      # root / skip weight
        "we": r(ks[4], (F_EDGE, D_RED)),      # edge-feature projection
        # bidirectional head
        "wf": r(ks[5], (D_RED, D_EMB)),
        "bf": r(ks[6], (1, D_EMB)),
        "wb": r(ks[7], (D_RED, D_EMB)),
        "bb": r(ks[8], (1, D_EMB)),
        "wo1": r(ks[9], (D_EMB, OUT)),
        "wo2": r(ks[10], (D_EMB, OUT)),
        "bo": r(ks[11], (1, OUT)),
    }


def pack_weights(p):
    """Fuse + pad all weights/biases into one (128, 128) f32 slab (1 DMA)."""
    slab = jnp.zeros((W_ROWS, W_LANES), jnp.float32)
    w_qkvs = jnp.concatenate([p["wq"], p["wk"], p["wv"], p["ws"]], axis=1)   # (8, 128)
    slab = slab.at[W_QKVS_OFF:W_QKVS_OFF + F_NODE, :].set(w_qkvs)
    slab = slab.at[WE_OFF:WE_OFF + F_EDGE, 0:D_RED].set(p["we"])
    w_fb = jnp.concatenate([p["wf"], p["wb"]], axis=1)                       # (32, 64)
    slab = slab.at[WFB_OFF:WFB_OFF + D_RED, 0:2 * D_EMB].set(w_fb)
    b_fb = jnp.concatenate([p["bf"], p["bb"]], axis=1)                       # (1, 64)
    slab = slab.at[BFB_OFF, 0:2 * D_EMB].set(b_fb[0])
    w_o = jnp.concatenate([p["wo1"], p["wo2"]], axis=0)                      # (64, 8)
    slab = slab.at[WO_OFF:WO_OFF + 2 * D_EMB, 0:OUT].set(w_o)
    slab = slab.at[BO_OFF, 0:OUT].set(p["bo"][0] + MASS_SHIFT)               # fold mass_shift
    return slab


def reference_forward(x, e_flat, p):
    """Pure-JAX reference with identical math (exact reciprocal)."""
    def one(xg, eg):
        q, k = xg @ p["wq"], xg @ p["wk"]
        v, s = xg @ p["wv"], xg @ p["ws"]
        e3 = (eg @ p["we"]).reshape(N, N, D_RED)
        scores = (q @ k.T + jnp.einsum("id,ijd->ij", q, e3)) * SCALE
        alpha = jax.nn.softmax(scores, axis=-1)
        emb = s + alpha @ v + jnp.einsum("ij,ijd->id", alpha, e3)
        h_f = jax.nn.relu(emb @ p["wf"] + p["bf"])
        h_b = jax.nn.relu(emb @ p["wb"] + p["bb"])   # flip/unflip around row-wise ops cancels
        return h_f @ p["wo1"] + h_b @ p["wo2"] + p["bo"] + MASS_SHIFT
    return jax.vmap(one)(x, e_flat)


if __name__ == "__main__":
    key = jax.random.PRNGKey(0)
    k_x, k_e, k_p = jax.random.split(key, 3)

    x = jax.random.normal(k_x, (B, N, F_NODE), jnp.float32)
    edge_attr = jax.random.normal(k_e, (B, N, N, F_EDGE), jnp.float32)
    edge_attr_flat = edge_attr.reshape(B, N * N, F_EDGE)   # row i*N+j = edge (j -> i)

    params = init_params(k_p)
    w_slab = pack_weights(params)

    out = jax.block_until_ready(model_forward(x, edge_attr_flat, w_slab))
    assert out.shape == (B, N, OUT) and out.dtype == jnp.float32

    ref = jax.block_until_ready(reference_forward(x, edge_attr_flat, params))
    max_err = float(jnp.max(jnp.abs(out - ref)))
    # approx reciprocal in the softmax -> ~1e-4 relative error; 1e-2 is ample.
    assert max_err < 1e-2, f"kernel/reference mismatch: max abs err {max_err}"

    print("KERNEL_OK")
</pallas_src>

<mosaic_0001>
module attributes {stable_mosaic.version = 11 : i64} {
  func.func @combined_kernel(%arg0: i32, %arg1: memref<4x16x8xf32, #tpu.memory_space<vmem>>, %arg2: memref<4x256x4xf32, #tpu.memory_space<vmem>>, %arg3: memref<128x128xf32, #tpu.memory_space<vmem>>, %arg4: memref<4x16x8xf32, #tpu.memory_space<vmem>>) attributes {dimension_semantics = [#tpu.dimension_semantics<parallel>], iteration_bounds = array<i64: 1>, scalar_prefetch = 0 : i64, scratch_operands = 0 : i64, tpu.core_type = #tpu.core_type<tc>, window_params = [{transform_indices = @transform_0, window_bounds = array<i64: 4, 16, 8>}, {transform_indices = @transform_1, window_bounds = array<i64: 4, 256, 4>}, {pipeline_mode = #tpu.pipeline_mode<synchronous>, transform_indices = @transform_2, window_bounds = array<i64: 128, 128>}, {transform_indices = @transform_3, window_bounds = array<i64: 4, 16, 8>}]} {
    %c0 = arith.constant 0 : index
    %c0_0 = arith.constant 0 : index
    %0 = vector.load %arg3[%c0, %c0_0] : memref<128x128xf32, #tpu.memory_space<vmem>>, vector<8x128xf32>
    %c8 = arith.constant 8 : index
    %c0_1 = arith.constant 0 : index
    %1 = vector.load %arg3[%c8, %c0_1] : memref<128x128xf32, #tpu.memory_space<vmem>>, vector<4x32xf32>
    %c16 = arith.constant 16 : index
    %c0_2 = arith.constant 0 : index
    %2 = vector.load %arg3[%c16, %c0_2] : memref<128x128xf32, #tpu.memory_space<vmem>>, vector<32x64xf32>
    %c48 = arith.constant 48 : index
    %c0_3 = arith.constant 0 : index
    %3 = vector.load %arg3[%c48, %c0_3] : memref<128x128xf32, #tpu.memory_space<vmem>>, vector<1x64xf32>
    %c56 = arith.constant 56 : index
    %c0_4 = arith.constant 0 : index
    %4 = vector.load %arg3[%c56, %c0_4] : memref<128x128xf32, #tpu.memory_space<vmem>>, vector<64x8xf32>
    %c120 = arith.constant 120 : index
    %c0_5 = arith.constant 0 : index
    %5 = vector.load %arg3[%c120, %c0_5] : memref<128x128xf32, #tpu.memory_space<vmem>>, vector<1x8xf32>
    %c0_6 = arith.constant 0 : index
    %c0_7 = arith.constant 0 : index
    %c0_8 = arith.constant 0 : index
    %6 = vector.load %arg1[%c0_6, %c0_7, %c0_8] : memref<4x16x8xf32, #tpu.memory_space<vmem>>, vector<4x16x8xf32>
    %7 = vector.shape_cast %6 : vector<4x16x8xf32> to vector<64x8xf32>
    %cst = arith.constant dense<0.000000e+00> : vector<64x128xf32>
    %8 = tpu.matmul %7, %0, %cst {dimension_numbers = #tpu.dot_dimension_numbers<[1], [0], [0], [1], [0, 0, 1, 1], [], []>} : vector<64x8xf32>, vector<8x128xf32>, vector<64x128xf32> -> vector<64x128xf32>
    %9 = vector.extract_strided_slice %8 {offsets = [0, 0], sizes = [64, 32], strides = [1, 1]} : vector<64x128xf32> to vector<64x32xf32>
    %10 = vector.extract_strided_slice %8 {offsets = [0, 32], sizes = [64, 32], strides = [1, 1]} : vector<64x128xf32> to vector<64x32xf32>
    %11 = vector.extract_strided_slice %8 {offsets = [0, 64], sizes = [64, 32], strides = [1, 1]} : vector<64x128xf32> to vector<64x32xf32>
    %12 = vector.extract_strided_slice %8 {offsets = [0, 96], sizes = [64, 32], strides = [1, 1]} : vector<64x128xf32> to vector<64x32xf32>
    %c0_9 = arith.constant 0 : index
    %c0_10 = arith.constant 0 : index
    %c0_11 = arith.constant 0 : index
    %13 = vector.load %arg2[%c0_9, %c0_10, %c0_11] : memref<4x256x4xf32, #tpu.memory_space<vmem>>, vector<4x256x4xf32>
    %14 = vector.shape_cast %13 : vector<4x256x4xf32> to vector<1024x4xf32>
    %cst_12 = arith.constant dense<0.000000e+00> : vector<1024x32xf32>
    %15 = tpu.matmul %14, %1, %cst_12 {dimension_numbers = #tpu.dot_dimension_numbers<[1], [0], [0], [1], [0, 0, 1, 1], [], []>} : vector<1024x4xf32>, vector<4x32xf32>, vector<1024x32xf32> -> vector<1024x32xf32>
    %16 = vector.extract_strided_slice %9 {offsets = [0, 0], sizes = [16, 32], strides = [1, 1]} : vector<64x32xf32> to vector<16x32xf32>
    %17 = vector.extract_strided_slice %10 {offsets = [0, 0], sizes = [16, 32], strides = [1, 1]} : vector<64x32xf32> to vector<16x32xf32>
    %18 = vector.extract_strided_slice %11 {offsets = [0, 0], sizes = [16, 32], strides = [1, 1]} : vector<64x32xf32> to vector<16x32xf32>
    %19 = vector.extract_strided_slice %12 {offsets = [0, 0], sizes = [16, 32], strides = [1, 1]} : vector<64x32xf32> to vector<16x32xf32>
    %20 = vector.extract_strided_slice %15 {offsets = [0, 0], sizes = [256, 32], strides = [1, 1]} : vector<1024x32xf32> to vector<256x32xf32>
    %21 = vector.shape_cast %20 : vector<256x32xf32> to vector<16x16x32xf32>
    %22 = tpu.transpose %17, [1, 0] : vector<16x32xf32> -> vector<32x16xf32>
    %cst_13 = arith.constant dense<0.000000e+00> : vector<16x16xf32>
    %23 = tpu.matmul %16, %22, %cst_13 {dimension_numbers = #tpu.dot_dimension_numbers<[1], [0], [0], [1], [0, 0, 1, 1], [], []>} : vector<16x32xf32>, vector<32x16xf32>, vector<16x16xf32> -> vector<16x16xf32>
    %24 = vector.shape_cast %16 : vector<16x32xf32> to vector<16x1x32xf32>
    %25 = vector.broadcast %24 : vector<16x1x32xf32> to vector<16x16x32xf32>
    %26 = arith.mulf %25, %21 : vector<16x16x32xf32>
    %cst_14 = arith.constant dense<0.000000e+00> : vector<16x16xf32>
    %27 = vector.multi_reduction <add>, %26, %cst_14 [2] : vector<16x16x32xf32> to vector<16x16xf32>
    %28 = arith.addf %23, %27 : vector<16x16xf32>
    %cst_15 = arith.constant 0.176776692 : f32
    %29 = vector.broadcast %cst_15 : f32 to vector<16x16xf32>
    %30 = arith.mulf %28, %29 : vector<16x16xf32>
    %cst_16 = arith.constant dense<0xFF800000> : vector<16xf32>
    %31 = vector.multi_reduction <maximumf>, %30, %cst_16 [1] : vector<16x16xf32> to vector<16xf32>
    %32 = vector.shape_cast %31 : vector<16xf32> to vector<16x1xf32>
    %33 = vector.broadcast %32 : vector<16x1xf32> to vector<16x16xf32>
    %34 = arith.subf %30, %33 : vector<16x16xf32>
    %35 = math.exp %34 : vector<16x16xf32>
    %cst_17 = arith.constant dense<0.000000e+00> : vector<16xf32>
    %36 = vector.multi_reduction <add>, %35, %cst_17 [1] : vector<16x16xf32> to vector<16xf32>
    %37 = vector.shape_cast %36 : vector<16xf32> to vector<16x1xf32>
    %38 = tpu.reciprocal %37 {approx = true} : vector<16x1xf32> -> vector<16x1xf32>
    %39 = vector.broadcast %38 : vector<16x1xf32> to vector<16x16xf32>
    %40 = arith.mulf %35, %39 : vector<16x16xf32>
    %cst_18 = arith.constant dense<0.000000e+00> : vector<16x32xf32>
    %41 = tpu.matmul %40, %18, %cst_18 {dimension_numbers = #tpu.dot_dimension_numbers<[1], [0], [0], [1], [0, 0, 1, 1], [], []>} : vector<16x16xf32>, vector<16x32xf32>, vector<16x32xf32> -> vector<16x32xf32>
    %42 = vector.shape_cast %40 : vector<16x16xf32> to vector<16x16x1xf32>
    %43 = vector.broadcast %42 : vector<16x16x1xf32> to vector<16x16x32xf32>
    %44 = arith.mulf %43, %21 : vector<16x16x32xf32>
    %cst_19 = arith.constant dense<0.000000e+00> : vector<16x32xf32>
    %45 = vector.multi_reduction <add>, %44, %cst_19 [1] : vector<16x16x32xf32> to vector<16x32xf32>
    %46 = arith.addf %41, %45 : vector<16x32xf32>
    %47 = arith.addf %19, %46 : vector<16x32xf32>
    %48 = vector.extract_strided_slice %9 {offsets = [16, 0], sizes = [16, 32], strides = [1, 1]} : vector<64x32xf32> to vector<16x32xf32>
    %49 = vector.extract_strided_slice %10 {offsets = [16, 0], sizes = [16, 32], strides = [1, 1]} : vector<64x32xf32> to vector<16x32xf32>
    %50 = vector.extract_strided_slice %11 {offsets = [16, 0], sizes = [16, 32], strides = [1, 1]} : vector<64x32xf32> to vector<16x32xf32>
    %51 = vector.extract_strided_slice %12 {offsets = [16, 0], sizes = [16, 32], strides = [1, 1]} : vector<64x32xf32> to vector<16x32xf32>
    %52 = vector.extract_strided_slice %15 {offsets = [256, 0], sizes = [256, 32], strides = [1, 1]} : vector<1024x32xf32> to vector<256x32xf32>
    %53 = vector.shape_cast %52 : vector<256x32xf32> to vector<16x16x32xf32>
    %54 = tpu.transpose %49, [1, 0] : vector<16x32xf32> -> vector<32x16xf32>
    %cst_20 = arith.constant dense<0.000000e+00> : vector<16x16xf32>
    %55 = tpu.matmul %48, %54, %cst_20 {dimension_numbers = #tpu.dot_dimension_numbers<[1], [0], [0], [1], [0, 0, 1, 1], [], []>} : vector<16x32xf32>, vector<32x16xf32>, vector<16x16xf32> -> vector<16x16xf32>
    %56 = vector.shape_cast %48 : vector<16x32xf32> to vector<16x1x32xf32>
    %57 = vector.broadcast %56 : vector<16x1x32xf32> to vector<16x16x32xf32>
    %58 = arith.mulf %57, %53 : vector<16x16x32xf32>
    %cst_21 = arith.constant dense<0.000000e+00> : vector<16x16xf32>
    %59 = vector.multi_reduction <add>, %58, %cst_21 [2] : vector<16x16x32xf32> to vector<16x16xf32>
    %60 = arith.addf %55, %59 : vector<16x16xf32>
    %cst_22 = arith.constant 0.176776692 : f32
    %61 = vector.broadcast %cst_22 : f32 to vector<16x16xf32>
    %62 = arith.mulf %60, %61 : vector<16x16xf32>
    %cst_23 = arith.constant dense<0xFF800000> : vector<16xf32>
    %63 = vector.multi_reduction <maximumf>, %62, %cst_23 [1] : vector<16x16xf32> to vector<16xf32>
    %64 = vector.shape_cast %63 : vector<16xf32> to vector<16x1xf32>
    %65 = vector.broadcast %64 : vector<16x1xf32> to vector<16x16xf32>
    %66 = arith.subf %62, %65 : vector<16x16xf32>
    %67 = math.exp %66 : vector<16x16xf32>
    %cst_24 = arith.constant dense<0.000000e+00> : vector<16xf32>
    %68 = vector.multi_reduction <add>, %67, %cst_24 [1] : vector<16x16xf32> to vector<16xf32>
    %69 = vector.shape_cast %68 : vector<16xf32> to vector<16x1xf32>
    %70 = tpu.reciprocal %69 {approx = true} : vector<16x1xf32> -> vector<16x1xf32>
    %71 = vector.broadcast %70 : vector<16x1xf32> to vector<16x16xf32>
    %72 = arith.mulf %67, %71 : vector<16x16xf32>
    %cst_25 = arith.constant dense<0.000000e+00> : vector<16x32xf32>
    %73 = tpu.matmul %72, %50, %cst_25 {dimension_numbers = #tpu.dot_dimension_numbers<[1], [0], [0], [1], [0, 0, 1, 1], [], []>} : vector<16x16xf32>, vector<16x32xf32>, vector<16x32xf32> -> vector<16x32xf32>
    %74 = vector.shape_cast %72 : vector<16x16xf32> to vector<16x16x1xf32>
    %75 = vector.broadcast %74 : vector<16x16x1xf32> to vector<16x16x32xf32>
    %76 = arith.mulf %75, %53 : vector<16x16x32xf32>
    %cst_26 = arith.constant dense<0.000000e+00> : vector<16x32xf32>
    %77 = vector.multi_reduction <add>, %76, %cst_26 [1] : vector<16x16x32xf32> to vector<16x32xf32>
    %78 = arith.addf %73, %77 : vector<16x32xf32>
    %79 = arith.addf %51, %78 : vector<16x32xf32>
    %80 = vector.extract_strided_slice %9 {offsets = [32, 0], sizes = [16, 32], strides = [1, 1]} : vector<64x32xf32> to vector<16x32xf32>
    %81 = vector.extract_strided_slice %10 {offsets = [32, 0], sizes = [16, 32], strides = [1, 1]} : vector<64x32xf32> to vector<16x32xf32>
    %82 = vector.extract_strided_slice %11 {offsets = [32, 0], sizes = [16, 32], strides = [1, 1]} : vector<64x32xf32> to vector<16x32xf32>
    %83 = vector.extract_strided_slice %12 {offsets = [32, 0], sizes = [16, 32], strides = [1, 1]} : vector<64x32xf32> to vector<16x32xf32>
    %84 = vector.extract_strided_slice %15 {offsets = [512, 0], sizes = [256, 32], strides = [1, 1]} : vector<1024x32xf32> to vector<256x32xf32>
    %85 = vector.shape_cast %84 : vector<256x32xf32> to vector<16x16x32xf32>
    %86 = tpu.transpose %81, [1, 0] : vector<16x32xf32> -> vector<32x16xf32>
    %cst_27 = arith.constant dense<0.000000e+00> : vector<16x16xf32>
    %87 = tpu.matmul %80, %86, %cst_27 {dimension_numbers = #tpu.dot_dimension_numbers<[1], [0], [0], [1], [0, 0, 1, 1], [], []>} : vector<16x32xf32>, vector<32x16xf32>, vector<16x16xf32> -> vector<16x16xf32>
    %88 = vector.shape_cast %80 : vector<16x32xf32> to vector<16x1x32xf32>
    %89 = vector.broadcast %88 : vector<16x1x32xf32> to vector<16x16x32xf32>
    %90 = arith.mulf %89, %85 : vector<16x16x32xf32>
    %cst_28 = arith.constant dense<0.000000e+00> : vector<16x16xf32>
    %91 = vector.multi_reduction <add>, %90, %cst_28 [2] : vector<16x16x32xf32> to vector<16x16xf32>
    %92 = arith.addf %87, %91 : vector<16x16xf32>
    %cst_29 = arith.constant 0.176776692 : f32
    %93 = vector.broadcast %cst_29 : f32 to vector<16x16xf32>
    %94 = arith.mulf %92, %93 : vector<16x16xf32>
    %cst_30 = arith.constant dense<0xFF800000> : vector<16xf32>
    %95 = vector.multi_reduction <maximumf>, %94, %cst_30 [1] : vector<16x16xf32> to vector<16xf32>
    %96 = vector.shape_cast %95 : vector<16xf32> to vector<16x1xf32>
    %97 = vector.broadcast %96 : vector<16x1xf32> to vector<16x16xf32>
    %98 = arith.subf %94, %97 : vector<16x16xf32>
    %99 = math.exp %98 : vector<16x16xf32>
    %cst_31 = arith.constant dense<0.000000e+00> : vector<16xf32>
    %100 = vector.multi_reduction <add>, %99, %cst_31 [1] : vector<16x16xf32> to vector<16xf32>
    %101 = vector.shape_cast %100 : vector<16xf32> to vector<16x1xf32>
    %102 = tpu.reciprocal %101 {approx = true} : vector<16x1xf32> -> vector<16x1xf32>
    %103 = vector.broadcast %102 : vector<16x1xf32> to vector<16x16xf32>
    %104 = arith.mulf %99, %103 : vector<16x16xf32>
    %cst_32 = arith.constant dense<0.000000e+00> : vector<16x32xf32>
    %105 = tpu.matmul %104, %82, %cst_32 {dimension_numbers = #tpu.dot_dimension_numbers<[1], [0], [0], [1], [0, 0, 1, 1], [], []>} : vector<16x16xf32>, vector<16x32xf32>, vector<16x32xf32> -> vector<16x32xf32>
    %106 = vector.shape_cast %104 : vector<16x16xf32> to vector<16x16x1xf32>
    %107 = vector.broadcast %106 : vector<16x16x1xf32> to vector<16x16x32xf32>
    %108 = arith.mulf %107, %85 : vector<16x16x32xf32>
    %cst_33 = arith.constant dense<0.000000e+00> : vector<16x32xf32>
    %109 = vector.multi_reduction <add>, %108, %cst_33 [1] : vector<16x16x32xf32> to vector<16x32xf32>
    %110 = arith.addf %105, %109 : vector<16x32xf32>
    %111 = arith.addf %83, %110 : vector<16x32xf32>
    %112 = vector.extract_strided_slice %9 {offsets = [48, 0], sizes = [16, 32], strides = [1, 1]} : vector<64x32xf32> to vector<16x32xf32>
    %113 = vector.extract_strided_slice %10 {offsets = [48, 0], sizes = [16, 32], strides = [1, 1]} : vector<64x32xf32> to vector<16x32xf32>
    %114 = vector.extract_strided_slice %11 {offsets = [48, 0], sizes = [16, 32], strides = [1, 1]} : vector<64x32xf32> to vector<16x32xf32>
    %115 = vector.extract_strided_slice %12 {offsets = [48, 0], sizes = [16, 32], strides = [1, 1]} : vector<64x32xf32> to vector<16x32xf32>
    %116 = vector.extract_strided_slice %15 {offsets = [768, 0], sizes = [256, 32], strides = [1, 1]} : vector<1024x32xf32> to vector<256x32xf32>
    %117 = vector.shape_cast %116 : vector<256x32xf32> to vector<16x16x32xf32>
    %118 = tpu.transpose %113, [1, 0] : vector<16x32xf32> -> vector<32x16xf32>
    %cst_34 = arith.constant dense<0.000000e+00> : vector<16x16xf32>
    %119 = tpu.matmul %112, %118, %cst_34 {dimension_numbers = #tpu.dot_dimension_numbers<[1], [0], [0], [1], [0, 0, 1, 1], [], []>} : vector<16x32xf32>, vector<32x16xf32>, vector<16x16xf32> -> vector<16x16xf32>
    %120 = vector.shape_cast %112 : vector<16x32xf32> to vector<16x1x32xf32>
    %121 = vector.broadcast %120 : vector<16x1x32xf32> to vector<16x16x32xf32>
    %122 = arith.mulf %121, %117 : vector<16x16x32xf32>
    %cst_35 = arith.constant dense<0.000000e+00> : vector<16x16xf32>
    %123 = vector.multi_reduction <add>, %122, %cst_35 [2] : vector<16x16x32xf32> to vector<16x16xf32>
    %124 = arith.addf %119, %123 : vector<16x16xf32>
    %cst_36 = arith.constant 0.176776692 : f32
    %125 = vector.broadcast %cst_36 : f32 to vector<16x16xf32>
    %126 = arith.mulf %124, %125 : vector<16x16xf32>
    %cst_37 = arith.constant dense<0xFF800000> : vector<16xf32>
    %127 = vector.multi_reduction <maximumf>, %126, %cst_37 [1] : vector<16x16xf32> to vector<16xf32>
    %128 = vector.shape_cast %127 : vector<16xf32> to vector<16x1xf32>
    %129 = vector.broadcast %128 : vector<16x1xf32> to vector<16x16xf32>
    %130 = arith.subf %126, %129 : vector<16x16xf32>
    %131 = math.exp %130 : vector<16x16xf32>
    %cst_38 = arith.constant dense<0.000000e+00> : vector<16xf32>
    %132 = vector.multi_reduction <add>, %131, %cst_38 [1] : vector<16x16xf32> to vector<16xf32>
    %133 = vector.shape_cast %132 : vector<16xf32> to vector<16x1xf32>
    %134 = tpu.reciprocal %133 {approx = true} : vector<16x1xf32> -> vector<16x1xf32>
    %135 = vector.broadcast %134 : vector<16x1xf32> to vector<16x16xf32>
    %136 = arith.mulf %131, %135 : vector<16x16xf32>
    %cst_39 = arith.constant dense<0.000000e+00> : vector<16x32xf32>
    %137 = tpu.matmul %136, %114, %cst_39 {dimension_numbers = #tpu.dot_dimension_numbers<[1], [0], [0], [1], [0, 0, 1, 1], [], []>} : vector<16x16xf32>, vector<16x32xf32>, vector<16x32xf32> -> vector<16x32xf32>
    %138 = vector.shape_cast %136 : vector<16x16xf32> to vector<16x16x1xf32>
    %139 = vector.broadcast %138 : vector<16x16x1xf32> to vector<16x16x32xf32>
    %140 = arith.mulf %139, %117 : vector<16x16x32xf32>
    %cst_40 = arith.constant dense<0.000000e+00> : vector<16x32xf32>
    %141 = vector.multi_reduction <add>, %140, %cst_40 [1] : vector<16x16x32xf32> to vector<16x32xf32>
    %142 = arith.addf %137, %141 : vector<16x32xf32>
    %143 = arith.addf %115, %142 : vector<16x32xf32>
    %144 = tpu.concatenate %47, %79, %111, %143 in 0 : vector<16x32xf32>, vector<16x32xf32>, vector<16x32xf32>, vector<16x32xf32> -> vector<64x32xf32>
    %cst_41 = arith.constant dense<0.000000e+00> : vector<64x64xf32>
    %145 = tpu.matmul %144, %2, %cst_41 {dimension_numbers = #tpu.dot_dimension_numbers<[1], [0], [0], [1], [0, 0, 1, 1], [], []>} : vector<64x32xf32>, vector<32x64xf32>, vector<64x64xf32> -> vector<64x64xf32>
    %146 = vector.broadcast %3 : vector<1x64xf32> to vector<64x64xf32>
    %147 = arith.addf %145, %146 : vector<64x64xf32>
    %cst_42 = arith.constant 0.000000e+00 : f32
    %148 = vector.broadcast %cst_42 : f32 to vector<64x64xf32>
    %149 = arith.maximumf %147, %148 : vector<64x64xf32>
    %cst_43 = arith.constant dense<0.000000e+00> : vector<64x8xf32>
    %150 = tpu.matmul %149, %4, %cst_43 {dimension_numbers = #tpu.dot_dimension_numbers<[1], [0], [0], [1], [0, 0, 1, 1], [], []>} : vector<64x64xf32>, vector<64x8xf32>, vector<64x8xf32> -> vector<64x8xf32>
    %151 = vector.broadcast %5 : vector<1x8xf32> to vector<64x8xf32>
    %152 = arith.addf %150, %151 : vector<64x8xf32>
    %153 = vector.shape_cast %152 : vector<64x8xf32> to vector<4x16x8xf32>
    %c0_44 = arith.constant 0 : index
    %c0_45 = arith.constant 0 : index
    %c0_46 = arith.constant 0 : index
    %154 = vector.load %arg4[%c0_44, %c0_45, %c0_46] : memref<4x16x8xf32, #tpu.memory_space<vmem>>, vector<4x16x8xf32>
    tpu.vector_store %arg4[%c0_44, %c0_45, %c0_46], %153 {strides = array<i32>} : memref<4x16x8xf32, #tpu.memory_space<vmem>>, vector<4x16x8xf32>,
    return
  }
  func.func @transform_0(%arg0: i32) -> (i32, i32, i32) {
    %c0_i32 = arith.constant 0 : i32
    %c0_i32_0 = arith.constant 0 : i32
    %c0_i32_1 = arith.constant 0 : i32
    return %arg0, %c0_i32, %c0_i32_0 : i32, i32, i32
  }
  func.func @transform_1(%arg0: i32) -> (i32, i32, i32) {
    %c0_i32 = arith.constant 0 : i32
    %c0_i32_0 = arith.constant 0 : i32
    %c0_i32_1 = arith.constant 0 : i32
    return %arg0, %c0_i32, %c0_i32_0 : i32, i32, i32
  }
  func.func @transform_2(%arg0: i32) -> (i32, i32) {
    %c0_i32 = arith.constant 0 : i32
    %c0_i32_0 = arith.constant 0 : i32
    %c0_i32_1 = arith.constant 0 : i32
    return %c0_i32, %c0_i32_0 : i32, i32
  }
  func.func @transform_3(%arg0: i32) -> (i32, i32, i32) {
    %c0_i32 = arith.constant 0 : i32
    %c0_i32_0 = arith.constant 0 : i32
    %c0_i32_1 = arith.constant 0 : i32
    return %arg0, %c0_i32, %c0_i32_0 : i32, i32, i32
  }
}

</mosaic_0001>

<bundles_post_ra>
// kernel: tpu_custom_call.1
= control target key start
LH: loop header
LB: loop body
LE: loop exit
PB: predicated region body
PF: predicated region fallthrough
CT: control target
= control target key end

     0   :  { %vm38_vm0 = vcmask 64512   ;;  %vm681_vm1 = vcmask 1043456   ;;  %vm296_vm2 = vcmask 31744   ;;  %vm1602_vm3 = vcmask 261120   ;;  %s6802_s9 = smov 96   ;;  %s6804_s18 = smov 32   ;;  %s9389_s2 = inlined_call_operand.vmem [shape: f32[128,128], index: 2, kind: input, shape index: {}]   ;;  %s9390_s0 = inlined_call_operand.vmem [shape: f32[4,16,8], index: 0, kind: input, shape index: {}]   ;;  %s9391_s1 = inlined_call_operand.vmem [shape: f32[4,256,4], index: 1, kind: input, shape index: {}]   ;;  %s9392_s3 = inlined_call_operand.vmem [shape: f32[4,16,8], index: 3, kind: output, shape index: {}]  }
   0x1   :  { %v14_v0 = vld [vmem:[%s9389_s2] sm:$0xff]  ;;  %v31_v2 = vld [vmem:[%s9390_s0 + $0x8] sm:$0xff]  ;;  %v32_v3 = vld [vmem:[%s9390_s0 + $0x10] sm:$0xff]  ;;  %vm1746_vm4 = vcmask 130112   ;;  %vm1883_vm5 = vcmask 1041409   ;;  %vm1885_vm6 = vcmask 1042434  }
   0x2   :  { %v30_v1 = vld [vmem:[%s9390_s0] sm:$0xff]  ;;  %6451 = vmatprep.subr.mxu0 %v14_v0  ;;  %v15_v4 = vld [vmem:[%s9389_s2 + $0x8] sm:$0xf]  ;;  %v210_v7 = vld [vmem:[%s9391_s1 + $0x150] sm:$0xff]  ;;  %vm1887_vm7 = vcmask 1043459   ;;  %vm1889_vm8 = vcmask 1044484  }
   0x3   :  { %6453 = vmatprep.mubr.msk.f32.mxu0 %vm38_vm0, %v30_v1  ;;  %6452 = vmatpush3.msra.mxu0 %v14_v0  ;;  %v208_v5 = vld [vmem:[%s9391_s1 + $0x140] sm:$0xff]  ;;  %v209_v6 = vld [vmem:[%s9391_s1 + $0x148] sm:$0xff]  ;;  %v33_v8 = vld [vmem:[%s9390_s0 + $0x18] sm:$0xff]  ;;  %vm1891_vm9 = vcmask 1045509   ;;  %vm1893_vm10 = vcmask 1046534   ;;  %vm1895_vm11 = vcmask 1047559  }
   0x4   :  { %6763 = vmatprep.subr.msk.mxu1 %vm681_vm1, %v15_v4  ;;  %6454 = vmatmul.mubr.msk.f32.vlgmr.msra.gmra.mxu0 %vm38_vm0, %v31_v2  ;;  %v34_v9 = vld [vmem:[%s9390_s0 + $0x20] sm:$0xff]  ;;  %v211_v10 = vld [vmem:[%s9391_s1 + $0x158] sm:$0xff]  ;;  %v35_v12 = vld [vmem:[%s9390_s0 + $0x28] sm:$0xff]  ;;  %vm1991_vm12 = vcmask 130048   ;;  %vm5932_vm13 = vcmask 523264  }
   0x5   :  { %6764 = vmatpush3.msk.msra.mxu1 %vm681_vm1, %v15_v4  ;;  %6456 = vmatprep.mubr.msk.f32.mxu0 %vm38_vm0, %v32_v3  ;;  %v212_v11 = vld [vmem:[%s9391_s1 + $0x160] sm:$0xff]  ;;  %v36_v13 = vld [vmem:[%s9390_s0 + $0x30] sm:$0xff]  ;;  %v213_v14 = vld [vmem:[%s9391_s1 + $0x168] sm:$0xff] }
   0x6   :  { %6527 = vmatprep.mubr.msk.f32.mxu1 %vm296_vm2, %v208_v5  ;;  %6465 = vmatprep.subr.msk.mxu0 %vm681_vm1, %v15_v4  ;;  %v214_v15 = vld [vmem:[%s9391_s1 + $0x170] sm:$0xff]  ;;  %v37_v16 = vld [vmem:[%s9390_s0 + $0x38] sm:$0xff]  ;;  %v168_v17 = vld [vmem:[%s9391_s1] sm:$0xff] }
   0x7   :  { %6528 = vmatmul.mubr.msk.f32.vlgmr.msra.gmra.mxu1 %vm296_vm2, %v209_v6  ;;  %6466 = vmatpush3.msk.msra.mxu0 %vm681_vm1, %v15_v4  ;;  %v215_v18 = vld [vmem:[%s9391_s1 + $0x178] sm:$0xff]  ;;  %v216_v19 = vld [vmem:[%s9391_s1 + $0x180] sm:$0xff]  ;;  %v169_v20 = vld [vmem:[%s9391_s1 + $0x8] sm:$0xff] }
   0x8   :  { %6530 = vmatprep.mubr.msk.f32.mxu1 %vm296_vm2, %v210_v7  ;;  %6457 = vmatmul.mubr.msk.f32.gmra.mxu0 %vm38_vm0, %v33_v8  ;;  %v170_v21 = vld [vmem:[%s9391_s1 + $0x10] sm:$0xff]  ;;  %v217_v22 = vld [vmem:[%s9391_s1 + $0x188] sm:$0xff]  ;;  %v171_v24 = vld [vmem:[%s9391_s1 + $0x18] sm:$0xff] }
   0x9   :  { %6459 = vmatprep.mubr.msk.f32.mxu0 %vm38_vm0, %v34_v9  ;;  %v218_v23 = vld [vmem:[%s9391_s1 + $0x190] sm:$0xff]  ;;  %v172_v25 = vld [vmem:[%s9391_s1 + $0x20] sm:$0xff]  ;;  %v219_v26 = vld [vmem:[%s9391_s1 + $0x198] sm:$0xff] }
   0xa   :  { %v220_v27 = vld [vmem:[%s9391_s1 + $0x1a0] sm:$0xff]  ;;  %v173_v28 = vld [vmem:[%s9391_s1 + $0x28] sm:$0xff]  ;;  %v174_v29 = vld [vmem:[%s9391_s1 + $0x30] sm:$0xff] }
   0xb   :  { %6531 = vmatmul.mubr.msk.f32.gmra.mxu1 %vm296_vm2, %v211_v10  ;;  %v221_v30 = vld [vmem:[%s9391_s1 + $0x1a8] sm:$0xff]  ;;  %v222_v31 = vld [vmem:[%s9391_s1 + $0x1b0] sm:$0xff]  ;;  %v175_v32 = vld [vmem:[%s9391_s1 + $0x38] sm:$0xff] }
   0xc   :  { %6533 = vmatprep.mubr.msk.f32.mxu1 %vm296_vm2, %v212_v11  ;;  %6460 = vmatmul.mubr.msk.f32.gmra.mxu0 %vm38_vm0, %v35_v12  ;;  %v176_v33 = vld [vmem:[%s9391_s1 + $0x40] sm:$0xff]  ;;  %v223_v34 = vld [vmem:[%s9391_s1 + $0x1b8] sm:$0xff]  ;;  %v177_v36 = vld [vmem:[%s9391_s1 + $0x48] sm:$0xff] }
   0xd   :  { %6462 = vmatprep.mubr.msk.f32.mxu0 %vm38_vm0, %v36_v13  ;;  %v224_v35 = vld [vmem:[%s9391_s1 + $0x1c0] sm:$0xff]  ;;  %v178_v37 = vld [vmem:[%s9391_s1 + $0x50] sm:$0xff]  ;;  %v225_v38 = vld [vmem:[%s9391_s1 + $0x1c8] sm:$0xff] }
   0xe   :  { %v226_v39 = vld [vmem:[%s9391_s1 + $0x1d0] sm:$0xff]  ;;  %v179_v40 = vld [vmem:[%s9391_s1 + $0x58] sm:$0xff]  ;;  %v180_v41 = vld [vmem:[%s9391_s1 + $0x60] sm:$0xff] }
   0xf   :  { %6534 = vmatmul.mubr.msk.f32.gmra.mxu1 %vm296_vm2, %v213_v14  ;;  %v227_v42 = vld [vmem:[%s9391_s1 + $0x1d8] sm:$0xff]  ;;  %v228_v43 = vld [vmem:[%s9391_s1 + $0x1e0] sm:$0xff]  ;;  %v181_v44 = vld [vmem:[%s9391_s1 + $0x68] sm:$0xff] }
  0x10   :  { %6536 = vmatprep.mubr.msk.f32.mxu1 %vm296_vm2, %v214_v15  ;;  %6463 = vmatmul.mubr.msk.f32.gmra.mxu0 %vm38_vm0, %v37_v16  ;;  %v182_v45 = vld [vmem:[%s9391_s1 + $0x70] sm:$0xff]  ;;  %v229_v46 = vld [vmem:[%s9391_s1 + $0x1e8] sm:$0xff]  ;;  %v183_v48 = vld [vmem:[%s9391_s1 + $0x78] sm:$0xff] }
  0x11   :  { %6467 = vmatprep.mubr.msk.f32.mxu0 %vm296_vm2, %v168_v17  ;;  %v230_v47 = vld [vmem:[%s9391_s1 + $0x1f0] sm:$0xff]  ;;  %v184_v49 = vld [vmem:[%s9391_s1 + $0x80] sm:$0xff]  ;;  %v231_v50 = vld [vmem:[%s9391_s1 + $0x1f8] sm:$0xff] }
  0x12   :  { %v232_v51 = vld [vmem:[%s9391_s1 + $0x200] sm:$0xff]  ;;  %v185_v52 = vld [vmem:[%s9391_s1 + $0x88] sm:$0xff]  ;;  %v186_v53 = vld [vmem:[%s9391_s1 + $0x90] sm:$0xff] }
  0x13   :  { %6537 = vmatmul.mubr.msk.f32.gmra.mxu1 %vm296_vm2, %v215_v18  ;;  %v233_v54 = vld [vmem:[%s9391_s1 + $0x208] sm:$0xff]  ;;  %v234_v55 = vld [vmem:[%s9391_s1 + $0x210] sm:$0xff]  ;;  %v187_v56 = vld [vmem:[%s9391_s1 + $0x98] sm:$0xff] }
  0x14   :  { %6539 = vmatprep.mubr.msk.f32.mxu1 %vm296_vm2, %v216_v19  ;;  %6468 = vmatmul.mubr.msk.f32.vlgmr.msra.gmra.mxu0 %vm296_vm2, %v169_v20  ;;  %v188_v57 = vld [vmem:[%s9391_s1 + $0xa0] sm:$0xff]  ;;  %v235_v58 = vld [vmem:[%s9391_s1 + $0x218] sm:$0xff]  ;;  %v189_v60 = vld [vmem:[%s9391_s1 + $0xa8] sm:$0xff] }
  0x15   :  { %6470 = vmatprep.mubr.msk.f32.mxu0 %vm296_vm2, %v170_v21  ;;  %v236_v59 = vld [vmem:[%s9391_s1 + $0x220] sm:$0xff]  ;;  %v190_v61 = vld [vmem:[%s9391_s1 + $0xb0] sm:$0xff]  ;;  %v237_v62 = vld [vmem:[%s9391_s1 + $0x228] sm:$0xff] }
  0x16   :  { %v238_v63 = vld [vmem:[%s9391_s1 + $0x230] sm:$0xff]  ;;  %v191_v0 = vld [vmem:[%s9391_s1 + $0xb8] sm:$0xff]  ;;  %v192_v1 = vld [vmem:[%s9391_s1 + $0xc0] sm:$0xff] }
  0x17   :  { %6540 = vmatmul.mubr.msk.f32.gmra.mxu1 %vm296_vm2, %v217_v22  ;;  %v239_v2 = vld [vmem:[%s9391_s1 + $0x238] sm:$0xff]  ;;  %v240_v3 = vld [vmem:[%s9391_s1 + $0x240] sm:$0xff]  ;;  %v193_v4 = vld [vmem:[%s9391_s1 + $0xc8] sm:$0xff] }
  0x18   :  { %6542 = vmatprep.mubr.msk.f32.mxu1 %vm296_vm2, %v218_v23  ;;  %6471 = vmatmul.mubr.msk.f32.gmra.mxu0 %vm296_vm2, %v171_v24  ;;  %v194_v5 = vld [vmem:[%s9391_s1 + $0xd0] sm:$0xff]  ;;  %v241_v6 = vld [vmem:[%s9391_s1 + $0x248] sm:$0xff]  ;;  %v195_v8 = vld [vmem:[%s9391_s1 + $0xd8] sm:$0xff] }
  0x19   :  { %6473 = vmatprep.mubr.msk.f32.mxu0 %vm296_vm2, %v172_v25  ;;  %v242_v7 = vld [vmem:[%s9391_s1 + $0x250] sm:$0xff]  ;;  %v196_v9 = vld [vmem:[%s9391_s1 + $0xe0] sm:$0xff]  ;;  %v243_v10 = vld [vmem:[%s9391_s1 + $0x258] sm:$0xff] }
  0x1a   :  { %v244_v11 = vld [vmem:[%s9391_s1 + $0x260] sm:$0xff]  ;;  %v197_v12 = vld [vmem:[%s9391_s1 + $0xe8] sm:$0xff]  ;;  %v198_v13 = vld [vmem:[%s9391_s1 + $0xf0] sm:$0xff] }
  0x1b   :  { %6543 = vmatmul.mubr.msk.f32.gmra.mxu1 %vm296_vm2, %v219_v26  ;;  %v245_v14 = vld [vmem:[%s9391_s1 + $0x268] sm:$0xff]  ;;  %v246_v15 = vld [vmem:[%s9391_s1 + $0x270] sm:$0xff]  ;;  %v199_v16 = vld [vmem:[%s9391_s1 + $0xf8] sm:$0xff] }
  0x1c   :  { %6545 = vmatprep.mubr.msk.f32.mxu1 %vm296_vm2, %v220_v27  ;;  %6474 = vmatmul.mubr.msk.f32.gmra.mxu0 %vm296_vm2, %v173_v28  ;;  %v200_v17 = vld [vmem:[%s9391_s1 + $0x100] sm:$0xff]  ;;  %v247_v18 = vld [vmem:[%s9391_s1 + $0x278] sm:$0xff]  ;;  %v201_v20 = vld [vmem:[%s9391_s1 + $0x108] sm:$0xff] }
  0x1d   :  { %6476 = vmatprep.mubr.msk.f32.mxu0 %vm296_vm2, %v174_v29  ;;  %v248_v19 = vld [vmem:[%s9391_s1 + $0x280] sm:$0xff]  ;;  %v202_v21 = vld [vmem:[%s9391_s1 + $0x110] sm:$0xff]  ;;  %v249_v22 = vld [vmem:[%s9391_s1 + $0x288] sm:$0xff] }
  0x1e   :  { %v250_v23 = vld [vmem:[%s9391_s1 + $0x290] sm:$0xff]  ;;  %v203_v24 = vld [vmem:[%s9391_s1 + $0x118] sm:$0xff]  ;;  %v204_v25 = vld [vmem:[%s9391_s1 + $0x120] sm:$0xff] }
  0x1f   :  { %6546 = vmatmul.mubr.msk.f32.gmra.mxu1 %vm296_vm2, %v221_v30  ;;  %v251_v26 = vld [vmem:[%s9391_s1 + $0x298] sm:$0xff]  ;;  %v252_v27 = vld [vmem:[%s9391_s1 + $0x2a0] sm:$0xff]  ;;  %v205_v28 = vld [vmem:[%s9391_s1 + $0x128] sm:$0xff] }
  0x20   :  { %6548 = vmatprep.mubr.msk.f32.mxu1 %vm296_vm2, %v222_v31  ;;  %6477 = vmatmul.mubr.msk.f32.gmra.mxu0 %vm296_vm2, %v175_v32  ;;  %v206_v29 = vld [vmem:[%s9391_s1 + $0x130] sm:$0xff]  ;;  %v253_v30 = vld [vmem:[%s9391_s1 + $0x2a8] sm:$0xff]  ;;  %v207_v32 = vld [vmem:[%s9391_s1 + $0x138] sm:$0xff] }
  0x21   :  { %6479 = vmatprep.mubr.msk.f32.mxu0 %vm296_vm2, %v176_v33  ;;  %v254_v31 = vld [vmem:[%s9391_s1 + $0x2b0] sm:$0xff]  ;;  %v255_v33 = vld [vmem:[%s9391_s1 + $0x2b8] sm:$0xff] }
  0x23   :  { %6549 = vmatmul.mubr.msk.f32.gmra.mxu1 %vm296_vm2, %v223_v34  ;;  %v256_v34 = vld [vmem:[%s9391_s1 + $0x2c0] sm:$0xff] }
  0x24   :  { %6551 = vmatprep.mubr.msk.f32.mxu1 %vm296_vm2, %v224_v35  ;;  %6480 = vmatmul.mubr.msk.f32.gmra.mxu0 %vm296_vm2, %v177_v36  ;;  %v257_v35 = vld [vmem:[%s9391_s1 + $0x2c8] sm:$0xff]  ;;  %v258_v36 = vld [vmem:[%s9391_s1 + $0x2d0] sm:$0xff] }
  0x25   :  { %6482 = vmatprep.mubr.msk.f32.mxu0 %vm296_vm2, %v178_v37  ;;  %v259_v37 = vld [vmem:[%s9391_s1 + $0x2d8] sm:$0xff] }
  0x27   :  { %6552 = vmatmul.mubr.msk.f32.gmra.mxu1 %vm296_vm2, %v225_v38  ;;  %v260_v38 = vld [vmem:[%s9391_s1 + $0x2e0] sm:$0xff] }
  0x28   :  { %6554 = vmatprep.mubr.msk.f32.mxu1 %vm296_vm2, %v226_v39  ;;  %6483 = vmatmul.mubr.msk.f32.gmra.mxu0 %vm296_vm2, %v179_v40  ;;  %v261_v39 = vld [vmem:[%s9391_s1 + $0x2e8] sm:$0xff]  ;;  %v262_v40 = vld [vmem:[%s9391_s1 + $0x2f0] sm:$0xff] }
  0x29   :  { %6485 = vmatprep.mubr.msk.f32.mxu0 %vm296_vm2, %v180_v41  ;;  %v263_v41 = vld [vmem:[%s9391_s1 + $0x2f8] sm:$0xff] }
  0x2b   :  { %6555 = vmatmul.mubr.msk.f32.gmra.mxu1 %vm296_vm2, %v227_v42  ;;  %v264_v42 = vld [vmem:[%s9391_s1 + $0x300] sm:$0xff] }
  0x2c   :  { %6557 = vmatprep.mubr.msk.f32.mxu1 %vm296_vm2, %v228_v43  ;;  %6486 = vmatmul.mubr.msk.f32.gmra.mxu0 %vm296_vm2, %v181_v44  ;;  %v265_v43 = vld [vmem:[%s9391_s1 + $0x308] sm:$0xff]  ;;  %v266_v44 = vld [vmem:[%s9391_s1 + $0x310] sm:$0xff] }
  0x2d   :  { %6488 = vmatprep.mubr.msk.f32.mxu0 %vm296_vm2, %v182_v45  ;;  %v267_v45 = vld [vmem:[%s9391_s1 + $0x318] sm:$0xff] }
  0x2f   :  { %6558 = vmatmul.mubr.msk.f32.gmra.mxu1 %vm296_vm2, %v229_v46  ;;  %v268_v46 = vld [vmem:[%s9391_s1 + $0x320] sm:$0xff] }
  0x30   :  { %6560 = vmatprep.mubr.msk.f32.mxu1 %vm296_vm2, %v230_v47  ;;  %6489 = vmatmul.mubr.msk.f32.gmra.mxu0 %vm296_vm2, %v183_v48  ;;  %v269_v47 = vld [vmem:[%s9391_s1 + $0x328] sm:$0xff]  ;;  %v270_v48 = vld [vmem:[%s9391_s1 + $0x330] sm:$0xff] }
  0x31   :  { %6491 = vmatprep.mubr.msk.f32.mxu0 %vm296_vm2, %v184_v49  ;;  %v271_v49 = vld [vmem:[%s9391_s1 + $0x338] sm:$0xff] }
  0x33   :  { %6561 = vmatmul.mubr.msk.f32.gmra.mxu1 %vm296_vm2, %v231_v50  ;;  %v272_v50 = vld [vmem:[%s9391_s1 + $0x340] sm:$0xff] }
  0x34   :  { %6563 = vmatprep.mubr.msk.f32.mxu1 %vm296_vm2, %v232_v51  ;;  %6492 = vmatmul.mubr.msk.f32.gmra.mxu0 %vm296_vm2, %v185_v52  ;;  %v273_v51 = vld [vmem:[%s9391_s1 + $0x348] sm:$0xff]  ;;  %v274_v52 = vld [vmem:[%s9391_s1 + $0x350] sm:$0xff] }
  0x35   :  { %6494 = vmatprep.mubr.msk.f32.mxu0 %vm296_vm2, %v186_v53  ;;  %v275_v53 = vld [vmem:[%s9391_s1 + $0x358] sm:$0xff] }
  0x37   :  { %6564 = vmatmul.mubr.msk.f32.gmra.mxu1 %vm296_vm2, %v233_v54  ;;  %v276_v54 = vld [vmem:[%s9391_s1 + $0x360] sm:$0xff] }
  0x38   :  { %6566 = vmatprep.mubr.msk.f32.mxu1 %vm296_vm2, %v234_v55  ;;  %6495 = vmatmul.mubr.msk.f32.gmra.mxu0 %vm296_vm2, %v187_v56  ;;  %v277_v55 = vld [vmem:[%s9391_s1 + $0x368] sm:$0xff]  ;;  %v278_v56 = vld [vmem:[%s9391_s1 + $0x370] sm:$0xff] }
  0x39   :  { %6497 = vmatprep.mubr.msk.f32.mxu0 %vm296_vm2, %v188_v57  ;;  %v279_v57 = vld [vmem:[%s9391_s1 + $0x378] sm:$0xff] }
  0x3b   :  { %6567 = vmatmul.mubr.msk.f32.gmra.mxu1 %vm296_vm2, %v235_v58  ;;  %v280_v58 = vld [vmem:[%s9391_s1 + $0x380] sm:$0xff] }
  0x3c   :  { %6569 = vmatprep.mubr.msk.f32.mxu1 %vm296_vm2, %v236_v59  ;;  %6498 = vmatmul.mubr.msk.f32.gmra.mxu0 %vm296_vm2, %v189_v60  ;;  %v281_v59 = vld [vmem:[%s9391_s1 + $0x388] sm:$0xff]  ;;  %v282_v60 = vld [vmem:[%s9391_s1 + $0x390] sm:$0xff] }
  0x3d   :  { %6500 = vmatprep.mubr.msk.f32.mxu0 %vm296_vm2, %v190_v61  ;;  %v283_v61 = vld [vmem:[%s9391_s1 + $0x398] sm:$0xff] }
  0x3f   :  { %6570 = vmatmul.mubr.msk.f32.gmra.mxu1 %vm296_vm2, %v237_v62  ;;  %v284_v62 = vld [vmem:[%s9391_s1 + $0x3a0] sm:$0xff] }
  0x40   :  { %6572 = vmatprep.mubr.msk.f32.mxu1 %vm296_vm2, %v238_v63  ;;  %6501 = vmatmul.mubr.msk.f32.gmra.mxu0 %vm296_vm2, %v191_v0  ;;  %v285_v63 = vld [vmem:[%s9391_s1 + $0x3a8] sm:$0xff]  ;;  %v286_v0 = vld [vmem:[%s9391_s1 + $0x3b0] sm:$0xff] }
  0x41   :  { %6503 = vmatprep.mubr.msk.f32.mxu0 %vm296_vm2, %v192_v1  ;;  %v287_v1 = vld [vmem:[%s9391_s1 + $0x3b8] sm:$0xff] }
  0x43   :  { %6573 = vmatmul.mubr.msk.f32.gmra.mxu1 %vm296_vm2, %v239_v2  ;;  %v288_v2 = vld [vmem:[%s9391_s1 + $0x3c0] sm:$0xff] }
  0x44   :  { %6575 = vmatprep.mubr.msk.f32.mxu1 %vm296_vm2, %v240_v3  ;;  %6504 = vmatmul.mubr.msk.f32.gmra.mxu0 %vm296_vm2, %v193_v4  ;;  %v289_v3 = vld [vmem:[%s9391_s1 + $0x3c8] sm:$0xff]  ;;  %v290_v4 = vld [vmem:[%s9391_s1 + $0x3d0] sm:$0xff] }
  0x45   :  { %6506 = vmatprep.mubr.msk.f32.mxu0 %vm296_vm2, %v194_v5  ;;  %v291_v5 = vld [vmem:[%s9391_s1 + $0x3d8] sm:$0xff] }
  0x47   :  { %6576 = vmatmul.mubr.msk.f32.gmra.mxu1 %vm296_vm2, %v241_v6  ;;  %v292_v6 = vld [vmem:[%s9391_s1 + $0x3e0] sm:$0xff] }
  0x48   :  { %6578 = vmatprep.mubr.msk.f32.mxu1 %vm296_vm2, %v242_v7  ;;  %6507 = vmatmul.mubr.msk.f32.gmra.mxu0 %vm296_vm2, %v195_v8  ;;  %v293_v7 = vld [vmem:[%s9391_s1 + $0x3e8] sm:$0xff]  ;;  %v294_v8 = vld [vmem:[%s9391_s1 + $0x3f0] sm:$0xff] }
  0x49   :  { %6509 = vmatprep.mubr.msk.f32.mxu0 %vm296_vm2, %v196_v9  ;;  %v295_v9 = vld [vmem:[%s9391_s1 + $0x3f8] sm:$0xff]  ;;  %s6803_s1 = smov 64  }
  0x4b   :  { %6579 = vmatmul.mubr.msk.f32.gmra.mxu1 %vm296_vm2, %v243_v10  ;;  %v6801_v10 = vmov 1966171168  }
  0x4c   :  { %6581 = vmatprep.mubr.msk.f32.mxu1 %vm296_vm2, %v244_v11  ;;  %6510 = vmatmul.mubr.msk.f32.gmra.mxu0 %vm296_vm2, %v197_v12  ;;  %v1394_v11 = vunpack.c.l.s4 %v6801_v10  ;;  %v9393_v12 = vlaneseq }
  0x4d   :  { %6512 = vmatprep.mubr.msk.f32.mxu0 %vm296_vm2, %v198_v13 }
  0x4f   :  { %6582 = vmatmul.mubr.msk.f32.gmra.mxu1 %vm296_vm2, %v245_v14 }
  0x50   :  { %6584 = vmatprep.mubr.msk.f32.mxu1 %vm296_vm2, %v246_v15  ;;  %6513 = vmatmul.mubr.msk.f32.gmra.mxu0 %vm296_vm2, %v199_v16  ;;  %v1395_v15 = vunpack.c.0.s8 %v1394_v11  ;;  %v7386_v16 = vshrl.u32 %v9393_v12, 7 }
  0x51   :  { %6515 = vmatprep.mubr.msk.f32.mxu0 %vm296_vm2, %v200_v17 }
  0x53   :  { %6585 = vmatmul.mubr.msk.f32.gmra.mxu1 %vm296_vm2, %v247_v18 }
  0x54   :  { %6587 = vmatprep.mubr.msk.f32.mxu1 %vm296_vm2, %v248_v19  ;;  %6516 = vmatmul.mubr.msk.f32.gmra.mxu0 %vm296_vm2, %v201_v20  ;;  %v7397_v19 = vsub.s32 %v1395_v15, %v7386_v16 }
  0x55   :  { %6518 = vmatprep.mubr.msk.f32.mxu0 %vm296_vm2, %v202_v21 }
  0x57   :  { %6588 = vmatmul.mubr.msk.f32.gmra.mxu1 %vm296_vm2, %v249_v22 }
  0x58   :  { %6590 = vmatprep.mubr.msk.f32.mxu1 %vm296_vm2, %v250_v23  ;;  %6519 = vmatmul.mubr.msk.f32.gmra.mxu0 %vm296_vm2, %v203_v24 }
  0x59   :  { %6521 = vmatprep.mubr.msk.f32.mxu0 %vm296_vm2, %v204_v25  ;;  %v7409_v25 = vsub.s32 0, %v7386_v16 }
  0x5b   :  { %6591 = vmatmul.mubr.msk.f32.gmra.mxu1 %vm296_vm2, %v251_v26 }
  0x5c   :  { %6593 = vmatprep.mubr.msk.f32.mxu1 %vm296_vm2, %v252_v27  ;;  %6522 = vmatmul.mubr.msk.f32.gmra.mxu0 %vm296_vm2, %v205_v28 }
  0x5d   :  { %6524 = vmatprep.mubr.msk.f32.mxu0 %vm296_vm2, %v206_v29 }
  0x5f   :  { %6594 = vmatmul.mubr.msk.f32.gmra.mxu1 %vm296_vm2, %v253_v30 }
  0x60   :  { %6596 = vmatprep.mubr.msk.f32.mxu1 %vm296_vm2, %v254_v31  ;;  %6525 = vmatmul.mubr.msk.f32.gmra.mxu0 %vm296_vm2, %v207_v32 }
  0x63   :  { %6597 = vmatmul.mubr.msk.f32.gmra.mxu1 %vm296_vm2, %v255_v33 }
  0x64   :  { %6599 = vmatprep.mubr.msk.f32.mxu1 %vm296_vm2, %v256_v34 }
  0x67   :  { %6600 = vmatmul.mubr.msk.f32.gmra.mxu1 %vm296_vm2, %v257_v35 }
  0x68   :  { %6602 = vmatprep.mubr.msk.f32.mxu1 %vm296_vm2, %v258_v36 }
  0x6b   :  { %6603 = vmatmul.mubr.msk.f32.gmra.mxu1 %vm296_vm2, %v259_v37 }
  0x6c   :  { %6605 = vmatprep.mubr.msk.f32.mxu1 %vm296_vm2, %v260_v38 }
  0x6f   :  { %6606 = vmatmul.mubr.msk.f32.gmra.mxu1 %vm296_vm2, %v261_v39 }
  0x70   :  { %6608 = vmatprep.mubr.msk.f32.mxu1 %vm296_vm2, %v262_v40 }
  0x73   :  { %6609 = vmatmul.mubr.msk.f32.gmra.mxu1 %vm296_vm2, %v263_v41 }
  0x74   :  { %6611 = vmatprep.mubr.msk.f32.mxu1 %vm296_vm2, %v264_v42 }
  0x77   :  { %6612 = vmatmul.mubr.msk.f32.gmra.mxu1 %vm296_vm2, %v265_v43 }
  0x78   :  { %6614 = vmatprep.mubr.msk.f32.mxu1 %vm296_vm2, %v266_v44 }
  0x7b   :  { %6615 = vmatmul.mubr.msk.f32.gmra.mxu1 %vm296_vm2, %v267_v45 }
  0x7c   :  { %6617 = vmatprep.mubr.msk.f32.mxu1 %vm296_vm2, %v268_v46 }
  0x7f   :  { %6618 = vmatmul.mubr.msk.f32.gmra.mxu1 %vm296_vm2, %v269_v47 }
  0x80   :  { %6620 = vmatprep.mubr.msk.f32.mxu1 %vm296_vm2, %v270_v48 }
  0x83   :  { %6621 = vmatmul.mubr.msk.f32.gmra.mxu1 %vm296_vm2, %v271_v49 }
  0x84   :  { %6623 = vmatprep.mubr.msk.f32.mxu1 %vm296_vm2, %v272_v50 }
  0x87   :  { %6624 = vmatmul.mubr.msk.f32.gmra.mxu1 %vm296_vm2, %v273_v51 }
  0x88   :  { %6626 = vmatprep.mubr.msk.f32.mxu1 %vm296_vm2, %v274_v52 }
  0x8b   :  { %6627 = vmatmul.mubr.msk.f32.gmra.mxu1 %vm296_vm2, %v275_v53 }
  0x8c   :  { %6629 = vmatprep.mubr.msk.f32.mxu1 %vm296_vm2, %v276_v54 }
  0x8f   :  { %6630 = vmatmul.mubr.msk.f32.gmra.mxu1 %vm296_vm2, %v277_v55 }
  0x90   :  { %6632 = vmatprep.mubr.msk.f32.mxu1 %vm296_vm2, %v278_v56 }
  0x93   :  { %6633 = vmatmul.mubr.msk.f32.gmra.mxu1 %vm296_vm2, %v279_v57 }
  0x94   :  { %6635 = vmatprep.mubr.msk.f32.mxu1 %vm296_vm2, %v280_v58 }
  0x97   :  { %6636 = vmatmul.mubr.msk.f32.gmra.mxu1 %vm296_vm2, %v281_v59 }
  0x98   :  { %6638 = vmatprep.mubr.msk.f32.mxu1 %vm296_vm2, %v282_v60 }
  0x9b   :  { %6639 = vmatmul.mubr.msk.f32.gmra.mxu1 %vm296_vm2, %v283_v61 }
  0x9c   :  { %6641 = vmatprep.mubr.msk.f32.mxu1 %vm296_vm2, %v284_v62 }
  0x9f   :  { %6642 = vmatmul.mubr.msk.f32.gmra.mxu1 %vm296_vm2, %v285_v63 }
  0xa0   :  { %6644 = vmatprep.mubr.msk.f32.mxu1 %vm296_vm2, %v286_v0 }
  0xa3   :  { %6645 = vmatmul.mubr.msk.f32.gmra.mxu1 %vm296_vm2, %v287_v1 }
  0xa4   :  { %6647 = vmatprep.mubr.msk.f32.mxu1 %vm296_vm2, %v288_v2 }
  0xa7   :  { %6648 = vmatmul.mubr.msk.f32.gmra.mxu1 %vm296_vm2, %v289_v3 }
  0xa8   :  { %6650 = vmatprep.mubr.msk.f32.mxu1 %vm296_vm2, %v290_v4 }
  0xab   :  { %6651 = vmatmul.mubr.msk.f32.gmra.mxu1 %vm296_vm2, %v291_v5 }
  0xac   :  { %6653 = vmatprep.mubr.msk.f32.mxu1 %vm296_vm2, %v292_v6 }
  0xaf   :  { %6654 = vmatmul.mubr.msk.f32.gmra.mxu1 %vm296_vm2, %v293_v7 }
  0xb0   :  { %6656 = vmatprep.mubr.msk.f32.mxu1 %vm296_vm2, %v294_v8 }
  0xb3   :  { %6657 = vmatmul.mubr.msk.f32.gmra.mxu1 %vm296_vm2, %v295_v9 }
  0xc4   :  { %v7379_v13 = vpop.f32.mrf.mxu0 }
  0xc5   :  { %9524 = vst [vmem:[#allocation2_spill] sm:$0xff] %v7379_v13  ;;  %1701 = vrot.lane.b32.xlu0 %v7379_v13, %s6802_s9 }
  0xc6   :  { %v7383_v14 = vpop.f32.mrf.mxu0 }
  0xc7   :  { %9525 = vst [vmem:[#allocation3_spill] sm:$0xff] %v7383_v14  ;;  %6663 = vmatprep.mubr.msk.f32.mxu0 %vm1602_vm3, %v7383_v14  ;;  %v1399_v21 = vrot.slane %v7383_v14, %v7397_v19  ;;  %v1392_v42 = vcombine.high %v7383_v14, %v7383_v14 }
  0xc8   :  { %v7390_v17 = vpop.f32.mrf.mxu0 }
  0xc9   :  { %9526 = vst [vmem:[#allocation4_spill] sm:$0xff] %v7390_v17  ;;  %1699 = vrot.lane.b32.xlu0 %v7383_v14, %s6802_s9  ;;  %v1415_v24 = vrot.slane %v1399_v21, %v7397_v19  ;;  %v1407_v27 = vcombine.high %v1399_v21, %v1399_v21  ;;  %v1406_v49 = vrot.slane %v1392_v42, %v7397_v19 }
  0xca   :  { %v7394_v18 = vpop.f32.mrf.mxu0  ;;  %v1448_v21 = vrot.slane %v7379_v13, %v7397_v19 }
  0xcb   :  { %9527 = vst [vmem:[#allocation5_spill] sm:$0xff] %v7394_v18  ;;  %v1493_v29 = vrot.slane %v1415_v24, %v7409_v25  ;;  %v1429_v32 = vrot.slane %v1407_v27, %v7397_v19  ;;  %v1437_v38 = vcombine.high %v1415_v24, %v1415_v24  ;;  %v1422_v56 = vrot.slane %v1406_v49, %v7397_v19 }
  0xcc   :  { %v7399_v20 = vpop.f32.mrf.mxu0  ;;  %v1408_v57 = vcombine.high %v1406_v49, %v1406_v49 }
  0xcd   :  { %9528 = vst [vmem:[#allocation6_spill] sm:$0xff] %v7399_v20  ;;  %v1497_v36 = vrot.slane %v1429_v32, %v7409_v25  ;;  %v1501_v43 = vrot.slane %v1437_v38, %v7409_v25  ;;  %v1439_v48 = vcombine.high %v1429_v32, %v1429_v32  ;;  %v1509_v0 = vrot.slane %v1422_v56, %v7409_v25 }
  0xce   :  { %v7403_v22 = vpop.f32.mrf.mxu0  ;;  %v1436_v1 = vrot.slane %v1408_v57, %v7397_v19  ;;  %v1438_v9 = vcombine.high %v1422_v56, %v1422_v56  ;;  %v1464_v38 = vrot.slane %v1448_v21, %v7397_v19 }
  0xcf   :  { %9529 = vst [vmem:[#allocation7_spill] sm:$0xff] %v7403_v22  ;;  %v1505_v55 = vrot.slane %v1439_v48, %v7409_v25  ;;  %v1441_v48 = vcombine.high %v7379_v13, %v7379_v13 }
  0xd0   :  { %v7405_v23 = vpop.f32.mrf.mxu0  ;;  %v1513_v8 = vrot.slane %v1436_v1, %v7409_v25  ;;  %v1440_v32 = vcombine.high %v1436_v1, %v1436_v1 }
  0xd1   :  { %9530 = vst [vmem:[#allocation8_spill] sm:$0xff] %v7405_v23  ;;  %v1455_v1 = vrot.slane %v1441_v48, %v7397_v19 }
  0xd2   :  { %v7411_v26 = vpop.f32.mrf.mxu0 }
  0xd3   :  { %9531 = vst [vmem:[#allocation9_spill] sm:$0xff] %v7411_v26 }
  0xd4   :  { %v7413_v28 = vpop.f32.mrf.mxu0 }
  0xd5   :  { %v1571_v31 = vmul.f32 %v7413_v28, %v1493_v29 }
  0xd6   :  { %v7416_v30 = vpop.f32.mrf.mxu0 }
  0xd7   :  { %v1570_v33 = vmul.f32 %v1493_v29, %v7416_v30  ;;  %v1606_v34 = vsel %vm1602_vm3, %v1571_v31, 0.0  ;;  %v1517_v31 = vrot.slane %v1438_v9, %v7409_v25 }
  0xd8   :  { %v7422_v35 = vpop.f32.mrf.mxu0  ;;  %1607 = vadd.xlane.f32.xlu1 %v1606_v34 }
  0xd9   :  { %v1573_v39 = vmul.f32 %v7422_v35, %v1497_v36  ;;  %v1603_v40 = vsel %vm1602_vm3, %v1570_v33, 0.0 }
  0xda   :  { %v7425_v37 = vpop.f32.mrf.mxu0 }
  0xdb   :  { %v1612_v46 = vsel %vm1602_vm3, %v1573_v39, 0.0  ;;  %v1572_v51 = vmul.f32 %v1497_v36, %v7425_v37  ;;  %v1456_v39 = vcombine.high %v1448_v21, %v1448_v21  ;;  %v1457_v21 = vcombine.high %v1455_v1, %v1455_v1 }
  0xdc   :  { %v7429_v41 = vpop.f32.mrf.mxu0  ;;  %1604 = vadd.xlane.f32.xlu1 %v1603_v40 }
  0xdd   :  { %v1575_v45 = vmul.f32 %v7429_v41, %v1501_v43  ;;  %v1609_v60 = vsel %vm1602_vm3, %v1572_v51, 0.0 }
  0xde   :  { %v7434_v44 = vpop.f32.mrf.mxu0 }
  0xdf   :  { %9532 = vst [vmem:[#allocation10_spill] sm:$0xff] %v7434_v44  ;;  %v1574_v52 = vmul.f32 %v1501_v43, %v7434_v44  ;;  %v1618_v53 = vsel %vm1602_vm3, %v1575_v45, 0.0  ;;  %v1521_v45 = vrot.slane %v1440_v32, %v7409_v25 }
  0xe0   :  { %v7438_v47 = vpop.f32.mrf.mxu0  ;;  %1613 = vadd.xlane.f32.xlu1 %v1612_v46 }
  0xe1   :  { %9533 = vst [vmem:[#allocation11_spill] sm:$0xff] %v7438_v47  ;;  %v1577_v59 = vmul.f32 %v7438_v47, %v1505_v55  ;;  %v1615_v62 = vsel %vm1602_vm3, %v1574_v52, 0.0  ;;  %v1478_v52 = vrot.slane %v1456_v39, %v7397_v19 }
  0xe2   :  { %v7441_v50 = vpop.f32.mrf.mxu0 }
  0xe3   :  { %9534 = vst [vmem:[#allocation12_spill] sm:$0xff] %v7441_v50  ;;  %v1576_v61 = vmul.f32 %v1505_v55, %v7441_v50  ;;  %v1624_v4 = vsel %vm1602_vm3, %v1577_v59, 0.0  ;;  %v1525_v59 = vrot.slane %v1464_v38, %v7409_v25 }
  0xe4   :  { %v7446_v54 = vpop.f32.mrf.mxu0  ;;  %1619 = vadd.xlane.f32.xlu1 %v1618_v53  ;;  %v1486_v53 = vcombine.high %v1464_v38, %v1464_v38 }
  0xe5   :  { %9535 = vst [vmem:[#allocation13_spill] sm:$0xff] %v7446_v54  ;;  %v1579_v3 = vmul.f32 %v7446_v54, %v1509_v0  ;;  %v1621_v6 = vsel %vm1602_vm3, %v1576_v61, 0.0 }
  0xe6   :  { %v7450_v58 = vpop.f32.mrf.mxu0 }
  0xe7   :  { %9536 = vst [vmem:[#allocation14_spill] sm:$0xff] %v7450_v58  ;;  %v1578_v5 = vmul.f32 %v1509_v0, %v7450_v58  ;;  %v1630_v15 = vsel %vm1602_vm3, %v1579_v3, 0.0  ;;  %v1488_v0 = vcombine.high %v1478_v52, %v1478_v52 }
  0xe8   :  { %1610 = vadd.xlane.f32.xlu0 %v1609_v60  ;;  %v7456_v63 = vpop.f32.mrf.mxu0  ;;  %1616 = vadd.xlane.f32.xlu1 %v1615_v62  ;;  %v1533_v62 = vrot.slane %v1486_v53, %v7409_v25 }
  0xe9   :  { %9537 = vst [vmem:[#allocation15_spill] sm:$0xff] %v7456_v63  ;;  %v1581_v11 = vmul.f32 %v7456_v63, %v1513_v8  ;;  %v1627_v27 = vsel %vm1602_vm3, %v1578_v5, 0.0 }
  0xea   :  { %v7460_v2 = vpop.f32.mrf.mxu0 }
  0xeb   :  { %9538 = vst [vmem:[#allocation16_spill] sm:$0xff] %v7460_v2  ;;  %v1580_v24 = vmul.f32 %v1513_v8, %v7460_v2  ;;  %v1636_v36 = vsel %vm1602_vm3, %v1581_v11, 0.0  ;;  %v1537_v11 = vrot.slane %v1488_v0, %v7409_v25 }
  0xec   :  { %1625 = vadd.xlane.f32.xlu0 %v1624_v4  ;;  %v7466_v7 = vpop.f32.mrf.mxu0  ;;  %1622 = vadd.xlane.f32.xlu1 %v1621_v6 }
  0xed   :  { %9539 = vst [vmem:[#allocation17_spill] sm:$0xff] %v7466_v7  ;;  %v1583_v34 = vmul.f32 %v7466_v7, %v1517_v31  ;;  %v1633_v42 = vsel %vm1602_vm3, %v1580_v24, 0.0 }
  0xee   :  { %v7469_v10 = vpop.f32.mrf.mxu0 }
  0xef   :  { %9540 = vst [vmem:[#allocation18_spill] sm:$0xff] %v7469_v10  ;;  %v1582_v40 = vmul.f32 %v1517_v31, %v7469_v10  ;;  %v1642_v51 = vsel %vm1602_vm3, %v1583_v34, 0.0  ;;  %v1529_v34 = vrot.slane %v1478_v52, %v7409_v25 }
  0xf0   :  { %1631 = vadd.xlane.f32.xlu0 %v1630_v15  ;;  %v7477_v29 = vpop.f32.mrf.mxu0  ;;  %1628 = vadd.xlane.f32.xlu1 %v1627_v27  ;;  %v1471_v15 = vrot.slane %v1455_v1, %v7397_v19 }
  0xf1   :  { %9541 = vst [vmem:[#allocation19_spill] sm:$0xff] %v7477_v29  ;;  %v1585_v49 = vmul.f32 %v7477_v29, %v1521_v45  ;;  %v1639_v56 = vsel %vm1602_vm3, %v1582_v40, 0.0  ;;  %v1485_v40 = vrot.slane %v1457_v21, %v7397_v19  ;;  %v9559_v29 = vlaneseq }
  0xf2   :  { %v7480_v33 = vpop.f32.mrf.mxu0  ;;  %v1541_v39 = vrot.slane %v1471_v15, %v7409_v25 }
  0xf3   :  { %9542 = vst [vmem:[#allocation20_spill] sm:$0xff] %v7480_v33  ;;  %v1584_v55 = vmul.f32 %v1521_v45, %v7480_v33  ;;  %v1648_v61 = vsel %vm1602_vm3, %v1585_v49, 0.0  ;;  %v1545_v53 = vrot.slane %v1485_v40, %v7409_v25  ;;  %v1736_v33 = vand.u32 127, %v9559_v29 }
  0xf4   :  { %1637 = vadd.xlane.f32.xlu0 %v1636_v36  ;;  %v7487_v43 = vpop.f32.mrf.mxu0  ;;  %1634 = vadd.xlane.f32.xlu1 %v1633_v42 }
  0xf5   :  { %v1587_v3 = vmul.f32 %v7487_v43, %v1525_v59  ;;  %v1645_v4 = vsel %vm1602_vm3, %v1584_v55, 0.0  ;;  %v1487_v55 = vcombine.high %v1471_v15, %v1471_v15  ;;  %v1741_v10 = vadd.s32 4294967288, %v1736_v33 }
  0xf6   :  { %v7490_v46 = vpop.f32.mrf.mxu0 }
  0xf7   :  { %9543 = vst [vmem:[#allocation21_spill] sm:$0xff] %v7490_v46  ;;  %v1586_v24 = vmul.f32 %v1525_v59, %v7490_v46  ;;  %v1654_v27 = vsel %vm1602_vm3, %v1587_v3, 0.0  ;;  %v7611_v2 = vsub.s32 %v1741_v10, %v7386_v16 }
  0xf8   :  { %1643 = vadd.xlane.f32.xlu0 %v1642_v51  ;;  %v7499_v57 = vpop.f32.mrf.mxu0  ;;  %1640 = vadd.xlane.f32.xlu1 %v1639_v56 }
  0xf9   :  { %9544 = vst [vmem:[#allocation22_spill] sm:$0xff] %v7499_v57  ;;  %v1589_v42 = vmul.f32 %v7499_v57, %v1529_v34  ;;  %v1651_v45 = vsel %vm1602_vm3, %v1586_v24, 0.0 }
  0xfa   :  { %v7502_v60 = vpop.f32.mrf.mxu0 }
  0xfb   :  { %9545 = vst [vmem:[#allocation23_spill] sm:$0xff] %v7502_v60  ;;  %v1588_v56 = vmul.f32 %v1529_v34, %v7502_v60  ;;  %v1660_v59 = vsel %vm1602_vm3, %v1589_v42, 0.0 }
  0xfc   :  { %1649 = vadd.xlane.f32.xlu0 %v1648_v61  ;;  %v7509_v5 = vpop.f32.mrf.mxu0  ;;  %1646 = vadd.xlane.f32.xlu1 %v1645_v4  ;;  %v1549_v4 = vrot.slane %v1487_v55, %v7409_v25 }
  0xfd   :  { %9546 = vst [vmem:[#allocation24_spill] sm:$0xff] %v7509_v5  ;;  %v1591_v6 = vmul.f32 %v7509_v5, %v1533_v62  ;;  %v1657_v15 = vsel %vm1602_vm3, %v1588_v56, 0.0 }
  0xfe   :  { %v7512_v8 = vpop.f32.mrf.mxu0 }
  0xff   :  { %9547 = vst [vmem:[#allocation25_spill] sm:$0xff] %v7512_v8  ;;  %v1666_v9 = vsel %vm1602_vm3, %v1591_v6, 0.0  ;;  %v1489_v6 = vcombine.high %v1485_v40, %v1485_v40 }
 0x100   :  { %1667 = vadd.xlane.f32.xlu0 %v1666_v9  ;;  %v7519_v31 = vpop.f32.mrf.mxu0  ;;  %1655 = vadd.xlane.f32.xlu1 %v1654_v27  ;;  %v1590_v9 = vmul.f32 %v1533_v62, %v7512_v8 }
 0x101   :  { %9548 = vst [vmem:[#allocation26_spill] sm:$0xff] %v7519_v31  ;;  %v1593_v32 = vmul.f32 %v7519_v31, %v1537_v11  ;;  %v1553_v34 = vrot.slane %v1489_v6, %v7409_v25 }
 0x102   :  { %v7523_v36 = vpop.f32.mrf.mxu0  ;;  %v1663_v40 = vsel %vm1602_vm3, %v1590_v9, 0.0 }
 0x103   :  { %9549 = vst [vmem:[#allocation27_spill] sm:$0xff] %v7523_v36  ;;  %v1672_v38 = vsel %vm1602_vm3, %v1593_v32, 0.0 }
 0x104   :  { %1673 = vadd.xlane.f32.xlu0 %v1672_v38  ;;  %v7530_v48 = vpop.f32.mrf.mxu0  ;;  %1652 = vadd.xlane.f32.xlu1 %v1651_v45  ;;  %v1592_v38 = vmul.f32 %v1537_v11, %v7523_v36 }
 0x105   :  { %9550 = vst [vmem:[#allocation28_spill] sm:$0xff] %v7530_v48  ;;  %v1595_v49 = vmul.f32 %v7530_v48, %v1541_v39  ;;  %v7606_v48 = vsub.s32 %v1736_v33, %v7386_v16 }
 0x106   :  { %v7533_v51 = vpop.f32.mrf.mxu0 }
 0x107   :  { %9551 = vst [vmem:[#allocation29_spill] sm:$0xff] %v7533_v51  ;;  %v1678_v52 = vsel %vm1602_vm3, %v1595_v49, 0.0  ;;  %v1594_v49 = vmul.f32 %v1541_v39, %v7533_v51 }
 0x108   :  { %1679 = vadd.xlane.f32.xlu0 %v1678_v52  ;;  %v7539_v61 = vpop.f32.mrf.mxu0  ;;  %1661 = vadd.xlane.f32.xlu1 %v1660_v59  ;;  %v1669_v52 = vsel %vm1602_vm3, %v1592_v38, 0.0 }
 0x109   :  { %9552 = vst [vmem:[#allocation30_spill] sm:$0xff] %v7539_v61  ;;  %v1597_v0 = vmul.f32 %v7539_v61, %v1545_v53  ;;  %v1675_v11 = vsel %vm1602_vm3, %v1594_v49, 0.0 }
 0x10a   :  { %v7542_v1 = vpop.f32.mrf.mxu0 }
 0x10b   :  { %9553 = vst [vmem:[#allocation31_spill] sm:$0xff] %v7542_v1  ;;  %v1684_v3 = vsel %vm1602_vm3, %v1597_v0, 0.0  ;;  %v1596_v55 = vmul.f32 %v1545_v53, %v7542_v1 }
 0x10c   :  { %1685 = vadd.xlane.f32.xlu0 %v1684_v3  ;;  %v7548_v21 = vpop.f32.mrf.mxu0  ;;  %1658 = vadd.xlane.f32.xlu1 %v1657_v15 }
 0x10d   :  { %9554 = vst [vmem:[#allocation32_spill] sm:$0xff] %v7548_v21  ;;  %v1599_v24 = vmul.f32 %v7548_v21, %v1549_v4  ;;  %v1681_v59 = vsel %vm1602_vm3, %v1596_v55, 0.0 }
 0x10e   :  { %v7551_v27 = vpop.f32.mrf.mxu0 }
 0x10f   :  { %9555 = vst [vmem:[#allocation33_spill] sm:$0xff] %v7551_v27  ;;  %v1690_v32 = vsel %vm1602_vm3, %v1599_v24, 0.0  ;;  %v1598_v56 = vmul.f32 %v1549_v4, %v7551_v27 }
 0x110   :  { %1691 = vadd.xlane.f32.xlu0 %v1690_v32  ;;  %v7557_v62 = vpop.f32.mrf.mxu0  ;;  %1664 = vadd.xlane.f32.xlu1 %v1663_v40 }
 0x111   :  { %9556 = vst [vmem:[#allocation34_spill] sm:$0xff] %v7557_v62  ;;  %v1601_v42 = vmul.f32 %v7557_v62, %v1553_v34  ;;  %v1687_v39 = vsel %vm1602_vm3, %v1598_v56, 0.0 }
 0x112   :  { %v7567_v0 = vpop.f32.mrf.mxu0 }
 0x113   :  { %v1696_v45 = vsel %vm1602_vm3, %v1601_v42, 0.0  ;;  %9557 = vst [vmem:[#allocation35_spill] sm:$0xff] %v7567_v0  ;;  %v1600_v3 = vmul.f32 %v1553_v34, %v7567_v0 }
 0x114   :  { %1697 = vadd.xlane.f32.xlu0 %v1696_v45  ;;  %1670 = vadd.xlane.f32.xlu1 %v1669_v52  ;;  %v7598_v27 = vpop.f32.mrf.mxu0 }
 0x115   :  { %v1693_v6 = vsel %vm1602_vm3, %v1600_v3, 0.0  ;;  %9558 = vst [vmem:[#allocation36_spill] sm:$0xff] %v7598_v27 }
 0x116   :  { %v7603_v1 = vpop.f32.mrf.mxu0 }
 0x117   :  { %9560 = vst [vmem:[#allocation37_spill] sm:$0xff] %v7603_v1 }
 0x118   :  { %1676 = vadd.xlane.f32.xlu1 %v1675_v11  ;;  %v7608_v51 = vpop.f32.mrf.mxu0 }
 0x119   :  { %9561 = vst [vmem:[#allocation38_spill] sm:$0xff] %v7608_v51 }
 0x11a   :  { %v7615_v31 = vpop.f32.mrf.mxu0 }
 0x11b   :  { %9562 = vst [vmem:[#allocation39_spill] sm:$0xff] %v7615_v31 }
 0x11c   :  { %1682 = vadd.xlane.f32.xlu1 %v1681_v59  ;;  %v7625_v47 = vpop.f32.mrf.mxu0 }
 0x11d   :  { %9563 = vst [vmem:[#allocation40_spill] sm:$0xff] %v7625_v47 }
 0x120   :  { %1688 = vadd.xlane.f32.xlu1 %v1687_v39 }
 0x124   :  { %1694 = vadd.xlane.f32.xlu1 %v1693_v6 }
 0x137   :  { %v1702_v9 = vpop.permute.xlu0 %1701 }
 0x138   :  { %6659 = vmatprep.subr.msk.mxu0 %vm1602_vm3, %v1702_v9 }
 0x139   :  { %6660 = vmatpush3.xpose.msk.msra.mxu0 %vm1602_vm3, %v1702_v9 }
 0x13b   :  { %v1700_v53 = vpop.permute.xlu0 %1699 }
 0x13c   :  { %6661 = vmatprep.subr.msk.mxu0 %vm1602_vm3, %v1700_v53 }
 0x13d   :  { %6662 = vmatpush3.xpose.msk.msra.mxu0 %vm1602_vm3, %v1700_v53 }
 0x140   :  { %6664 = vmatmul.mubr.msk.f32.vlgmr.msra.gmra.mxu0 %vm1602_vm3, %v7379_v13 }
 0x161   :  { %v1608_v4 = vpop.xlane.xlu1 %1607 }
 0x162   :  { %v1745_v8 = vrot.slane %v1608_v4, %v7611_v2 }
 0x165   :  { %v1605_v15 = vpop.xlane.xlu1 %1604 }
 0x166   :  { %v1740_v29 = vrot.slane %v1605_v15, %v7606_v48 }
 0x168   :  { %v1747_v15 = vsel %vm1746_vm4, %v1745_v8, %v1740_v29 }
 0x169   :  { %v1614_v24 = vpop.xlane.xlu1 %1613 }
 0x16a   :  { %v1755_v54 = vrot.slane %v1614_v24, %v7611_v2 }
 0x16d   :  { %v1620_v32 = vpop.xlane.xlu1 %1619 }
 0x16e   :  { %v1764_v60 = vrot.slane %v1620_v32, %v7611_v2 }
 0x171   :  { %v1617_v34 = vpop.xlane.xlu1 %1616  ;;  %v1611_v49 = vpop.xlane.xlu0 %1610 }
 0x172   :  { %v1751_v36 = vrot.slane %v1611_v49, %v7606_v48  ;;  %v1760_v33 = vrot.slane %v1617_v34, %v7606_v48 }
 0x174   :  { %v1756_v5 = vsel %vm1746_vm4, %v1755_v54, %v1751_v36  ;;  %v1765_v34 = vsel %vm1746_vm4, %v1764_v60, %v1760_v33 }
 0x175   :  { %v1623_v38 = vpop.xlane.xlu1 %1622  ;;  %v1626_v55 = vpop.xlane.xlu0 %1625  ;;  %v1884_v57 = vsel %vm1883_vm5, %v1756_v5, %v1747_v15 }
 0x176   :  { %v1773_v10 = vrot.slane %v1626_v55, %v7611_v2  ;;  %v1769_v50 = vrot.slane %v1623_v38, %v7606_v48 }
 0x178   :  { %v1774_v36 = vsel %vm1746_vm4, %v1773_v10, %v1769_v50  ;;  %v7642_v50 = vpop.f32.mrf.mxu0 }
 0x179   :  { %v7578_v40 = vpop.xlane.xlu1 %1628  ;;  %v7588_v56 = vpop.xlane.xlu0 %1631  ;;  %9564 = vst [vmem:[#allocation41_spill] sm:$0xff] %v7642_v50 }
 0x17a   :  { %v1782_v4 = vrot.slane %v7588_v56, %v7611_v2  ;;  %v1778_v32 = vrot.slane %v7578_v40, %v7606_v48 }
 0x17d   :  { %v7580_v42 = vpop.xlane.xlu1 %1634  ;;  %v7592_v3 = vpop.xlane.xlu0 %1637 }
 0x17e   :  { %v1791_v38 = vrot.slane %v7592_v3, %v7611_v2  ;;  %v1787_v56 = vrot.slane %v7580_v42, %v7606_v48 }
 0x181   :  { %v7582_v45 = vpop.xlane.xlu1 %1640  ;;  %v7594_v6 = vpop.xlane.xlu0 %1643 }
 0x182   :  { %v1800_v40 = vrot.slane %v7594_v6, %v7611_v2  ;;  %v1796_v42 = vrot.slane %v7582_v45, %v7606_v48 }
 0x185   :  { %v7584_v52 = vpop.xlane.xlu1 %1646  ;;  %v7596_v53 = vpop.xlane.xlu0 %1649 }
 0x189   :  { %v7586_v11 = vpop.xlane.xlu1 %1655  ;;  %v1668_v62 = vpop.xlane.xlu0 %1667 }
 0x18d   :  { %v7590_v59 = vpop.xlane.xlu1 %1652  ;;  %v1674_v21 = vpop.xlane.xlu0 %1673 }
 0x18e   :  { %v1814_v60 = vrot.slane %v7590_v59, %v7606_v48  ;;  %v1818_v59 = vrot.slane %v7586_v11, %v7611_v2 }
 0x190   :  { %v1819_v10 = vsel %vm1746_vm4, %v1818_v59, %v1814_v60 }
 0x191   :  { %v1662_v39 = vpop.xlane.xlu1 %1661  ;;  %v1680_v7 = vpop.xlane.xlu0 %1679 }
 0x192   :  { %v1827_v5 = vrot.slane %v1662_v39, %v7611_v2  ;;  %v1845_v39 = vrot.slane %v1674_v21, %v7611_v2  ;;  %v1854_v6 = vrot.slane %v1680_v7, %v7611_v2 }
 0x195   :  { %v1659_v9 = vpop.xlane.xlu1 %1658  ;;  %v1686_v58 = vpop.xlane.xlu0 %1685 }
 0x196   :  { %v1823_v54 = vrot.slane %v1659_v9, %v7606_v48  ;;  %v1863_v11 = vrot.slane %v1686_v58, %v7611_v2 }
 0x199   :  { %v1665_v12 = vpop.xlane.xlu1 %1664  ;;  %v1692_v24 = vpop.xlane.xlu0 %1691 }
 0x19a   :  { %v1832_v8 = vrot.slane %v1665_v12, %v7606_v48  ;;  %v1836_v12 = vrot.slane %v1668_v62, %v7611_v2  ;;  %v1872_v45 = vrot.slane %v1692_v24, %v7611_v2  ;;  %v1886_v24 = vsel %vm1885_vm6, %v1765_v34, %v1884_v57 }
 0x19c   :  { %v1837_v62 = vsel %vm1746_vm4, %v1836_v12, %v1832_v8 }
 0x19d   :  { %v1671_v0 = vpop.xlane.xlu1 %1670  ;;  %v1698_v33 = vpop.xlane.xlu0 %1697 }
 0x19e   :  { %v1841_v55 = vrot.slane %v1671_v0, %v7606_v48  ;;  %v1828_v0 = vsel %vm1746_vm4, %v1827_v5, %v1823_v54  ;;  %v7665_v54 = vpop.f32.mrf.mxu0  ;;  %v1881_v60 = vrot.slane %v1698_v33, %v7611_v2 }
 0x19f   :  { %9565 = vst [vmem:[#allocation42_spill] sm:$0xff] %v7665_v54  ;;  %v1897_v7 = vsel %vm1883_vm5, %v1828_v0, %v1819_v10 }
 0x1a0   :  { %v1846_v21 = vsel %vm1746_vm4, %v1845_v39, %v1841_v55  ;;  %v1898_v58 = vsel %vm1885_vm6, %v1837_v62, %v1897_v7  ;;  %v1783_v55 = vsel %vm1746_vm4, %v1782_v4, %v1778_v32  ;;  %v7684_v59 = vpop.f32.mrf.mxu0  ;;  %v1888_v39 = vsel %vm1887_vm7, %v1774_v36, %v1886_v24 }
 0x1a1   :  { %v7601_v61 = vpop.xlane.xlu1 %1676  ;;  %v1899_v12 = vsel %vm1887_vm7, %v1846_v21, %v1898_v58  ;;  %9566 = vst [vmem:[#allocation43_spill] sm:$0xff] %v7684_v59  ;;  %v1801_v32 = vsel %vm1746_vm4, %v1800_v40, %v1796_v42  ;;  %v1890_v34 = vsel %vm1889_vm8, %v1783_v55, %v1888_v39  ;;  %v2504_v39 = vrot.slane %v7394_v18, %v7397_v19 }
 0x1a2   :  { %v1850_v3 = vrot.slane %v7601_v61, %v7606_v48 }
 0x1a4   :  { %v1855_v8 = vsel %vm1746_vm4, %v1854_v6, %v1850_v3  ;;  %v1792_v3 = vsel %vm1746_vm4, %v1791_v38, %v1787_v56 }
 0x1a5   :  { %v1683_v63 = vpop.xlane.xlu1 %1682 }
 0x1a6   :  { %v1859_v29 = vrot.slane %v1683_v63, %v7606_v48  ;;  %v1809_v63 = vrot.slane %v7596_v53, %v7611_v2 }
 0x1a8   :  { %v1864_v5 = vsel %vm1746_vm4, %v1863_v11, %v1859_v29  ;;  %v1892_v29 = vsel %vm1891_vm9, %v1792_v3, %v1890_v34 }
 0x1a9   :  { %v1689_v49 = vpop.xlane.xlu1 %1688  ;;  %v1894_v36 = vsel %vm1893_vm10, %v1801_v32, %v1892_v29  ;;  %v2520_v32 = vrot.slane %v2504_v39, %v7397_v19  ;;  %v2553_v29 = vrot.slane %v7390_v17, %v7397_v19 }
 0x1aa   :  { %v1868_v61 = vrot.slane %v1689_v49, %v7606_v48  ;;  %v1805_v49 = vrot.slane %v7584_v52, %v7606_v48  ;;  %v1900_v52 = vsel %vm1889_vm8, %v1855_v8, %v1899_v12  ;;  %v7710_v12 = vpop.f32.mrf.mxu1 }
 0x1ab   :  { %v1901_v4 = vsel %vm1891_vm9, %v1864_v5, %v1900_v52  ;;  %9567 = vst [vmem:[#allocation44_spill] sm:$0xff] %v7710_v12  ;;  %v2598_v34 = vrot.slane %v2520_v32, %v7409_v25 }
 0x1ac   :  { %v1873_v53 = vsel %vm1746_vm4, %v1872_v45, %v1868_v61  ;;  %v1810_v57 = vsel %vm1746_vm4, %v1809_v63, %v1805_v49 }
 0x1ad   :  { %v1695_v9 = vpop.xlane.xlu1 %1694  ;;  %v1902_v0 = vsel %vm1893_vm10, %v1873_v53, %v1901_v4  ;;  %v1896_v62 = vsel %vm1895_vm11, %v1810_v57, %v1894_v36  ;;  %v7712_v53 = vpop.f32.mrf.mxu1  ;;  %v2675_v36 = vmul.f32 %v2598_v34, %v7603_v1 }
 0x1ae   :  { %v1877_v15 = vrot.slane %v1695_v9, %v7606_v48  ;;  %9568 = vst [vmem:[#allocation45_spill] sm:$0xff] %v7712_v53 }
 0x1af   :  { %v7716_v24 = vpop.f32.mrf.mxu1 }
 0x1b0   :  { %v1882_v9 = vsel %vm1746_vm4, %v1881_v60, %v1877_v15  ;;  %9569 = vst [vmem:[#allocation46_spill] sm:$0xff] %v7716_v24 }
 0x1b1   :  { %v1903_v38 = vsel %vm1895_vm11, %v1882_v9, %v1902_v0  ;;  %v7720_v3 = vpop.f32.mrf.mxu1  ;;  %v2512_v0 = vcombine.high %v2504_v39, %v2504_v39 }
 0x1b2   :  { %9570 = vst [vmem:[#allocation47_spill] sm:$0xff] %v7720_v3 }
 0x1b3   :  { %v7722_v9 = vpop.f32.mrf.mxu1 }
 0x1b4   :  { %9571 = vst [vmem:[#allocation48_spill] sm:$0xff] %v7722_v9 }
 0x1b5   :  { %v7724_v52 = vpop.f32.mrf.mxu1 }
 0x1b6   :  { %9572 = vst [vmem:[#allocation49_spill] sm:$0xff] %v7724_v52 }
 0x1b7   :  { %v7728_v4 = vpop.f32.mrf.mxu1 }
 0x1b8   :  { %9573 = vst [vmem:[#allocation50_spill] sm:$0xff] %v7728_v4 }
 0x1b9   :  { %v7731_v57 = vpop.f32.mrf.mxu1 }
 0x1ba   :  { %9574 = vst [vmem:[#allocation51_spill] sm:$0xff] %v7731_v57 }
 0x200   :  { %v6665_v56 = vpop.f32.mrf.mxu0 }
 0x201   :  { %v1986_v6 = vadd.f32 %v6665_v56, %v1903_v38  ;;  %v2534_v38 = vrot.slane %v2512_v0, %v7397_v19  ;;  %v7735_v56 = vpop.f32.mrf.mxu1 }
 0x202   :  { %v1980_v33 = vpop.f32.mrf.mxu0  ;;  %9575 = vst [vmem:[#allocation52_spill] sm:$0xff] %v7735_v56 }
 0x203   :  { %v1990_v40 = vmul.f32 0.17677669, %v1986_v6  ;;  %v1981_v42 = vadd.f32 %v1980_v33, %v1896_v62  ;;  %v2542_v6 = vcombine.high %v2520_v32, %v2520_v32  ;;  %v2602_v62 = vrot.slane %v2534_v38, %v7409_v25  ;;  %v7741_v33 = vpop.f32.mrf.mxu1 }
 0x204   :  { %9576 = vst [vmem:[#allocation53_spill] sm:$0xff] %v7741_v33 }
 0x205   :  { %v1989_v61 = vmul.f32 0.17677669, %v1981_v42  ;;  %v1995_v10 = vsel %vm1991_vm12, %v1990_v40, -inf  ;;  %v2561_v42 = vcombine.high %v2553_v29, %v2553_v29 }
 0x206   :  { %1996 = vmax.xlane.f32.xlu0 %v1995_v10  ;;  %v2606_v10 = vrot.slane %v2542_v6, %v7409_v25 }
 0x207   :  { %v1992_v11 = vsel %vm1991_vm12, %v1989_v61, -inf }
 0x208   :  { %1993 = vmax.xlane.f32.xlu1 %v1992_v11  ;;  %v2677_v11 = vmul.f32 %v2602_v62, %v7615_v31  ;;  %v2680_v6 = vmul.f32 %v7625_v47, %v2606_v10 }
 0x219   :  { %2368 = vrot.lane.b32.xlu1 %v7379_v13, %s6803_s1 }
 0x21d   :  { %2805 = vrot.lane.b32.xlu1 %v7390_v17, %s6802_s9 }
 0x28f   :  { %v1997_v21 = vpop.xlane.xlu0 %1996 }
 0x290   :  { %v1999_v15 = vsub.f32 %v1990_v40, %v1997_v21  ;;  %v2569_v40 = vrot.slane %v2553_v29, %v7397_v19  ;;  %v2707_v21 = vsel %vm1602_vm3, %v2675_v36, 0.0 }
 0x291   :  { %v1994_v63 = vpop.xlane.xlu1 %1993 }
 0x292   :  { %v2002_v7 = vmul.f32 1.442695, %v1999_v15  ;;  %v1998_v45 = vsub.f32 %v1989_v61, %v1994_v63  ;;  %v2676_v61 = vmul.f32 %v7598_v27, %v2598_v34  ;;  %v7748_v15 = vpop.f32.mrf.mxu1  ;;  %v2630_v63 = vrot.slane %v2569_v40, %v7409_v25 }
 0x293   :  { %9577 = vst [vmem:[#allocation54_spill] sm:$0xff] %v7748_v15  ;;  %v2544_v34 = vcombine.high %v2534_v38, %v2534_v38 }
 0x294   :  { %6769 = vpow2.f32 %v2002_v7  ;;  %v2000_v8 = vmul.f32 1.442695, %v1998_v45  ;;  %v2583_v7 = vrot.slane %v2561_v42, %v7397_v19  ;;  %v2679_v45 = vmul.f32 %v2606_v10, %v7642_v50  ;;  %v7758_v39 = vpop.f32.mrf.mxu1 }
 0x295   :  { %v2369_v49 = vpop.permute.xlu1 %2368  ;;  %9578 = vst [vmem:[#allocation55_spill] sm:$0xff] %v7758_v39  ;;  %v2691_v32 = vmul.f32 %v2630_v63, %v7741_v33  ;;  %v2692_v38 = vmul.f32 %v7735_v56, %v2630_v63 }
 0x296   :  { %6771 = vpow2.f32 %v2000_v8  ;;  %6666 = vmatprep.subr.mxu0 %v2369_v49  ;;  %v2710_v8 = vsel %vm1602_vm3, %v2676_v61, 0.0  ;;  %v2634_v0 = vrot.slane %v2583_v7, %v7409_v25  ;;  %v2719_v29 = vsel %vm1602_vm3, %v2679_v45, 0.0  ;;  %v7766_v42 = vpop.f32.mrf.mxu1 }
 0x297   :  { %6667 = vmatpush3.msra.mxu0 %v2369_v49  ;;  %v2678_v49 = vmul.f32 %v7608_v51, %v2602_v62  ;;  %9579 = vst [vmem:[#allocation56_spill] sm:$0xff] %v7766_v42  ;;  %v2722_v45 = vsel %vm1602_vm3, %v2680_v6, 0.0  ;;  %v2546_v6 = vcombine.high %v7390_v17, %v7390_v17 }
 0x298   :  { %v2693_v61 = vmul.f32 %v2634_v0, %v7758_v39  ;;  %v7773_v10 = vpop.f32.mrf.mxu1 }
 0x299   :  { %v2716_v36 = vsel %vm1602_vm3, %v2678_v49, 0.0  ;;  %9580 = vst [vmem:[#allocation57_spill] sm:$0xff] %v7773_v10 }
 0x29a   :  { %v7781_v63 = vpop.f32.mrf.mxu1 }
 0x29b   :  { %9581 = vst [vmem:[#allocation58_spill] sm:$0xff] %v7781_v63 }
 0x2a1   :  { %v7702_v58 = vpop.eup %6769 }
 0x2a2   :  { %v2007_v60 = vsel %vm1991_vm12, %v7702_v58, 0.0 }
 0x2a3   :  { %v7706_v5 = vpop.eup %6771  ;;  %2008 = vadd.xlane.f32.xlu0 %v2007_v60  ;;  %v2713_v60 = vsel %vm1602_vm3, %v2677_v11, 0.0  ;;  %v2591_v11 = vcombine.high %v2569_v40, %v2569_v40  ;;  %v2761_v40 = vsel %vm1602_vm3, %v2693_v61, 0.0 }
 0x2a4   :  { %v2004_v55 = vsel %vm1991_vm12, %v7706_v5, 0.0 }
 0x2a5   :  { %2005 = vadd.xlane.f32.xlu1 %v2004_v55  ;;  %v2497_v55 = vcombine.high %v7394_v18, %v7394_v18 }
 0x2a7   :  { %v2511_v62 = vrot.slane %v2497_v55, %v7397_v19 }
 0x2a9   :  { %v2527_v49 = vrot.slane %v2511_v62, %v7397_v19 }
 0x2b6   :  { %2803 = vrot.lane.b32.xlu1 %v7394_v18, %s6802_s9 }
 0x2b9   :  { %2366 = vrot.lane.b32.xlu0 %v7383_v14, %s6803_s1 }
 0x2d8   :  { %2708 = vadd.xlane.f32.xlu0 %v2707_v21  ;;  %v2610_v21 = vrot.slane %v2544_v34, %v7409_v25  ;;  %v2694_v34 = vmul.f32 %v7748_v15, %v2634_v0 }
 0x2da   :  { %2711 = vadd.xlane.f32.xlu1 %v2710_v8  ;;  %v2755_v8 = vsel %vm1602_vm3, %v2691_v32, 0.0  ;;  %v2681_v55 = vmul.f32 %v2610_v21, %v7684_v59  ;;  %v2758_v32 = vsel %vm1602_vm3, %v2692_v38, 0.0  ;;  %v2682_v61 = vmul.f32 %v7665_v54, %v2610_v21  ;;  %v7790_v38 = vpop.f32.mrf.mxu1 }
 0x2db   :  { %v2764_v0 = vsel %vm1602_vm3, %v2694_v34, 0.0  ;;  %9582 = vst [vmem:[#allocation59_spill] sm:$0xff] %v7790_v38 }
 0x2dc   :  { %2714 = vadd.xlane.f32.xlu0 %v2713_v60  ;;  %v2638_v60 = vrot.slane %v2591_v11, %v7409_v25  ;;  %v2728_v21 = vsel %vm1602_vm3, %v2682_v61, 0.0 }
 0x2de   :  { %2720 = vadd.xlane.f32.xlu1 %v2719_v29  ;;  %v2513_v29 = vcombine.high %v2511_v62, %v2511_v62  ;;  %v2695_v11 = vmul.f32 %v2638_v60, %v7773_v10  ;;  %v2560_v62 = vrot.slane %v2546_v6, %v7397_v19 }
 0x2e0   :  { %2717 = vadd.xlane.f32.xlu0 %v2716_v36  ;;  %v2614_v36 = vrot.slane %v2527_v49, %v7409_v25  ;;  %v2562_v13 = vcombine.high %v2560_v62, %v2560_v62 }
 0x2e2   :  { %2756 = vadd.xlane.f32.xlu1 %v2755_v8  ;;  %v2593_v8 = vcombine.high %v2583_v7, %v2583_v7  ;;  %v2767_v7 = vsel %vm1602_vm3, %v2695_v11, 0.0  ;;  %v2684_v11 = vmul.f32 %v7710_v12, %v2614_v36 }
 0x2e4   :  { %2723 = vadd.xlane.f32.xlu0 %v2722_v45  ;;  %v2725_v45 = vsel %vm1602_vm3, %v2681_v55, 0.0  ;;  %v2642_v14 = vrot.slane %v2593_v8, %v7409_v25  ;;  %v2696_v55 = vmul.f32 %v7766_v42, %v2638_v60 }
 0x2e6   :  { %2762 = vadd.xlane.f32.xlu1 %v2761_v40  ;;  %v2683_v40 = vmul.f32 %v2614_v36, %v7712_v53  ;;  %v2697_v6 = vmul.f32 %v2642_v14, %v7790_v38  ;;  %v2770_v8 = vsel %vm1602_vm3, %v2696_v55, 0.0  ;;  %v2698_v53 = vmul.f32 %v7781_v63, %v2642_v14 }
 0x2e7   :  { %v2590_v55 = vrot.slane %v2562_v13, %v7397_v19 }
 0x2e8   :  { %2759 = vadd.xlane.f32.xlu0 %v2758_v32  ;;  %v2541_v32 = vrot.slane %v2513_v29, %v7397_v19  ;;  %v2731_v29 = vsel %vm1602_vm3, %v2683_v40, 0.0  ;;  %v2773_v38 = vsel %vm1602_vm3, %v2697_v6, 0.0  ;;  %v2734_v40 = vsel %vm1602_vm3, %v2684_v11, 0.0 }
 0x2ea   :  { %2726 = vadd.xlane.f32.xlu1 %v2725_v45  ;;  %v7799_v45 = vpop.f32.mrf.mxu1  ;;  %v2618_v34 = vrot.slane %v2541_v32, %v7409_v25  ;;  %v2545_v11 = vcombine.high %v2541_v32, %v2541_v32 }
 0x2eb   :  { %9583 = vst [vmem:[#allocation60_spill] sm:$0xff] %v7799_v45 }
 0x2ec   :  { %2765 = vadd.xlane.f32.xlu0 %v2764_v0  ;;  %v2576_v0 = vrot.slane %v2560_v62, %v7397_v19  ;;  %v7807_v60 = vpop.f32.mrf.mxu1  ;;  %v2685_v61 = vmul.f32 %v2618_v34, %v7720_v3  ;;  %v2686_v62 = vmul.f32 %v7716_v24, %v2618_v34 }
 0x2ed   :  { %9584 = vst [vmem:[#allocation61_spill] sm:$0xff] %v7807_v60 }
 0x2ee   :  { %2768 = vadd.xlane.f32.xlu1 %v2767_v7  ;;  %v2543_v7 = vcombine.high %v2527_v49, %v2527_v49 }
 0x2f0   :  { %2729 = vadd.xlane.f32.xlu0 %v2728_v21  ;;  %v2646_v21 = vrot.slane %v2576_v0, %v7409_v25  ;;  %v2622_v49 = vrot.slane %v2543_v7, %v7409_v25 }
 0x2f2   :  { %2732 = vadd.xlane.f32.xlu1 %v2731_v29  ;;  %v7814_v29 = vpop.f32.mrf.mxu1  ;;  %v2699_v36 = vmul.f32 %v2646_v21, %v7807_v60  ;;  %v2687_v14 = vmul.f32 %v2622_v49, %v7724_v52  ;;  %v2700_v13 = vmul.f32 %v7799_v45, %v2646_v21  ;;  %v2688_v32 = vmul.f32 %v7722_v9, %v2622_v49 }
 0x2f3   :  { %9585 = vst [vmem:[#allocation62_spill] sm:$0xff] %v7814_v29 }
 0x2f4   :  { %2771 = vadd.xlane.f32.xlu0 %v2770_v8  ;;  %v2737_v8 = vsel %vm1602_vm3, %v2685_v61, 0.0  ;;  %v7822_v6 = vpop.f32.mrf.mxu1  ;;  %v2779_v7 = vsel %vm1602_vm3, %v2699_v36, 0.0  ;;  %v2740_v61 = vsel %vm1602_vm3, %v2686_v62, 0.0  ;;  %v2743_v60 = vsel %vm1602_vm3, %v2687_v14, 0.0 }
 0x2f5   :  { %9586 = vst [vmem:[#allocation63_spill] sm:$0xff] %v7822_v6  ;;  %v2782_v36 = vsel %vm1602_vm3, %v2700_v13, 0.0  ;;  %v2746_v14 = vsel %vm1602_vm3, %v2688_v32, 0.0 }
 0x2f6   :  { %2774 = vadd.xlane.f32.xlu1 %v2773_v38  ;;  %v2776_v38 = vsel %vm1602_vm3, %v2698_v53, 0.0  ;;  %v2626_v53 = vrot.slane %v2545_v11, %v7409_v25 }
 0x2f8   :  { %2735 = vadd.xlane.f32.xlu0 %v2734_v40  ;;  %v2650_v40 = vrot.slane %v2590_v55, %v7409_v25  ;;  %v2689_v21 = vmul.f32 %v2626_v53, %v7731_v57 }
 0x2fa   :  { %2738 = vadd.xlane.f32.xlu1 %v2737_v8  ;;  %v7829_v8 = vpop.f32.mrf.mxu1  ;;  %v2701_v34 = vmul.f32 %v2650_v40, %v7822_v6 }
 0x2fb   :  { %9587 = vst [vmem:[#allocation64_spill] sm:$0xff] %v7829_v8 }
 0x2fc   :  { %2777 = vadd.xlane.f32.xlu0 %v2776_v38  ;;  %v2592_v38 = vcombine.high %v2576_v0, %v2576_v0  ;;  %v2785_v11 = vsel %vm1602_vm3, %v2701_v34, 0.0  ;;  %v2702_v0 = vmul.f32 %v7814_v29, %v2650_v40 }
 0x2fe   :  { %2780 = vadd.xlane.f32.xlu1 %v2779_v7  ;;  %v7836_v7 = vpop.f32.mrf.mxu1  ;;  %v2654_v62 = vrot.slane %v2592_v38, %v7409_v25  ;;  %v2690_v38 = vmul.f32 %v7728_v4, %v2626_v53 }
 0x2ff   :  { %9588 = vst [vmem:[#allocation65_spill] sm:$0xff] %v7836_v7 }
 0x300   :  { %2741 = vadd.xlane.f32.xlu0 %v2740_v61  ;;  %v2594_v61 = vcombine.high %v2590_v55, %v2590_v55  ;;  %v2703_v49 = vmul.f32 %v2654_v62, %v7836_v7  ;;  %v2788_v55 = vsel %vm1602_vm3, %v2702_v0, 0.0 }
 0x302   :  { %2744 = vadd.xlane.f32.xlu1 %v2743_v60  ;;  %v7843_v60 = vpop.f32.mrf.mxu1  ;;  %v2658_v13 = vrot.slane %v2594_v61, %v7409_v25  ;;  %v2791_v32 = vsel %vm1602_vm3, %v2703_v49, 0.0 }
 0x303   :  { %9589 = vst [vmem:[#allocation66_spill] sm:$0xff] %v7843_v60 }
 0x304   :  { %2783 = vadd.xlane.f32.xlu0 %v2782_v36  ;;  %v2749_v36 = vsel %vm1602_vm3, %v2689_v21, 0.0  ;;  %v7850_v34 = vpop.f32.mrf.mxu1  ;;  %v2706_v53 = vmul.f32 %v7843_v60, %v2658_v13 }
 0x305   :  { %9590 = vst [vmem:[#allocation67_spill] sm:$0xff] %v7850_v34  ;;  %v2705_v40 = vmul.f32 %v2658_v13, %v7850_v34 }
 0x306   :  { %2786 = vadd.xlane.f32.xlu1 %v2785_v11  ;;  %v2704_v11 = vmul.f32 %v7829_v8, %v2654_v62  ;;  %v2800_v0 = vsel %vm1602_vm3, %v2706_v53, 0.0 }
 0x307   :  { %v2797_v21 = vsel %vm1602_vm3, %v2705_v40, 0.0 }
 0x308   :  { %2747 = vadd.xlane.f32.xlu0 %v2746_v14  ;;  %v2752_v14 = vsel %vm1602_vm3, %v2690_v38, 0.0  ;;  %v2794_v61 = vsel %vm1602_vm3, %v2704_v11, 0.0 }
 0x30a   :  { %2750 = vadd.xlane.f32.xlu1 %v2749_v36  ;;  %v2806_v36 = vpop.permute.xlu1 %2805 }
 0x30c   :  { %2789 = vadd.xlane.f32.xlu0 %v2788_v55 }
 0x30e   :  { %2792 = vadd.xlane.f32.xlu1 %v2791_v32 }
 0x310   :  { %2753 = vadd.xlane.f32.xlu0 %v2752_v14 }
 0x312   :  { %2798 = vadd.xlane.f32.xlu1 %v2797_v21 }
 0x314   :  { %2795 = vadd.xlane.f32.xlu0 %v2794_v61 }
 0x318   :  { %2801 = vadd.xlane.f32.xlu0 %v2800_v0 }
 0x32c   :  { %v2009_v55 = vpop.xlane.xlu0 %2008 }
 0x32d   :  { %6773 = vrcp.f32 %v2009_v55 }
 0x32e   :  { %v2006_v49 = vpop.xlane.xlu1 %2005 }
 0x32f   :  { %6775 = vrcp.f32 %v2006_v49 }
 0x330   :  { %v2367_v62 = vpop.permute.xlu0 %2366 }
 0x331   :  { %6668 = vmatprep.subr.mxu0 %v2367_v62 }
 0x332   :  { %6669 = vmatpush3.msra.mxu0 %v2367_v62  ;;  %v2804_v11 = vpop.permute.xlu1 %2803 }
 0x333   :  { %6673 = vmatprep.subr.msk.mxu0 %vm1602_vm3, %v2806_v36 }
 0x33a   :  { %v6774_v38 = vpop.eup %6773 }
 0x33b   :  { %v7865_v32 = vmul.f32 %v6774_v38, %v7702_v58 }
 0x33c   :  { %v6776_v40 = vpop.eup %6775 }
 0x33d   :  { %v7862_v13 = vmul.f32 %v6776_v40, %v7706_v5 }
 0x33f   :  { %6670 = vmatprep.mubr.msk.f32.mxu0 %vm1991_vm12, %v7862_v13 }
 0x340   :  { %6671 = vmatmul.mubr.msk.f32.vlgmr.msra.gmra.mxu0 %vm1991_vm12, %v7865_v32 }
 0x341   :  { %6674 = vmatpush3.xpose.msk.msra.mxu0 %vm1602_vm3, %v2806_v36  ;;  %6677 = vmatprep.mubr.msk.f32.mxu0 %vm1602_vm3, %v7394_v18 }
 0x342   :  { %6675 = vmatprep.subr.msk.mxu0 %vm1602_vm3, %v2804_v11 }
 0x345   :  { %6676 = vmatpush3.xpose.msk.msra.mxu0 %vm1602_vm3, %v2804_v11 }
 0x348   :  { %6678 = vmatmul.mubr.msk.f32.vlgmr.msra.gmra.mxu0 %vm1602_vm3, %v7390_v17 }
 0x361   :  { %v2709_v58 = vpop.xlane.xlu0 %2708 }
 0x362   :  { %v2842_v15 = vrot.slane %v2709_v58, %v7606_v48 }
 0x363   :  { %v2712_v21 = vpop.xlane.xlu1 %2711 }
 0x364   :  { %v2846_v42 = vrot.slane %v2712_v21, %v7611_v2 }
 0x365   :  { %v2715_v5 = vpop.xlane.xlu0 %2714 }
 0x366   :  { %v2851_v10 = vrot.slane %v2715_v5, %v7606_v48 }
 0x367   :  { %v2721_v61 = vpop.xlane.xlu1 %2720 }
 0x368   :  { %v2860_v39 = vrot.slane %v2721_v61, %v7606_v48 }
 0x369   :  { %v2718_v14 = vpop.xlane.xlu0 %2717 }
 0x36a   :  { %v2855_v12 = vrot.slane %v2718_v14, %v7611_v2  ;;  %v2847_v14 = vsel %vm1746_vm4, %v2846_v42, %v2842_v15 }
 0x36b   :  { %v2757_v55 = vpop.xlane.xlu1 %2756 }
 0x36c   :  { %v2856_v33 = vsel %vm1746_vm4, %v2855_v12, %v2851_v10  ;;  %v2914_v21 = vrot.slane %v2757_v55, %v7606_v48 }
 0x36d   :  { %v2724_v53 = vpop.xlane.xlu0 %2723  ;;  %v2983_v61 = vsel %vm1883_vm5, %v2856_v33, %v2847_v14 }
 0x36e   :  { %v2864_v54 = vrot.slane %v2724_v53, %v7611_v2 }
 0x36f   :  { %v2763_v36 = vpop.xlane.xlu1 %2762 }
 0x370   :  { %v2923_v47 = vrot.slane %v2763_v36, %v7606_v48  ;;  %v2865_v53 = vsel %vm1746_vm4, %v2864_v54, %v2860_v39 }
 0x371   :  { %v2760_v0 = vpop.xlane.xlu0 %2759  ;;  %v2984_v42 = vsel %vm1885_vm6, %v2865_v53, %v2983_v61 }
 0x372   :  { %v2918_v50 = vrot.slane %v2760_v0, %v7611_v2 }
 0x373   :  { %v2727_v38 = vpop.xlane.xlu1 %2726 }
 0x374   :  { %v2919_v12 = vsel %vm1746_vm4, %v2918_v50, %v2914_v21  ;;  %v2869_v10 = vrot.slane %v2727_v38, %v7606_v48 }
 0x375   :  { %v2766_v49 = vpop.xlane.xlu0 %2765 }
 0x376   :  { %v2927_v59 = vrot.slane %v2766_v49, %v7611_v2 }
 0x377   :  { %v2769_v34 = vpop.xlane.xlu1 %2768 }
 0x378   :  { %v2928_v49 = vsel %vm1746_vm4, %v2927_v59, %v2923_v47  ;;  %v2932_v0 = vrot.slane %v2769_v34, %v7606_v48 }
 0x379   :  { %v2730_v62 = vpop.xlane.xlu0 %2729  ;;  %v2990_v54 = vsel %vm1883_vm5, %v2928_v49, %v2919_v12 }
 0x37a   :  { %v2873_v58 = vrot.slane %v2730_v62, %v7611_v2 }
 0x37b   :  { %v7880_v11 = vpop.xlane.xlu1 %2732 }
 0x37c   :  { %v2874_v39 = vsel %vm1746_vm4, %v2873_v58, %v2869_v10  ;;  %v2878_v34 = vrot.slane %v7880_v11, %v7606_v48 }
 0x37d   :  { %v2772_v40 = vpop.xlane.xlu0 %2771  ;;  %v2985_v12 = vsel %vm1887_vm7, %v2874_v39, %v2984_v42 }
 0x37e   :  { %v2936_v51 = vrot.slane %v2772_v40, %v7611_v2 }
 0x37f   :  { %v2775_v8 = vpop.xlane.xlu1 %2774 }
 0x380   :  { %v2937_v55 = vsel %vm1746_vm4, %v2936_v51, %v2932_v0  ;;  %v2941_v33 = vrot.slane %v2775_v8, %v7606_v48 }
 0x381   :  { %v7878_v60 = vpop.xlane.xlu0 %2735  ;;  %v2991_v40 = vsel %vm1885_vm6, %v2937_v55, %v2990_v54 }
 0x383   :  { %v7884_v4 = vpop.xlane.xlu1 %2738 }
 0x385   :  { %v2778_v7 = vpop.xlane.xlu0 %2777 }
 0x386   :  { %v2945_v15 = vrot.slane %v2778_v7, %v7611_v2  ;;  %v2882_v7 = vrot.slane %v7878_v60, %v7611_v2 }
 0x387   :  { %v2781_v6 = vpop.xlane.xlu1 %2780 }
 0x388   :  { %v2950_v36 = vrot.slane %v2781_v6, %v7606_v48  ;;  %v2946_v38 = vsel %vm1746_vm4, %v2945_v15, %v2941_v33  ;;  %v2883_v53 = vsel %vm1746_vm4, %v2882_v7, %v2878_v34 }
 0x389   :  { %v7882_v57 = vpop.xlane.xlu0 %2741  ;;  %v2992_v49 = vsel %vm1887_vm7, %v2946_v38, %v2991_v40  ;;  %v7974_v38 = vpop.f32.mrf.mxu1 }
 0x38a   :  { %v2891_v51 = vrot.slane %v7882_v57, %v7611_v2  ;;  %9593 = vst [vmem:[#allocation70_spill] sm:$0xff] %v7974_v38 }
 0x38b   :  { %v7888_v9 = vpop.xlane.xlu1 %2744  ;;  %v7976_v40 = vpop.f32.mrf.mxu1 }
 0x38c   :  { %9594 = vst [vmem:[#allocation71_spill] sm:$0xff] %v7976_v40 }
 0x38d   :  { %v2784_v29 = vpop.xlane.xlu0 %2783 }
 0x38e   :  { %v2954_v47 = vrot.slane %v2784_v29, %v7611_v2 }
 0x38f   :  { %v2787_v63 = vpop.xlane.xlu1 %2786 }
 0x390   :  { %v2959_v8 = vrot.slane %v2787_v63, %v7606_v48  ;;  %v2955_v11 = vsel %vm1746_vm4, %v2954_v47, %v2950_v36  ;;  %v2986_v47 = vsel %vm1889_vm8, %v2883_v53, %v2985_v12 }
 0x391   :  { %v7886_v45 = vpop.xlane.xlu0 %2747 }
 0x392   :  { %v2900_v60 = vrot.slane %v7886_v45, %v7611_v2  ;;  %v2896_v45 = vrot.slane %v7888_v9, %v7606_v48 }
 0x393   :  { %v7892_v3 = vpop.xlane.xlu1 %2750 }
 0x394   :  { %v2901_v15 = vsel %vm1746_vm4, %v2900_v60, %v2896_v45 }
 0x395   :  { %v2790_v24 = vpop.xlane.xlu0 %2789 }
 0x396   :  { %v2963_v50 = vrot.slane %v2790_v24, %v7611_v2 }
 0x397   :  { %v2793_v5 = vpop.xlane.xlu1 %2792 }
 0x398   :  { %v2968_v6 = vrot.slane %v2793_v5, %v7606_v48  ;;  %v2964_v57 = vsel %vm1746_vm4, %v2963_v50, %v2959_v8 }
 0x399   :  { %v7890_v52 = vpop.xlane.xlu0 %2753 }
 0x39a   :  { %v2909_v63 = vrot.slane %v7890_v52, %v7611_v2  ;;  %v2993_v52 = vsel %vm1889_vm8, %v2955_v11, %v2992_v49 }
 0x39b   :  { %v2799_v62 = vpop.xlane.xlu1 %2798  ;;  %v2994_v0 = vsel %vm1891_vm9, %v2964_v57, %v2993_v52  ;;  %v7978_v57 = vpop.f32.mrf.mxu1 }
 0x39c   :  { %v2977_v21 = vrot.slane %v2799_v62, %v7606_v48  ;;  %9595 = vst [vmem:[#allocation72_spill] sm:$0xff] %v7978_v57 }
 0x39d   :  { %v2796_v56 = vpop.xlane.xlu0 %2795 }
 0x39e   :  { %v2972_v29 = vrot.slane %v2796_v56, %v7611_v2  ;;  %v2887_v56 = vrot.slane %v7884_v4, %v7606_v48  ;;  %v2905_v4 = vrot.slane %v7892_v3, %v7606_v48 }
 0x3a0   :  { %v2973_v5 = vsel %vm1746_vm4, %v2972_v29, %v2968_v6  ;;  %v2892_v58 = vsel %vm1746_vm4, %v2891_v51, %v2887_v56  ;;  %v2910_v54 = vsel %vm1746_vm4, %v2909_v63, %v2905_v4  ;;  %v7980_v63 = vpop.f32.mrf.mxu1 }
 0x3a1   :  { %v2802_v59 = vpop.xlane.xlu0 %2801  ;;  %v2995_v9 = vsel %vm1893_vm10, %v2973_v5, %v2994_v0  ;;  %v2987_v55 = vsel %vm1891_vm9, %v2892_v58, %v2986_v47  ;;  %9596 = vst [vmem:[#allocation73_spill] sm:$0xff] %v7980_v63 }
 0x3a2   :  { %v2981_v24 = vrot.slane %v2802_v59, %v7611_v2  ;;  %v2988_v42 = vsel %vm1893_vm10, %v2901_v15, %v2987_v55 }
 0x3a3   :  { %v2989_v39 = vsel %vm1895_vm11, %v2910_v54, %v2988_v42 }
 0x3a4   :  { %v2982_v61 = vsel %vm1746_vm4, %v2981_v24, %v2977_v21  ;;  %v7982_v21 = vpop.f32.mrf.mxu1 }
 0x3a5   :  { %v2996_v3 = vsel %vm1895_vm11, %v2982_v61, %v2995_v9  ;;  %9597 = vst [vmem:[#allocation74_spill] sm:$0xff] %v7982_v21 }
 0x3a6   :  { %v7986_v49 = vpop.f32.mrf.mxu1 }
 0x3a7   :  { %9598 = vst [vmem:[#allocation75_spill] sm:$0xff] %v7986_v49 }
 0x3a8   :  { %v7994_v4 = vpop.f32.mrf.mxu1 }
 0x3a9   :  { %9599 = vst [vmem:[#allocation76_spill] sm:$0xff] %v7994_v4 }
 0x3aa   :  { %v7996_v61 = vpop.f32.mrf.mxu1 }
 0x3ab   :  { %9600 = vst [vmem:[#allocation77_spill] sm:$0xff] %v7996_v61 }
 0x3ac   :  { %v7998_v52 = vpop.f32.mrf.mxu1 }
 0x3ad   :  { %9601 = vst [vmem:[#allocation78_spill] sm:$0xff] %v7998_v52 }
 0x3ae   :  { %v8000_v12 = vpop.f32.mrf.mxu1 }
 0x3af   :  { %9602 = vst [vmem:[#allocation79_spill] sm:$0xff] %v8000_v12 }
 0x3b0   :  { %v8002_v0 = vpop.f32.mrf.mxu1 }
 0x3b1   :  { %9603 = vst [vmem:[#allocation80_spill] sm:$0xff] %v8002_v0 }
 0x3b2   :  { %v8008_v15 = vpop.f32.mrf.mxu1 }
 0x3b3   :  { %9604 = vst [vmem:[#allocation81_spill] sm:$0xff] %v8008_v15 }
 0x3b4   :  { %v8010_v9 = vpop.f32.mrf.mxu1 }
 0x3b5   :  { %9605 = vst [vmem:[#allocation82_spill] sm:$0xff] %v8010_v9 }
 0x3b6   :  { %v8012_v54 = vpop.f32.mrf.mxu1 }
 0x3b7   :  { %9606 = vst [vmem:[#allocation83_spill] sm:$0xff] %v8012_v54 }
 0x3b8   :  { %v8014_v47 = vpop.f32.mrf.mxu1 }
 0x3b9   :  { %9607 = vst [vmem:[#allocation84_spill] sm:$0xff] %v8014_v47 }
 0x400   :  { %v7938_v14 = vpop.f32.mrf.mxu0 }
 0x401   :  { %9591 = vst [vmem:[#allocation68_spill] sm:$0xff] %v7938_v14 }
 0x402   :  { %v7957_v10 = vpop.f32.mrf.mxu0 }
 0x403   :  { %9592 = vst [vmem:[#allocation69_spill] sm:$0xff] %v7957_v10 }
 0x408   :  { %v6679_v59 = vpop.f32.mrf.mxu0 }
 0x409   :  { %v3079_v33 = vadd.f32 %v6679_v59, %v2996_v3  ;;  %v3596_v3 = vrot.slane %v7403_v22, %v7397_v19  ;;  %v8018_v59 = vpop.f32.mrf.mxu1 }
 0x40a   :  { %v3073_v50 = vpop.f32.mrf.mxu0  ;;  %9608 = vst [vmem:[#allocation85_spill] sm:$0xff] %v8018_v59 }
 0x40b   :  { %v3083_v34 = vmul.f32 0.17677669, %v3079_v33  ;;  %v3074_v7 = vadd.f32 %v3073_v50, %v2989_v39  ;;  %v3612_v55 = vrot.slane %v3596_v3, %v7397_v19  ;;  %v3604_v33 = vcombine.high %v3596_v3, %v3596_v3  ;;  %v8021_v42 = vpop.f32.mrf.mxu1 }
 0x40c   :  { %9609 = vst [vmem:[#allocation86_spill] sm:$0xff] %v8021_v42 }
 0x40d   :  { %v3082_v36 = vmul.f32 0.17677669, %v3074_v7  ;;  %v3087_v62 = vsel %vm1991_vm12, %v3083_v34, -inf  ;;  %v3690_v39 = vrot.slane %v3612_v55, %v7409_v25  ;;  %v3626_v50 = vrot.slane %v3604_v33, %v7397_v19 }
 0x40e   :  { %3088 = vmax.xlane.f32.xlu0 %v3087_v62  ;;  %v3645_v7 = vrot.slane %v7399_v20, %v7397_v19 }
 0x40f   :  { %v3084_v29 = vsel %vm1991_vm12, %v3082_v36, -inf  ;;  %v3767_v62 = vmul.f32 %v3690_v39, %v7976_v40 }
 0x410   :  { %3085 = vmax.xlane.f32.xlu1 %v3084_v29  ;;  %v3694_v29 = vrot.slane %v3626_v50, %v7409_v25 }
 0x421   :  { %3460 = vrot.lane.b32.xlu1 %v7390_v17, %s6803_s1 }
 0x425   :  { %3897 = vrot.lane.b32.xlu1 %v7399_v20, %s6802_s9 }
 0x497   :  { %v3089_v51 = vpop.xlane.xlu0 %3088 }
 0x498   :  { %v3091_v8 = vsub.f32 %v3083_v34, %v3089_v51  ;;  %v3634_v34 = vcombine.high %v3612_v55, %v3612_v55  ;;  %v3768_v51 = vmul.f32 %v7974_v38, %v3690_v39  ;;  %v3770_v39 = vmul.f32 %v7978_v57, %v3694_v29 }
 0x499   :  { %v3086_v24 = vpop.xlane.xlu1 %3085 }
 0x49a   :  { %v3094_v11 = vmul.f32 1.442695, %v3091_v8  ;;  %v3090_v60 = vsub.f32 %v3082_v36, %v3086_v24  ;;  %v8027_v36 = vpop.f32.mrf.mxu1  ;;  %v3698_v8 = vrot.slane %v3634_v34, %v7409_v25  ;;  %v3661_v24 = vrot.slane %v3645_v7, %v7397_v19 }
 0x49b   :  { %9610 = vst [vmem:[#allocation87_spill] sm:$0xff] %v8027_v36  ;;  %v3802_v55 = vsel %vm1602_vm3, %v3768_v51, 0.0 }
 0x49c   :  { %6777 = vpow2.f32 %v3094_v11  ;;  %v3092_v6 = vmul.f32 1.442695, %v3090_v60  ;;  %v3653_v11 = vcombine.high %v3645_v7, %v3645_v7  ;;  %v8034_v60 = vpop.f32.mrf.mxu1  ;;  %v3589_v7 = vcombine.high %v7403_v22, %v7403_v22 }
 0x49d   :  { %v3461_v56 = vpop.permute.xlu1 %3460  ;;  %9611 = vst [vmem:[#allocation88_spill] sm:$0xff] %v8034_v60  ;;  %v3772_v51 = vmul.f32 %v7982_v21, %v3698_v8 }
 0x49e   :  { %6779 = vpow2.f32 %v3092_v6  ;;  %6680 = vmatprep.subr.mxu0 %v3461_v56  ;;  %v3769_v6 = vmul.f32 %v3694_v29, %v7980_v63  ;;  %v3675_v3 = vrot.slane %v3653_v11, %v7397_v19  ;;  %v8042_v33 = vpop.f32.mrf.mxu1  ;;  %v3808_v29 = vsel %vm1602_vm3, %v3770_v39, 0.0 }
 0x49f   :  { %6681 = vmatpush3.msra.mxu0 %v3461_v56  ;;  %v3799_v56 = vsel %vm1602_vm3, %v3767_v62, 0.0  ;;  %9612 = vst [vmem:[#allocation89_spill] sm:$0xff] %v8042_v33  ;;  %v3636_v62 = vcombine.high %v3626_v50, %v3626_v50 }
 0x4a0   :  { %v3805_v34 = vsel %vm1602_vm3, %v3769_v6, 0.0  ;;  %v8051_v17 = vpop.f32.mrf.mxu1  ;;  %v3603_v6 = vrot.slane %v3589_v7, %v7397_v19 }
 0x4a1   :  { %9613 = vst [vmem:[#allocation90_spill] sm:$0xff] %v8051_v17 }
 0x4a2   :  { %v8059_v14 = vpop.f32.mrf.mxu1 }
 0x4a3   :  { %9614 = vst [vmem:[#allocation91_spill] sm:$0xff] %v8059_v14 }
 0x4a9   :  { %v7984_v53 = vpop.eup %6777 }
 0x4aa   :  { %v3099_v45 = vsel %vm1991_vm12, %v7984_v53, 0.0 }
 0x4ab   :  { %v7990_v5 = vpop.eup %6779  ;;  %3100 = vadd.xlane.f32.xlu0 %v3099_v45  ;;  %v3771_v45 = vmul.f32 %v3698_v8, %v7986_v49  ;;  %v3619_v8 = vrot.slane %v3603_v6, %v7397_v19 }
 0x4ac   :  { %v3096_v58 = vsel %vm1991_vm12, %v7990_v5, 0.0 }
 0x4ad   :  { %3097 = vadd.xlane.f32.xlu1 %v3096_v58  ;;  %v3722_v58 = vrot.slane %v3661_v24, %v7409_v25  ;;  %v3811_v11 = vsel %vm1602_vm3, %v3771_v45, 0.0 }
 0x4af   :  { %v3784_v45 = vmul.f32 %v8021_v42, %v3722_v58 }
 0x4be   :  { %3895 = vrot.lane.b32.xlu1 %v7403_v22, %s6802_s9 }
 0x4c1   :  { %3458 = vrot.lane.b32.xlu0 %v7394_v18, %s6803_s1  ;;  %v3726_v18 = vrot.slane %v3675_v3, %v7409_v25 }
 0x4c3   :  { %v3785_v50 = vmul.f32 %v3726_v18, %v8042_v33  ;;  %v3638_v33 = vcombine.high %v7399_v20, %v7399_v20 }
 0x4e0   :  { %3800 = vadd.xlane.f32.xlu0 %v3799_v56  ;;  %v3783_v56 = vmul.f32 %v3722_v58, %v8027_v36  ;;  %v3706_v58 = vrot.slane %v3619_v8, %v7409_v25 }
 0x4e2   :  { %3803 = vadd.xlane.f32.xlu1 %v3802_v55  ;;  %v3702_v55 = vrot.slane %v3636_v62, %v7409_v25  ;;  %v3847_v36 = vsel %vm1602_vm3, %v3783_v56, 0.0  ;;  %v3853_v62 = vsel %vm1602_vm3, %v3785_v50, 0.0  ;;  %v3605_v56 = vcombine.high %v3603_v6, %v3603_v6 }
 0x4e3   :  { %v3775_v6 = vmul.f32 %v3706_v58, %v8000_v12 }
 0x4e4   :  { %3806 = vadd.xlane.f32.xlu0 %v3805_v34  ;;  %v3683_v34 = vcombine.high %v3661_v24, %v3661_v24  ;;  %v3773_v39 = vmul.f32 %v3702_v55, %v7996_v61  ;;  %v3786_v24 = vmul.f32 %v8034_v60, %v3726_v18 }
 0x4e6   :  { %3812 = vadd.xlane.f32.xlu1 %v3811_v11  ;;  %v3814_v11 = vsel %vm1602_vm3, %v3772_v51, 0.0  ;;  %v3730_v7 = vrot.slane %v3683_v34, %v7409_v25  ;;  %v3817_v34 = vsel %vm1602_vm3, %v3773_v39, 0.0  ;;  %v3856_v18 = vsel %vm1602_vm3, %v3786_v24, 0.0 }
 0x4e8   :  { %3809 = vadd.xlane.f32.xlu0 %v3808_v29  ;;  %v8067_v29 = vpop.f32.mrf.mxu1  ;;  %v3787_v51 = vmul.f32 %v3730_v7, %v8059_v14  ;;  %v3788_v39 = vmul.f32 %v8051_v17, %v3730_v7 }
 0x4e9   :  { %9615 = vst [vmem:[#allocation92_spill] sm:$0xff] %v8067_v29 }
 0x4ea   :  { %3848 = vadd.xlane.f32.xlu1 %v3847_v36  ;;  %v3850_v36 = vsel %vm1602_vm3, %v3784_v45, 0.0  ;;  %v8076_v50 = vpop.f32.mrf.mxu1  ;;  %v3633_v45 = vrot.slane %v3605_v56, %v7397_v19  ;;  %v3859_v14 = vsel %vm1602_vm3, %v3787_v51, 0.0  ;;  %v3635_v51 = vcombine.high %v3619_v8, %v3619_v8 }
 0x4eb   :  { %9616 = vst [vmem:[#allocation93_spill] sm:$0xff] %v8076_v50 }
 0x4ec   :  { %3815 = vadd.xlane.f32.xlu0 %v3814_v11  ;;  %v3685_v11 = vcombine.high %v3675_v3, %v3675_v3  ;;  %v3652_v3 = vrot.slane %v3638_v33, %v7397_v19  ;;  %v8085_v60 = vpop.f32.mrf.mxu1  ;;  %v3710_v24 = vrot.slane %v3633_v45, %v7409_v25  ;;  %v3776_v33 = vmul.f32 %v7998_v52, %v3706_v58 }
 0x4ed   :  { %9617 = vst [vmem:[#allocation94_spill] sm:$0xff] %v8085_v60  ;;  %v3714_v58 = vrot.slane %v3635_v51, %v7409_v25 }
 0x4ee   :  { %3854 = vadd.xlane.f32.xlu1 %v3853_v62  ;;  %v3774_v62 = vmul.f32 %v7994_v4, %v3702_v55  ;;  %v3777_v7 = vmul.f32 %v3710_v24, %v8008_v15  ;;  %v3654_v17 = vcombine.high %v3652_v3, %v3652_v3 }
 0x4f0   :  { %3851 = vadd.xlane.f32.xlu0 %v3850_v36  ;;  %v3734_v36 = vrot.slane %v3685_v11, %v7409_v25  ;;  %v3820_v55 = vsel %vm1602_vm3, %v3774_v62, 0.0  ;;  %v3823_v11 = vsel %vm1602_vm3, %v3775_v6, 0.0  ;;  %v3682_v15 = vrot.slane %v3654_v17, %v7397_v19 }
 0x4f2   :  { %3818 = vadd.xlane.f32.xlu1 %v3817_v34  ;;  %v3789_v56 = vmul.f32 %v3734_v36, %v8076_v50  ;;  %v3668_v34 = vrot.slane %v3652_v3, %v7397_v19  ;;  %v3790_v6 = vmul.f32 %v8067_v29, %v3734_v36  ;;  %v3779_v36 = vmul.f32 %v3714_v58, %v8012_v54 }
 0x4f3   :  { %v3637_v3 = vcombine.high %v3633_v45, %v3633_v45  ;;  %v3780_v45 = vmul.f32 %v8010_v9, %v3714_v58 }
 0x4f4   :  { %3857 = vadd.xlane.f32.xlu0 %v3856_v18  ;;  %v8093_v18 = vpop.f32.mrf.mxu1  ;;  %v3738_v62 = vrot.slane %v3668_v34, %v7409_v25 }
 0x4f5   :  { %9618 = vst [vmem:[#allocation95_spill] sm:$0xff] %v8093_v18  ;;  %v3718_v17 = vrot.slane %v3637_v3, %v7409_v25 }
 0x4f6   :  { %3860 = vadd.xlane.f32.xlu1 %v3859_v14  ;;  %v3862_v14 = vsel %vm1602_vm3, %v3788_v39, 0.0  ;;  %v8100_v50 = vpop.f32.mrf.mxu1  ;;  %v3791_v39 = vmul.f32 %v3738_v62, %v8093_v18 }
 0x4f7   :  { %9619 = vst [vmem:[#allocation96_spill] sm:$0xff] %v8100_v50 }
 0x4f8   :  { %3821 = vadd.xlane.f32.xlu0 %v3820_v55  ;;  %v3865_v55 = vsel %vm1602_vm3, %v3789_v56, 0.0  ;;  %v8107_v8 = vpop.f32.mrf.mxu1  ;;  %v3778_v56 = vmul.f32 %v8002_v0, %v3710_v24 }
 0x4f9   :  { %9620 = vst [vmem:[#allocation97_spill] sm:$0xff] %v8107_v8 }
 0x4fa   :  { %3824 = vadd.xlane.f32.xlu1 %v3823_v11  ;;  %v3826_v11 = vsel %vm1602_vm3, %v3776_v33, 0.0  ;;  %v3871_v33 = vsel %vm1602_vm3, %v3791_v39, 0.0  ;;  %v8114_v51 = vpop.f32.mrf.mxu1  ;;  %v3684_v39 = vcombine.high %v3668_v34, %v3668_v34 }
 0x4fb   :  { %9621 = vst [vmem:[#allocation98_spill] sm:$0xff] %v8114_v51 }
 0x4fc   :  { %3863 = vadd.xlane.f32.xlu0 %v3862_v14  ;;  %v3829_v14 = vsel %vm1602_vm3, %v3777_v7, 0.0  ;;  %v3792_v7 = vmul.f32 %v8085_v60, %v3738_v62  ;;  %v3781_v62 = vmul.f32 %v3718_v17, %v8018_v59 }
 0x4fe   :  { %3866 = vadd.xlane.f32.xlu1 %v3865_v55  ;;  %v3868_v55 = vsel %vm1602_vm3, %v3790_v6, 0.0  ;;  %v3835_v6 = vsel %vm1602_vm3, %v3779_v36, 0.0  ;;  %v3746_v36 = vrot.slane %v3684_v39, %v7409_v25  ;;  %v3841_v58 = vsel %vm1602_vm3, %v3781_v62, 0.0 }
 0x500   :  { %3827 = vadd.xlane.f32.xlu0 %v3826_v11  ;;  %v3742_v11 = vrot.slane %v3682_v15, %v7409_v25 }
 0x502   :  { %3830 = vadd.xlane.f32.xlu1 %v3829_v14  ;;  %v3832_v14 = vsel %vm1602_vm3, %v3778_v56, 0.0  ;;  %v3793_v24 = vmul.f32 %v3742_v11, %v8107_v8  ;;  %v3794_v3 = vmul.f32 %v8100_v50, %v3742_v11  ;;  %v3686_v8 = vcombine.high %v3682_v15, %v3682_v15 }
 0x504   :  { %3869 = vadd.xlane.f32.xlu0 %v3868_v55  ;;  %v8122_v55 = vpop.f32.mrf.mxu1  ;;  %v3877_v56 = vsel %vm1602_vm3, %v3793_v24, 0.0  ;;  %v3782_v24 = vmul.f32 %v8014_v47, %v3718_v17 }
 0x505   :  { %9622 = vst [vmem:[#allocation99_spill] sm:$0xff] %v8122_v55  ;;  %v3795_v34 = vmul.f32 %v3746_v36, %v8122_v55 }
 0x506   :  { %3872 = vadd.xlane.f32.xlu1 %v3871_v33  ;;  %v3874_v33 = vsel %vm1602_vm3, %v3792_v7, 0.0  ;;  %v3844_v39 = vsel %vm1602_vm3, %v3782_v24, 0.0 }
 0x507   :  { %v3883_v15 = vsel %vm1602_vm3, %v3795_v34, 0.0 }
 0x508   :  { %3833 = vadd.xlane.f32.xlu0 %v3832_v14  ;;  %v8128_v14 = vpop.f32.mrf.mxu1 }
 0x509   :  { %9623 = vst [vmem:[#allocation100_spill] sm:$0xff] %v8128_v14 }
 0x50a   :  { %3836 = vadd.xlane.f32.xlu1 %v3835_v6  ;;  %v3838_v6 = vsel %vm1602_vm3, %v3780_v45, 0.0  ;;  %v8135_v7 = vpop.f32.mrf.mxu1  ;;  %v3796_v45 = vmul.f32 %v8114_v51, %v3746_v36 }
 0x50b   :  { %9624 = vst [vmem:[#allocation101_spill] sm:$0xff] %v8135_v7 }
 0x50c   :  { %3875 = vadd.xlane.f32.xlu0 %v3874_v33  ;;  %v3750_v33 = vrot.slane %v3686_v8, %v7409_v25  ;;  %v3886_v8 = vsel %vm1602_vm3, %v3796_v45, 0.0 }
 0x50e   :  { %3878 = vadd.xlane.f32.xlu1 %v3877_v56  ;;  %v3880_v56 = vsel %vm1602_vm3, %v3794_v3, 0.0  ;;  %v3797_v11 = vmul.f32 %v3750_v33, %v8135_v7  ;;  %v3798_v17 = vmul.f32 %v8128_v14, %v3750_v33 }
 0x510   :  { %3839 = vadd.xlane.f32.xlu0 %v3838_v6  ;;  %v3889_v62 = vsel %vm1602_vm3, %v3797_v11, 0.0  ;;  %v3892_v3 = vsel %vm1602_vm3, %v3798_v17, 0.0  ;;  %v3898_v6 = vpop.permute.xlu1 %3897 }
 0x512   :  { %3842 = vadd.xlane.f32.xlu1 %v3841_v58 }
 0x514   :  { %3881 = vadd.xlane.f32.xlu0 %v3880_v56 }
 0x516   :  { %3884 = vadd.xlane.f32.xlu1 %v3883_v15 }
 0x518   :  { %3845 = vadd.xlane.f32.xlu0 %v3844_v39 }
 0x51a   :  { %3890 = vadd.xlane.f32.xlu1 %v3889_v62 }
 0x51c   :  { %3887 = vadd.xlane.f32.xlu0 %v3886_v8 }
 0x520   :  { %3893 = vadd.xlane.f32.xlu0 %v3892_v3 }
 0x534   :  { %v3101_v58 = vpop.xlane.xlu0 %3100 }
 0x535   :  { %6781 = vrcp.f32 %v3101_v58 }
 0x536   :  { %v3098_v34 = vpop.xlane.xlu1 %3097 }
 0x537   :  { %6783 = vrcp.f32 %v3098_v34 }
 0x538   :  { %v3459_v36 = vpop.permute.xlu0 %3458 }
 0x539   :  { %6682 = vmatprep.subr.mxu0 %v3459_v36 }
 0x53a   :  { %6683 = vmatpush3.msra.mxu0 %v3459_v36  ;;  %v3896_v15 = vpop.permute.xlu1 %3895 }
 0x53b   :  { %6687 = vmatprep.subr.msk.mxu0 %vm1602_vm3, %v3898_v6 }
 0x542   :  { %v6782_v24 = vpop.eup %6781 }
 0x543   :  { %v8153_v11 = vmul.f32 %v6782_v24, %v7984_v53 }
 0x544   :  { %v6784_v56 = vpop.eup %6783 }
 0x545   :  { %v8150_v33 = vmul.f32 %v6784_v56, %v7990_v5 }
 0x547   :  { %6684 = vmatprep.mubr.msk.f32.mxu0 %vm1991_vm12, %v8150_v33 }
 0x548   :  { %6685 = vmatmul.mubr.msk.f32.vlgmr.msra.gmra.mxu0 %vm1991_vm12, %v8153_v11 }
 0x549   :  { %6688 = vmatpush3.xpose.msk.msra.mxu0 %vm1602_vm3, %v3898_v6  ;;  %6691 = vmatprep.mubr.msk.f32.mxu0 %vm1602_vm3, %v7403_v22 }
 0x54a   :  { %6689 = vmatprep.subr.msk.mxu0 %vm1602_vm3, %v3896_v15 }
 0x54d   :  { %6690 = vmatpush3.xpose.msk.msra.mxu0 %vm1602_vm3, %v3896_v15 }
 0x550   :  { %6692 = vmatmul.mubr.msk.f32.vlgmr.msra.gmra.mxu0 %vm1602_vm3, %v7399_v20 }
 0x569   :  { %v3801_v53 = vpop.xlane.xlu0 %3800 }
 0x56a   :  { %v3934_v21 = vrot.slane %v3801_v53, %v7606_v48 }
 0x56b   :  { %v3804_v39 = vpop.xlane.xlu1 %3803 }
 0x56c   :  { %v3938_v12 = vrot.slane %v3804_v39, %v7611_v2 }
 0x56d   :  { %v3807_v5 = vpop.xlane.xlu0 %3806 }
 0x56e   :  { %v3943_v42 = vrot.slane %v3807_v5, %v7606_v48 }
 0x56f   :  { %v3813_v17 = vpop.xlane.xlu1 %3812 }
 0x570   :  { %v3952_v57 = vrot.slane %v3813_v17, %v7606_v48 }
 0x571   :  { %v3810_v45 = vpop.xlane.xlu0 %3809 }
 0x572   :  { %v3947_v52 = vrot.slane %v3810_v45, %v7611_v2  ;;  %v3939_v45 = vsel %vm1746_vm4, %v3938_v12, %v3934_v21 }
 0x573   :  { %v3849_v3 = vpop.xlane.xlu1 %3848 }
 0x574   :  { %v3948_v63 = vsel %vm1746_vm4, %v3947_v52, %v3943_v42  ;;  %v4006_v39 = vrot.slane %v3849_v3, %v7606_v48 }
 0x575   :  { %v3816_v62 = vpop.xlane.xlu0 %3815  ;;  %v4075_v17 = vsel %vm1883_vm5, %v3948_v63, %v3939_v45 }
 0x576   :  { %v3956_v4 = vrot.slane %v3816_v62, %v7611_v2 }
 0x577   :  { %v3855_v6 = vpop.xlane.xlu1 %3854 }
 0x578   :  { %v4015_v10 = vrot.slane %v3855_v6, %v7606_v48  ;;  %v3957_v62 = vsel %vm1746_vm4, %v3956_v4, %v3952_v57 }
 0x579   :  { %v3852_v8 = vpop.xlane.xlu0 %3851  ;;  %v4076_v12 = vsel %vm1885_vm6, %v3957_v62, %v4075_v17 }
 0x57a   :  { %v4010_v40 = vrot.slane %v3852_v8, %v7611_v2 }
 0x57b   :  { %v3819_v36 = vpop.xlane.xlu1 %3818 }
 0x57c   :  { %v4011_v52 = vsel %vm1746_vm4, %v4010_v40, %v4006_v39  ;;  %v3961_v42 = vrot.slane %v3819_v36, %v7606_v48 }
 0x57d   :  { %v3858_v58 = vpop.xlane.xlu0 %3857 }
 0x57e   :  { %v4019_v61 = vrot.slane %v3858_v58, %v7611_v2 }
 0x57f   :  { %v3861_v56 = vpop.xlane.xlu1 %3860 }
 0x580   :  { %v4020_v58 = vsel %vm1746_vm4, %v4019_v61, %v4015_v10  ;;  %v4024_v8 = vrot.slane %v3861_v56, %v7606_v48 }
 0x581   :  { %v3822_v34 = vpop.xlane.xlu0 %3821  ;;  %v4082_v57 = vsel %vm1883_vm5, %v4020_v58, %v4011_v52 }
 0x582   :  { %v3965_v53 = vrot.slane %v3822_v34, %v7611_v2 }
 0x583   :  { %v8168_v15 = vpop.xlane.xlu1 %3824 }
 0x584   :  { %v3966_v61 = vsel %vm1746_vm4, %v3965_v53, %v3961_v42  ;;  %v3970_v6 = vrot.slane %v8168_v15, %v7606_v48 }
 0x585   :  { %v3864_v24 = vpop.xlane.xlu0 %3863  ;;  %v4077_v52 = vsel %vm1887_vm7, %v3966_v61, %v4076_v12 }
 0x586   :  { %v4028_v38 = vrot.slane %v3864_v24, %v7611_v2 }
 0x587   :  { %v3867_v55 = vpop.xlane.xlu1 %3866 }
 0x588   :  { %v4029_v3 = vsel %vm1746_vm4, %v4028_v38, %v4024_v8  ;;  %v4033_v63 = vrot.slane %v3867_v55, %v7606_v48 }
 0x589   :  { %v8166_v7 = vpop.xlane.xlu0 %3827  ;;  %v4083_v56 = vsel %vm1885_vm6, %v4029_v3, %v4082_v57 }
 0x58b   :  { %v8172_v59 = vpop.xlane.xlu1 %3830 }
 0x58d   :  { %v3870_v14 = vpop.xlane.xlu0 %3869 }
 0x58e   :  { %v4037_v21 = vrot.slane %v3870_v14, %v7611_v2  ;;  %v3974_v14 = vrot.slane %v8166_v7, %v7611_v2 }
 0x58f   :  { %v3873_v50 = vpop.xlane.xlu1 %3872 }
 0x590   :  { %v4042_v34 = vrot.slane %v3873_v50, %v7606_v48  ;;  %v4038_v24 = vsel %vm1746_vm4, %v4037_v21, %v4033_v63  ;;  %v3975_v62 = vsel %vm1746_vm4, %v3974_v14, %v3970_v6 }
 0x591   :  { %v8170_v51 = vpop.xlane.xlu0 %3833  ;;  %v4084_v58 = vsel %vm1887_vm7, %v4038_v24, %v4083_v56  ;;  %v8262_v24 = vpop.f32.mrf.mxu1 }
 0x592   :  { %v3983_v38 = vrot.slane %v8170_v51, %v7611_v2  ;;  %9627 = vst [vmem:[#allocation104_spill] sm:$0xff] %v8262_v24 }
 0x593   :  { %v8176_v9 = vpop.xlane.xlu1 %3836  ;;  %v8264_v56 = vpop.f32.mrf.mxu1 }
 0x594   :  { %9628 = vst [vmem:[#allocation105_spill] sm:$0xff] %v8264_v56 }
 0x595   :  { %v3876_v47 = vpop.xlane.xlu0 %3875 }
 0x596   :  { %v4046_v10 = vrot.slane %v3876_v47, %v7611_v2 }
 0x597   :  { %v3879_v18 = vpop.xlane.xlu1 %3878 }
 0x598   :  { %v4051_v55 = vrot.slane %v3879_v18, %v7606_v48  ;;  %v4047_v15 = vsel %vm1746_vm4, %v4046_v10, %v4042_v34  ;;  %v4078_v10 = vsel %vm1889_vm8, %v3975_v62, %v4077_v52 }
 0x599   :  { %v8174_v54 = vpop.xlane.xlu0 %3839 }
 0x59a   :  { %v3992_v7 = vrot.slane %v8174_v54, %v7611_v2  ;;  %v3988_v54 = vrot.slane %v8176_v9, %v7606_v48 }
 0x59b   :  { %v8180_v0 = vpop.xlane.xlu1 %3842 }
 0x59c   :  { %v3993_v21 = vsel %vm1746_vm4, %v3992_v7, %v3988_v54 }
 0x59d   :  { %v3882_v60 = vpop.xlane.xlu0 %3881 }
 0x59e   :  { %v4055_v40 = vrot.slane %v3882_v60, %v7611_v2 }
 0x59f   :  { %v3885_v5 = vpop.xlane.xlu1 %3884 }
 0x5a0   :  { %v4060_v50 = vrot.slane %v3885_v5, %v7606_v48  ;;  %v4056_v51 = vsel %vm1746_vm4, %v4055_v40, %v4051_v55 }
 0x5a1   :  { %v8178_v29 = vpop.xlane.xlu0 %3845 }
 0x5a2   :  { %v4001_v18 = vrot.slane %v8178_v29, %v7611_v2  ;;  %v4085_v29 = vsel %vm1889_vm8, %v4047_v15, %v4084_v58 }
 0x5a3   :  { %v3891_v36 = vpop.xlane.xlu1 %3890  ;;  %v4086_v8 = vsel %vm1891_vm9, %v4056_v51, %v4085_v29  ;;  %v8266_v51 = vpop.f32.mrf.mxu1 }
 0x5a4   :  { %v4069_v39 = vrot.slane %v3891_v36, %v7606_v48  ;;  %9629 = vst [vmem:[#allocation106_spill] sm:$0xff] %v8266_v51 }
 0x5a5   :  { %v3888_v49 = vpop.xlane.xlu0 %3887 }
 0x5a6   :  { %v4064_v47 = vrot.slane %v3888_v49, %v7611_v2  ;;  %v3979_v49 = vrot.slane %v8172_v59, %v7606_v48  ;;  %v3997_v59 = vrot.slane %v8180_v0, %v7606_v48 }
 0x5a8   :  { %v4065_v5 = vsel %vm1746_vm4, %v4064_v47, %v4060_v50  ;;  %v3984_v53 = vsel %vm1746_vm4, %v3983_v38, %v3979_v49  ;;  %v4002_v57 = vsel %vm1746_vm4, %v4001_v18, %v3997_v59  ;;  %v8268_v18 = vpop.f32.mrf.mxu1 }
 0x5a9   :  { %v3894_v4 = vpop.xlane.xlu0 %3893  ;;  %v4087_v9 = vsel %vm1893_vm10, %v4065_v5, %v4086_v8  ;;  %v4079_v3 = vsel %vm1891_vm9, %v3984_v53, %v4078_v10  ;;  %9630 = vst [vmem:[#allocation107_spill] sm:$0xff] %v8268_v18 }
 0x5aa   :  { %v4073_v60 = vrot.slane %v3894_v4, %v7611_v2  ;;  %v4080_v12 = vsel %vm1893_vm10, %v3993_v21, %v4079_v3 }
 0x5ab   :  { %v4081_v61 = vsel %vm1895_vm11, %v4002_v57, %v4080_v12 }
 0x5ac   :  { %v4074_v17 = vsel %vm1746_vm4, %v4073_v60, %v4069_v39  ;;  %v8270_v39 = vpop.f32.mrf.mxu1 }
 0x5ad   :  { %v4088_v0 = vsel %vm1895_vm11, %v4074_v17, %v4087_v9  ;;  %9631 = vst [vmem:[#allocation108_spill] sm:$0xff] %v8270_v39 }
 0x5ae   :  { %v8274_v58 = vpop.f32.mrf.mxu1 }
 0x5af   :  { %9632 = vst [vmem:[#allocation109_spill] sm:$0xff] %v8274_v58 }
 0x5b0   :  { %v8282_v59 = vpop.f32.mrf.mxu1 }
 0x5b1   :  { %9633 = vst [vmem:[#allocation110_spill] sm:$0xff] %v8282_v59 }
 0x5b2   :  { %v8284_v17 = vpop.f32.mrf.mxu1 }
 0x5b3   :  { %9634 = vst [vmem:[#allocation111_spill] sm:$0xff] %v8284_v17 }
 0x5b4   :  { %v8286_v29 = vpop.f32.mrf.mxu1 }
 0x5b5   :  { %9635 = vst [vmem:[#allocation112_spill] sm:$0xff] %v8286_v29 }
 0x5b6   :  { %v8288_v52 = vpop.f32.mrf.mxu1 }
 0x5b7   :  { %9636 = vst [vmem:[#allocation113_spill] sm:$0xff] %v8288_v52 }
 0x5b8   :  { %v8290_v8 = vpop.f32.mrf.mxu1 }
 0x5b9   :  { %9637 = vst [vmem:[#allocation114_spill] sm:$0xff] %v8290_v8 }
 0x5ba   :  { %v8296_v21 = vpop.f32.mrf.mxu1 }
 0x5bb   :  { %9638 = vst [vmem:[#allocation115_spill] sm:$0xff] %v8296_v21 }
 0x5bc   :  { %v8298_v9 = vpop.f32.mrf.mxu1 }
 0x5bd   :  { %9639 = vst [vmem:[#allocation116_spill] sm:$0xff] %v8298_v9 }
 0x5be   :  { %v8300_v57 = vpop.f32.mrf.mxu1 }
 0x5bf   :  { %9640 = vst [vmem:[#allocation117_spill] sm:$0xff] %v8300_v57 }
 0x5c0   :  { %v8302_v10 = vpop.f32.mrf.mxu1 }
 0x5c1   :  { %9641 = vst [vmem:[#allocation118_spill] sm:$0xff] %v8302_v10 }
 0x608   :  { %v8226_v45 = vpop.f32.mrf.mxu0 }
 0x609   :  { %9625 = vst [vmem:[#allocation102_spill] sm:$0xff] %v8226_v45 }
 0x60a   :  { %v8245_v42 = vpop.f32.mrf.mxu0 }
 0x60b   :  { %9626 = vst [vmem:[#allocation103_spill] sm:$0xff] %v8245_v42 }
 0x610   :  { %v6693_v4 = vpop.f32.mrf.mxu0 }
 0x611   :  { %v4171_v63 = vadd.f32 %v6693_v4, %v4088_v0  ;;  %v4688_v0 = vrot.slane %v7411_v26, %v7397_v19  ;;  %v8306_v4 = vpop.f32.mrf.mxu1 }
 0x612   :  { %v4165_v40 = vpop.f32.mrf.mxu0  ;;  %9642 = vst [vmem:[#allocation119_spill] sm:$0xff] %v8306_v4 }
 0x613   :  { %v4175_v6 = vmul.f32 0.17677669, %v4171_v63  ;;  %v4166_v14 = vadd.f32 %v4165_v40, %v4081_v61  ;;  %v4704_v3 = vrot.slane %v4688_v0, %v7397_v19  ;;  %v4696_v63 = vcombine.high %v4688_v0, %v4688_v0  ;;  %v8309_v12 = vpop.f32.mrf.mxu1 }
 0x614   :  { %9643 = vst [vmem:[#allocation120_spill] sm:$0xff] %v8309_v12 }
 0x615   :  { %v4174_v34 = vmul.f32 0.17677669, %v4166_v14  ;;  %v4179_v36 = vsel %vm1991_vm12, %v4175_v6, -inf  ;;  %v4782_v61 = vrot.slane %v4704_v3, %v7409_v25  ;;  %v4718_v40 = vrot.slane %v4696_v63, %v7397_v19  ;;  %v8313_v14 = vpop.f32.mrf.mxu1 }
 0x616   :  { %4180 = vmax.xlane.f32.xlu0 %v4179_v36  ;;  %9644 = vst [vmem:[#allocation121_spill] sm:$0xff] %v8313_v14  ;;  %v4737_v36 = vrot.slane %v7405_v23, %v7397_v19 }
 0x617   :  { %v4176_v47 = vsel %vm1991_vm12, %v4174_v34, -inf }
 0x618   :  { %4177 = vmax.xlane.f32.xlu1 %v4176_v47  ;;  %v4860_v47 = vmul.f32 %v8262_v24, %v4782_v61 }
 0x629   :  { %4552 = vrot.lane.b32.xlu1 %v7399_v20, %s6803_s1 }
 0x62d   :  { %4989 = vrot.lane.b32.xlu1 %v7405_v23, %s6802_s9 }
 0x69f   :  { %v4181_v38 = vpop.xlane.xlu0 %4180 }
 0x6a0   :  { %v4183_v55 = vsub.f32 %v4175_v6, %v4181_v38  ;;  %v4726_v6 = vcombine.high %v4704_v3, %v4704_v3  ;;  %v4786_v38 = vrot.slane %v4718_v40, %v7409_v25 }
 0x6a1   :  { %v4178_v60 = vpop.xlane.xlu1 %4177 }
 0x6a2   :  { %v4186_v15 = vmul.f32 1.442695, %v4183_v55  ;;  %v4182_v7 = vsub.f32 %v4174_v34, %v4178_v60  ;;  %v4859_v34 = vmul.f32 %v4782_v61, %v8264_v56  ;;  %v4790_v55 = vrot.slane %v4726_v6, %v7409_v25  ;;  %v8321_v60 = vpop.f32.mrf.mxu1 }
 0x6a3   :  { %9645 = vst [vmem:[#allocation122_spill] sm:$0xff] %v8321_v60  ;;  %v4862_v3 = vmul.f32 %v8266_v51, %v4786_v38 }
 0x6a4   :  { %6785 = vpow2.f32 %v4186_v15  ;;  %v4184_v50 = vmul.f32 1.442695, %v4182_v7  ;;  %v4861_v15 = vmul.f32 %v4786_v38, %v8268_v18  ;;  %v4753_v7 = vrot.slane %v4737_v36, %v7397_v19  ;;  %v8328_v0 = vpop.f32.mrf.mxu1 }
 0x6a5   :  { %v4553_v49 = vpop.permute.xlu1 %4552  ;;  %9646 = vst [vmem:[#allocation123_spill] sm:$0xff] %v8328_v0  ;;  %v4728_v38 = vcombine.high %v4718_v40, %v4718_v40 }
 0x6a6   :  { %6787 = vpow2.f32 %v4184_v50  ;;  %6694 = vmatprep.subr.mxu0 %v4553_v49  ;;  %v4745_v50 = vcombine.high %v4737_v36, %v4737_v36  ;;  %v4814_v63 = vrot.slane %v4753_v7, %v7409_v25  ;;  %v4897_v6 = vsel %vm1602_vm3, %v4861_v15, 0.0 }
 0x6a7   :  { %6695 = vmatpush3.msra.mxu0 %v4553_v49  ;;  %v4891_v49 = vsel %vm1602_vm3, %v4859_v34, 0.0  ;;  %v4794_v24 = vrot.slane %v4728_v38, %v7409_v25 }
 0x6a8   :  { %v4767_v61 = vrot.slane %v4745_v50, %v7397_v19  ;;  %v4875_v36 = vmul.f32 %v4814_v63, %v8313_v14  ;;  %v4900_v50 = vsel %vm1602_vm3, %v4862_v3, 0.0 }
 0x6a9   :  { %v4865_v3 = vmul.f32 %v4794_v24, %v8284_v17  ;;  %v4866_v17 = vmul.f32 %v8282_v59, %v4794_v24 }
 0x6aa   :  { %v4818_v20 = vrot.slane %v4767_v61, %v7409_v25 }
 0x6ac   :  { %v4877_v15 = vmul.f32 %v4818_v20, %v8328_v0 }
 0x6b1   :  { %v8272_v62 = vpop.eup %6785 }
 0x6b2   :  { %v4191_v54 = vsel %vm1991_vm12, %v8272_v62, 0.0 }
 0x6b3   :  { %v8278_v5 = vpop.eup %6787  ;;  %4192 = vadd.xlane.f32.xlu0 %v4191_v54  ;;  %v4863_v54 = vmul.f32 %v4790_v55, %v8274_v58 }
 0x6b4   :  { %v4188_v53 = vsel %vm1991_vm12, %v8278_v5, 0.0 }
 0x6b5   :  { %4189 = vadd.xlane.f32.xlu1 %v4188_v53  ;;  %v4894_v53 = vsel %vm1602_vm3, %v4860_v47, 0.0  ;;  %v4903_v34 = vsel %vm1602_vm3, %v4863_v54, 0.0  ;;  %v8338_v47 = vpop.f32.mrf.mxu1 }
 0x6b6   :  { %9647 = vst [vmem:[#allocation124_spill] sm:$0xff] %v8338_v47 }
 0x6c6   :  { %4987 = vrot.lane.b32.xlu1 %v7411_v26, %s6802_s9 }
 0x6c9   :  { %4550 = vrot.lane.b32.xlu0 %v7403_v22, %s6803_s1  ;;  %v8346_v22 = vpop.f32.mrf.mxu1 }
 0x6ca   :  { %9648 = vst [vmem:[#allocation125_spill] sm:$0xff] %v8346_v22 }
 0x6e8   :  { %4892 = vadd.xlane.f32.xlu0 %v4891_v49  ;;  %v4681_v49 = vcombine.high %v7411_v26, %v7411_v26 }
 0x6ea   :  { %4895 = vadd.xlane.f32.xlu1 %v4894_v53  ;;  %v4864_v53 = vmul.f32 %v8270_v39, %v4790_v55  ;;  %v4695_v54 = vrot.slane %v4681_v49, %v7397_v19  ;;  %v4775_v55 = vcombine.high %v4753_v7, %v4753_v7  ;;  %v4878_v49 = vmul.f32 %v8321_v60, %v4818_v20 }
 0x6eb   :  { %v4730_v20 = vcombine.high %v7405_v23, %v7405_v23 }
 0x6ec   :  { %4898 = vadd.xlane.f32.xlu0 %v4897_v6  ;;  %v4939_v6 = vsel %vm1602_vm3, %v4875_v36, 0.0  ;;  %v4906_v40 = vsel %vm1602_vm3, %v4864_v53, 0.0  ;;  %v4711_v56 = vrot.slane %v4695_v54, %v7397_v19  ;;  %v8354_v36 = vpop.f32.mrf.mxu1 }
 0x6ed   :  { %9649 = vst [vmem:[#allocation126_spill] sm:$0xff] %v8354_v36 }
 0x6ee   :  { %4904 = vadd.xlane.f32.xlu1 %v4903_v34  ;;  %v4876_v34 = vmul.f32 %v8309_v12, %v4814_v63  ;;  %v4909_v63 = vsel %vm1602_vm3, %v4865_v3, 0.0  ;;  %v4798_v53 = vrot.slane %v4711_v56, %v7409_v25 }
 0x6f0   :  { %4901 = vadd.xlane.f32.xlu0 %v4900_v50  ;;  %v4945_v50 = vsel %vm1602_vm3, %v4877_v15, 0.0  ;;  %v4942_v38 = vsel %vm1602_vm3, %v4876_v34, 0.0  ;;  %v8362_v15 = vpop.f32.mrf.mxu1  ;;  %v4867_v34 = vmul.f32 %v4798_v53, %v8288_v52 }
 0x6f1   :  { %9650 = vst [vmem:[#allocation127_spill] sm:$0xff] %v8362_v15 }
 0x6f2   :  { %4940 = vadd.xlane.f32.xlu1 %v4939_v6  ;;  %v4822_v6 = vrot.slane %v4775_v55, %v7409_v25  ;;  %v4948_v55 = vsel %vm1602_vm3, %v4878_v49, 0.0  ;;  %v8371_v39 = vpop.f32.mrf.mxu1 }
 0x6f3   :  { %9651 = vst [vmem:[#allocation128_spill] sm:$0xff] %v8371_v39 }
 0x6f4   :  { %4907 = vadd.xlane.f32.xlu0 %v4906_v40  ;;  %v4879_v7 = vmul.f32 %v4822_v6, %v8346_v22  ;;  %v4697_v40 = vcombine.high %v4695_v54, %v4695_v54  ;;  %v4880_v54 = vmul.f32 %v8338_v47, %v4822_v6  ;;  %v8379_v52 = vpop.f32.mrf.mxu1 }
 0x6f5   :  { %9652 = vst [vmem:[#allocation129_spill] sm:$0xff] %v8379_v52 }
 0x6f6   :  { %4946 = vadd.xlane.f32.xlu1 %v4945_v50  ;;  %v4777_v50 = vcombine.high %v4767_v61, %v4767_v61  ;;  %v4725_v3 = vrot.slane %v4697_v40, %v7397_v19  ;;  %v4744_v61 = vrot.slane %v4730_v20, %v7397_v19 }
 0x6f8   :  { %4943 = vadd.xlane.f32.xlu0 %v4942_v38  ;;  %v4951_v38 = vsel %vm1602_vm3, %v4879_v7, 0.0  ;;  %v4826_v24 = vrot.slane %v4777_v50, %v7409_v25  ;;  %v4868_v7 = vmul.f32 %v8286_v29, %v4798_v53  ;;  %v4802_v40 = vrot.slane %v4725_v3, %v7409_v25 }
 0x6f9   :  { %v4760_v6 = vrot.slane %v4744_v61, %v7397_v19  ;;  %v4954_v50 = vsel %vm1602_vm3, %v4880_v54, 0.0  ;;  %v4746_v53 = vcombine.high %v4744_v61, %v4744_v61 }
 0x6fa   :  { %4910 = vadd.xlane.f32.xlu1 %v4909_v63  ;;  %v4912_v63 = vsel %vm1602_vm3, %v4866_v17, 0.0  ;;  %v4881_v49 = vmul.f32 %v4826_v24, %v8362_v15  ;;  %v4869_v20 = vmul.f32 %v4802_v40, %v8296_v21  ;;  %v4918_v29 = vsel %vm1602_vm3, %v4868_v7, 0.0 }
 0x6fc   :  { %4949 = vadd.xlane.f32.xlu0 %v4948_v55  ;;  %v4915_v55 = vsel %vm1602_vm3, %v4867_v34, 0.0  ;;  %v4957_v17 = vsel %vm1602_vm3, %v4881_v49, 0.0  ;;  %v4882_v34 = vmul.f32 %v8354_v36, %v4826_v24  ;;  %v4921_v54 = vsel %vm1602_vm3, %v4869_v20, 0.0 }
 0x6fd   :  { %v4729_v20 = vcombine.high %v4725_v3, %v4725_v3 }
 0x6fe   :  { %4952 = vadd.xlane.f32.xlu1 %v4951_v38  ;;  %v4727_v38 = vcombine.high %v4711_v56, %v4711_v56  ;;  %v4870_v56 = vmul.f32 %v8290_v8, %v4802_v40  ;;  %v4960_v24 = vsel %vm1602_vm3, %v4882_v34, 0.0 }
 0x700   :  { %4913 = vadd.xlane.f32.xlu0 %v4912_v63  ;;  %v8387_v63 = vpop.f32.mrf.mxu1  ;;  %v4806_v49 = vrot.slane %v4727_v38, %v7409_v25  ;;  %v4924_v40 = vsel %vm1602_vm3, %v4870_v56, 0.0 }
 0x701   :  { %9653 = vst [vmem:[#allocation130_spill] sm:$0xff] %v8387_v63 }
 0x702   :  { %4916 = vadd.xlane.f32.xlu1 %v4915_v55  ;;  %v4830_v55 = vrot.slane %v4760_v6, %v7409_v25  ;;  %v4871_v61 = vmul.f32 %v4806_v49, %v8300_v57 }
 0x704   :  { %4955 = vadd.xlane.f32.xlu0 %v4954_v50  ;;  %v4883_v59 = vmul.f32 %v4830_v55, %v8379_v52  ;;  %v8394_v50 = vpop.f32.mrf.mxu1  ;;  %v4884_v21 = vmul.f32 %v8371_v39, %v4830_v55  ;;  %v4927_v38 = vsel %vm1602_vm3, %v4871_v61, 0.0 }
 0x705   :  { %9654 = vst [vmem:[#allocation131_spill] sm:$0xff] %v8394_v50 }
 0x706   :  { %4958 = vadd.xlane.f32.xlu1 %v4957_v17  ;;  %v4774_v17 = vrot.slane %v4746_v53, %v7397_v19  ;;  %v8402_v7 = vpop.f32.mrf.mxu1  ;;  %v4810_v53 = vrot.slane %v4729_v20, %v7409_v25  ;;  %v4966_v3 = vsel %vm1602_vm3, %v4884_v21, 0.0 }
 0x707   :  { %9655 = vst [vmem:[#allocation132_spill] sm:$0xff] %v8402_v7 }
 0x708   :  { %4919 = vadd.xlane.f32.xlu0 %v4918_v29  ;;  %v4963_v29 = vsel %vm1602_vm3, %v4883_v59, 0.0  ;;  %v8409_v34 = vpop.f32.mrf.mxu1  ;;  %v4872_v59 = vmul.f32 %v8298_v9, %v4806_v49  ;;  %v4873_v55 = vmul.f32 %v4810_v53, %v8306_v4 }
 0x709   :  { %9656 = vst [vmem:[#allocation133_spill] sm:$0xff] %v8409_v34 }
 0x70a   :  { %4922 = vadd.xlane.f32.xlu1 %v4921_v54  ;;  %v4834_v54 = vrot.slane %v4774_v17, %v7409_v25  ;;  %v4930_v49 = vsel %vm1602_vm3, %v4872_v59, 0.0  ;;  %v4933_v21 = vsel %vm1602_vm3, %v4873_v55, 0.0 }
 0x70c   :  { %4961 = vadd.xlane.f32.xlu0 %v4960_v24  ;;  %v4885_v19 = vmul.f32 %v4834_v54, %v8394_v50  ;;  %v4776_v24 = vcombine.high %v4760_v6, %v4760_v6  ;;  %v4886_v61 = vmul.f32 %v8387_v63, %v4834_v54 }
 0x70e   :  { %4964 = vadd.xlane.f32.xlu1 %v4963_v29  ;;  %v4969_v56 = vsel %vm1602_vm3, %v4885_v19, 0.0  ;;  %v8416_v29 = vpop.f32.mrf.mxu1  ;;  %v4874_v19 = vmul.f32 %v8302_v10, %v4810_v53 }
 0x70f   :  { %9657 = vst [vmem:[#allocation134_spill] sm:$0xff] %v8416_v29 }
 0x710   :  { %4925 = vadd.xlane.f32.xlu0 %v4924_v40  ;;  %v4838_v40 = vrot.slane %v4776_v24, %v7409_v25  ;;  %v8423_v20 = vpop.f32.mrf.mxu1  ;;  %v4936_v24 = vsel %vm1602_vm3, %v4874_v19, 0.0 }
 0x711   :  { %9658 = vst [vmem:[#allocation135_spill] sm:$0xff] %v8423_v20 }
 0x712   :  { %4928 = vadd.xlane.f32.xlu1 %v4927_v38  ;;  %v4778_v38 = vcombine.high %v4774_v17, %v4774_v17  ;;  %v4887_v6 = vmul.f32 %v4838_v40, %v8409_v34  ;;  %v4888_v59 = vmul.f32 %v8402_v7, %v4838_v40  ;;  %v2017_v40 = vrot.slane %v7862_v13, %v7409_v25 }
 0x714   :  { %4967 = vadd.xlane.f32.xlu0 %v4966_v3  ;;  %v4842_v3 = vrot.slane %v4778_v38, %v7409_v25  ;;  %v4975_v17 = vsel %vm1602_vm3, %v4887_v6, 0.0  ;;  %v4978_v38 = vsel %vm1602_vm3, %v4888_v59, 0.0  ;;  %v8441_v6 = vsub.s32 1, %v7386_v16 }
 0x715   :  { %v2105_v59 = vrot.slane %v7865_v32, %v7409_v25 }
 0x716   :  { %4970 = vadd.xlane.f32.xlu1 %v4969_v56  ;;  %v4972_v56 = vsel %vm1602_vm3, %v4886_v61, 0.0  ;;  %v4889_v54 = vmul.f32 %v4842_v3, %v8423_v20  ;;  %v4890_v53 = vmul.f32 %v8416_v29, %v4842_v3  ;;  %v2028_v19 = vrot.slane %v7862_v13, %v8441_v6 }
 0x718   :  { %4931 = vadd.xlane.f32.xlu0 %v4930_v49  ;;  %v4981_v55 = vsel %vm1602_vm3, %v4889_v54, 0.0  ;;  %v4984_v61 = vsel %vm1602_vm3, %v4890_v53, 0.0  ;;  %v4990_v49 = vpop.permute.xlu1 %4989  ;;  %v8458_v53 = vsub.s32 3, %v7386_v16 }
 0x71a   :  { %4934 = vadd.xlane.f32.xlu1 %v4933_v21 }
 0x71c   :  { %4973 = vadd.xlane.f32.xlu0 %v4972_v56  ;;  %v8448_v56 = vsub.s32 2, %v7386_v16 }
 0x71e   :  { %4976 = vadd.xlane.f32.xlu1 %v4975_v17  ;;  %v2039_v17 = vrot.slane %v7862_v13, %v8448_v56 }
 0x720   :  { %4937 = vadd.xlane.f32.xlu0 %v4936_v24  ;;  %v2116_v24 = vrot.slane %v7865_v32, %v8441_v6 }
 0x722   :  { %4982 = vadd.xlane.f32.xlu1 %v4981_v55 }
 0x724   :  { %4979 = vadd.xlane.f32.xlu0 %v4978_v38 }
 0x728   :  { %4985 = vadd.xlane.f32.xlu0 %v4984_v61 }
 0x733   :  { %5644 = vrot.lane.b32.xlu1 %v7405_v23, %s6803_s1 }
 0x737   :  { %2019 = vbcast.lane.b32.xlu1 %v2017_v40, 256 }
 0x73b   :  { %2023 = vbcast.lane.b32.xlu1 %v2017_v40, 264  ;;  %v2050_v40 = vrot.slane %v7862_v13, %v8458_v53 }
 0x73c   :  { %v4193_v21 = vpop.xlane.xlu0 %4192 }
 0x73d   :  { %6789 = vrcp.f32 %v4193_v21 }
 0x73e   :  { %5642 = vrot.lane.b32.xlu0 %v7411_v26, %s6803_s1  ;;  %v4190_v3 = vpop.xlane.xlu1 %4189 }
 0x73f   :  { %6791 = vrcp.f32 %v4190_v3  ;;  %2034 = vbcast.lane.b32.xlu1 %v2028_v19, 264 }
 0x740   :  { %v4551_v54 = vpop.permute.xlu0 %4550 }
 0x741   :  { %6696 = vmatprep.subr.mxu0 %v4551_v54 }
 0x742   :  { %2030 = vbcast.lane.b32.xlu0 %v2028_v19, 256  ;;  %6697 = vmatpush3.msra.mxu0 %v4551_v54  ;;  %v4988_v19 = vpop.permute.xlu1 %4987  ;;  %v8489_v54 = vsub.s32 5, %v7386_v16 }
 0x743   :  { %2045 = vbcast.lane.b32.xlu1 %v2039_v17, 264  ;;  %6701 = vmatprep.subr.msk.mxu0 %vm1602_vm3, %v4990_v49 }
 0x746   :  { %2041 = vbcast.lane.b32.xlu0 %v2039_v17, 256  ;;  %v8493_v17 = vrot.slane %v7862_v13, %v8489_v54 }
 0x747   :  { %2111 = vbcast.lane.b32.xlu1 %v2105_v59, 264 }
 0x74a   :  { %2107 = vbcast.lane.b32.xlu0 %v2105_v59, 256  ;;  %v6790_v55 = vpop.eup %6789 }
 0x74b   :  { %2122 = vbcast.lane.b32.xlu1 %v2116_v24, 264  ;;  %v8466_v21 = vmul.f32 %v6790_v55, %v8272_v62  ;;  %v8479_v62 = vsub.s32 4, %v7386_v16 }
 0x74c   :  { %v6792_v38 = vpop.eup %6791 }
 0x74d   :  { %v8461_v61 = vmul.f32 %v6792_v38, %v8278_v5  ;;  %v2127_v5 = vrot.slane %v7865_v32, %v8448_v56  ;;  %v2061_v3 = vrot.slane %v7862_v13, %v8479_v62 }
 0x74e   :  { %2118 = vbcast.lane.b32.xlu0 %v2116_v24, 256 }
 0x74f   :  { %2056 = vbcast.lane.b32.xlu1 %v2050_v40, 264  ;;  %6698 = vmatprep.mubr.msk.f32.mxu0 %vm1991_vm12, %v8461_v61 }
 0x750   :  { %6699 = vmatmul.mubr.msk.f32.vlgmr.msra.gmra.mxu0 %vm1991_vm12, %v8466_v21 }
 0x751   :  { %6702 = vmatpush3.xpose.msk.msra.mxu0 %vm1602_vm3, %v4990_v49  ;;  %6705 = vmatprep.mubr.msk.f32.mxu0 %vm1602_vm3, %v7411_v26  ;;  %v2138_v49 = vrot.slane %v7865_v32, %v8458_v53 }
 0x752   :  { %6703 = vmatprep.subr.msk.mxu0 %vm1602_vm3, %v4988_v19  ;;  %2052 = vbcast.lane.b32.xlu0 %v2050_v40, 256 }
 0x753   :  { %2133 = vbcast.lane.b32.xlu1 %v2127_v5, 264 }
 0x755   :  { %6704 = vmatpush3.xpose.msk.msra.mxu0 %vm1602_vm3, %v4988_v19 }
 0x756   :  { %2129 = vbcast.lane.b32.xlu0 %v2127_v5, 256 }
 0x757   :  { %2067 = vbcast.lane.b32.xlu1 %v2061_v3, 264 }
 0x758   :  { %6706 = vmatmul.mubr.msk.f32.vlgmr.msra.gmra.mxu0 %vm1602_vm3, %v7405_v23 }
 0x75a   :  { %2063 = vbcast.lane.b32.xlu0 %v2061_v3, 256 }
 0x75b   :  { %2144 = vbcast.lane.b32.xlu1 %v2138_v49, 264 }
 0x75e   :  { %2140 = vbcast.lane.b32.xlu0 %v2138_v49, 256 }
 0x75f   :  { %2078 = vbcast.lane.b32.xlu1 %v8493_v17, 264 }
 0x771   :  { %v4893_v59 = vpop.xlane.xlu0 %4892 }
 0x772   :  { %v5026_v1 = vrot.slane %v4893_v59, %v7606_v48 }
 0x773   :  { %v4896_v24 = vpop.xlane.xlu1 %4895 }
 0x774   :  { %v5030_v45 = vrot.slane %v4896_v24, %v7611_v2 }
 0x775   :  { %v4899_v55 = vpop.xlane.xlu0 %4898 }
 0x776   :  { %v5035_v42 = vrot.slane %v4899_v55, %v7606_v48 }
 0x777   :  { %v4905_v38 = vpop.xlane.xlu1 %4904 }
 0x778   :  { %v5044_v46 = vrot.slane %v4905_v38, %v7606_v48 }
 0x779   :  { %v4902_v40 = vpop.xlane.xlu0 %4901 }
 0x77a   :  { %v5039_v14 = vrot.slane %v4902_v40, %v7611_v2  ;;  %v5031_v40 = vsel %vm1746_vm4, %v5030_v45, %v5026_v1 }
 0x77b   :  { %v4941_v19 = vpop.xlane.xlu1 %4940 }
 0x77c   :  { %v5040_v44 = vsel %vm1746_vm4, %v5039_v14, %v5035_v42  ;;  %v5098_v24 = vrot.slane %v4941_v19, %v7606_v48 }
 0x77d   :  { %v4908_v5 = vpop.xlane.xlu0 %4907  ;;  %v5167_v38 = vsel %vm1883_vm5, %v5040_v44, %v5031_v40 }
 0x77e   :  { %v5048_v27 = vrot.slane %v4908_v5, %v7611_v2 }
 0x77f   :  { %v4947_v26 = vpop.xlane.xlu1 %4946 }
 0x780   :  { %v5049_v55 = vsel %vm1746_vm4, %v5048_v27, %v5044_v46 }
 0x781   :  { %v4944_v3 = vpop.xlane.xlu0 %4943  ;;  %v5168_v45 = vsel %vm1885_vm6, %v5049_v55, %v5167_v38 }
 0x783   :  { %v4911_v23 = vpop.xlane.xlu1 %4910 }
 0x785   :  { %v4950_v29 = vpop.xlane.xlu0 %4949 }
 0x786   :  { %v5111_v31 = vrot.slane %v4950_v29, %v7611_v2 }
 0x787   :  { %v4953_v20 = vpop.xlane.xlu1 %4952 }
 0x788   :  { %v5116_v14 = vrot.slane %v4953_v20, %v7606_v48 }
 0x789   :  { %v4914_v10 = vpop.xlane.xlu0 %4913 }
 0x78a   :  { %v5057_v29 = vrot.slane %v4914_v10, %v7611_v2 }
 0x78b   :  { %v8496_v4 = vpop.xlane.xlu1 %4916 }
 0x78d   :  { %v4956_v9 = vpop.xlane.xlu0 %4955 }
 0x78e   :  { %v5120_v59 = vrot.slane %v4956_v9, %v7611_v2 }
 0x78f   :  { %v4959_v57 = vpop.xlane.xlu1 %4958 }
 0x790   :  { %v5121_v9 = vsel %vm1746_vm4, %v5120_v59, %v5116_v14  ;;  %v5125_v44 = vrot.slane %v4959_v57, %v7606_v48 }
 0x791   :  { %v8498_v49 = vpop.xlane.xlu0 %4919 }
 0x793   :  { %v8500_v8 = vpop.xlane.xlu1 %4922 }
 0x795   :  { %v4962_v58 = vpop.xlane.xlu0 %4961 }
 0x796   :  { %v5129_v1 = vrot.slane %v4962_v58, %v7611_v2  ;;  %v5066_v58 = vrot.slane %v8498_v49, %v7611_v2 }
 0x797   :  { %v4965_v51 = vpop.xlane.xlu1 %4964 }
 0x798   :  { %v5134_v20 = vrot.slane %v4965_v51, %v7606_v48 }
 0x799   :  { %v8502_v18 = vpop.xlane.xlu0 %4925 }
 0x79b   :  { %v8504_v7 = vpop.xlane.xlu1 %4928 }
 0x79d   :  { %v4968_v34 = vpop.xlane.xlu0 %4967 }
 0x79f   :  { %v4971_v63 = vpop.xlane.xlu1 %4970 }
 0x7a1   :  { %v8506_v50 = vpop.xlane.xlu0 %4931 }
 0x7a2   :  { %v5084_v49 = vrot.slane %v8506_v50, %v7611_v2  ;;  %v5080_v50 = vrot.slane %v8504_v7, %v7606_v48 }
 0x7a3   :  { %v8508_v39 = vpop.xlane.xlu1 %4934 }
 0x7a4   :  { %v5085_v59 = vsel %vm1746_vm4, %v5084_v49, %v5080_v50 }
 0x7a5   :  { %v4974_v52 = vpop.xlane.xlu0 %4973 }
 0x7a6   :  { %v5147_v10 = vrot.slane %v4974_v52, %v7611_v2 }
 0x7a7   :  { %v4977_v36 = vpop.xlane.xlu1 %4976 }
 0x7a8   :  { %v5152_v51 = vrot.slane %v4977_v36, %v7606_v48 }
 0x7a9   :  { %v8510_v15 = vpop.xlane.xlu0 %4937 }
 0x7ab   :  { %v4983_v47 = vpop.xlane.xlu1 %4982 }
 0x7ad   :  { %v4980_v22 = vpop.xlane.xlu0 %4979 }
 0x7ae   :  { %v5156_v19 = vrot.slane %v4980_v22, %v7611_v2  ;;  %v5071_v22 = vrot.slane %v8500_v8, %v7606_v48  ;;  %v5089_v8 = vrot.slane %v8508_v39, %v7606_v48 }
 0x7af   :  { %v5645_v60 = vpop.permute.xlu1 %5644 }
 0x7b0   :  { %6708 = vmatprep.subr.mxu0 %v5645_v60  ;;  %v5157_v36 = vsel %vm1746_vm4, %v5156_v19, %v5152_v51  ;;  %v8596_v19 = vsub.s32 6, %v7386_v16 }
 0x7b1   :  { %v4986_v0 = vpop.xlane.xlu0 %4985  ;;  %6709 = vmatpush3.msra.mxu0 %v5645_v60  ;;  %v5107_v60 = vrot.slane %v4947_v26, %v7606_v48  ;;  %v5053_v26 = vrot.slane %v4911_v23, %v7606_v48  ;;  %v5062_v23 = vrot.slane %v8496_v4, %v7606_v48 }
 0x7b2   :  { %v5165_v57 = vrot.slane %v4986_v0, %v7611_v2  ;;  %v5161_v0 = vrot.slane %v4983_v47, %v7606_v48  ;;  %v2171_v49 = vrot.slane %v7865_v32, %v8596_v19 }
 0x7b3   :  { %v5112_v5 = vsel %vm1746_vm4, %v5111_v31, %v5107_v60  ;;  %v5138_v31 = vrot.slane %v4968_v34, %v7611_v2  ;;  %v5058_v27 = vsel %vm1746_vm4, %v5057_v29, %v5053_v26  ;;  %v5130_v34 = vsel %vm1746_vm4, %v5129_v1, %v5125_v44  ;;  %v8615_v51 = vpop.permute.xlu1 %2019 }
 0x7b4   :  { %v5143_v60 = vrot.slane %v4971_v63, %v7606_v48  ;;  %v5093_v63 = vrot.slane %v8510_v15, %v7611_v2  ;;  %v5067_v40 = vsel %vm1746_vm4, %v5066_v58, %v5062_v23  ;;  %v5169_v47 = vsel %vm1887_vm7, %v5058_v27, %v5168_v45 }
 0x7b5   :  { %v5643_v12 = vpop.permute.xlu0 %5642  ;;  %v5139_v4 = vsel %vm1746_vm4, %v5138_v31, %v5134_v20  ;;  %v2149_v23 = vrot.slane %v7865_v32, %v8479_v62  ;;  %v3109_v58 = vrot.slane %v8150_v33, %v7409_v25  ;;  %v3120_v20 = vrot.slane %v8150_v33, %v8441_v6 }
 0x7b6   :  { %6710 = vmatprep.subr.mxu0 %v5643_v12  ;;  %v5094_v38 = vsel %vm1746_vm4, %v5093_v63, %v5089_v8 }
 0x7b7   :  { %6711 = vmatpush3.msra.mxu0 %v5643_v12  ;;  %v5102_v12 = vrot.slane %v4944_v3, %v7611_v2  ;;  %v5075_v3 = vrot.slane %v8502_v18, %v7611_v2  ;;  %v5148_v18 = vsel %vm1746_vm4, %v5147_v10, %v5143_v60  ;;  %v3197_v60 = vrot.slane %v8153_v11, %v7409_v25 }
 0x7b9   :  { %v5103_v42 = vsel %vm1746_vm4, %v5102_v12, %v5098_v24  ;;  %v5076_v55 = vsel %vm1746_vm4, %v5075_v3, %v5071_v22  ;;  %v2160_v3 = vrot.slane %v7865_v32, %v8489_v54  ;;  %v8617_v22 = vpop.permute.xlu1 %2023  ;;  %v8621_v63 = vpop.permute.xlu0 %2030 }
 0x7ba   :  { %v5174_v46 = vsel %vm1883_vm5, %v5112_v5, %v5103_v42  ;;  %v5166_v5 = vsel %vm1746_vm4, %v5165_v57, %v5161_v0  ;;  %v5170_v42 = vsel %vm1889_vm8, %v5067_v40, %v5169_v47  ;;  %v3208_v57 = vrot.slane %v8153_v11, %v8441_v6 }
 0x7bb   :  { %v5175_v52 = vsel %vm1885_vm6, %v5121_v9, %v5174_v46  ;;  %v5171_v26 = vsel %vm1891_vm9, %v5076_v55, %v5170_v42 }
 0x7bc   :  { %v5176_v24 = vsel %vm1887_vm7, %v5130_v34, %v5175_v52  ;;  %v5172_v1 = vsel %vm1893_vm10, %v5085_v59, %v5171_v26  ;;  %v2083_v34 = vrot.slane %v7862_v13, %v8596_v19  ;;  %v8609_v52 = vsub.s32 7, %v7386_v16 }
 0x7bd   :  { %v5177_v2 = vsel %vm1889_vm8, %v5139_v4, %v5176_v24  ;;  %v5173_v45 = vsel %vm1895_vm11, %v5094_v38, %v5172_v1  ;;  %v8625_v0 = vpop.permute.xlu0 %2041 }
 0x7be   :  { %v5178_v29 = vsel %vm1891_vm9, %v5148_v18, %v5177_v2  ;;  %v2094_v4 = vrot.slane %v7862_v13, %v8609_v52  ;;  %v8619_v18 = vpop.permute.xlu1 %2034 }
 0x7bf   :  { %v5179_v7 = vsel %vm1893_vm10, %v5157_v36, %v5178_v29 }
 0x7c0   :  { %v5180_v48 = vsel %vm1895_vm11, %v5166_v5, %v5179_v7 }
 0x7c1   :  { %v8629_v40 = vpop.permute.xlu0 %2107 }
 0x7c2   :  { %v8623_v16 = vpop.permute.xlu1 %2045 }
 0x7c5   :  { %v8633_v50 = vpop.permute.xlu0 %2118 }
 0x7c6   :  { %v8627_v13 = vpop.permute.xlu1 %2111 }
 0x7c9   :  { %v8637_v55 = vpop.permute.xlu0 %2052 }
 0x7ca   :  { %v8631_v24 = vpop.permute.xlu1 %2122 }
 0x7cd   :  { %v8641_v5 = vpop.permute.xlu0 %2129 }
 0x7ce   :  { %v8635_v36 = vpop.permute.xlu1 %2056 }
 0x7d1   :  { %v8645_v47 = vpop.permute.xlu0 %2063 }
 0x7d2   :  { %v8639_v8 = vpop.permute.xlu1 %2133 }
 0x7d5   :  { %v8649_v59 = vpop.permute.xlu0 %2140 }
 0x7d6   :  { %v8643_v2 = vpop.permute.xlu1 %2067 }
 0x7da   :  { %v8647_v29 = vpop.permute.xlu1 %2144 }
 0x7de   :  { %v8651_v7 = vpop.permute.xlu1 %2078 }
 0x810   :  { %v8556_v12 = vpop.f32.mrf.mxu0 }
 0x811   :  { %9659 = vst [vmem:[#allocation136_spill] sm:$0xff] %v8556_v12 }
 0x812   :  { %v8575_v15 = vpop.f32.mrf.mxu0 }
 0x818   :  { %v6707_v39 = vpop.f32.mrf.mxu0 }
 0x819   :  { %v5263_v14 = vadd.f32 %v6707_v39, %v5180_v48 }
 0x81a   :  { %v5257_v46 = vpop.f32.mrf.mxu0 }
 0x81b   :  { %v5267_v31 = vmul.f32 0.17677669, %v5263_v14  ;;  %v5258_v27 = vadd.f32 %v5257_v46, %v5173_v45 }
 0x81d   :  { %v5266_v9 = vmul.f32 0.17677669, %v5258_v27  ;;  %v5271_v44 = vsel %vm1991_vm12, %v5267_v31, -inf }
 0x81e   :  { %5272 = vmax.xlane.f32.xlu0 %v5271_v44  ;;  %v2182_v44 = vrot.slane %v7865_v32, %v8609_v52  ;;  %v3241_v32 = vrot.slane %v8153_v11, %v8479_v62 }
 0x81f   :  { %v5268_v10 = vsel %vm1991_vm12, %v5266_v9, -inf }
 0x820   :  { %5269 = vmax.xlane.f32.xlu1 %v5268_v10  ;;  %v3153_v10 = vrot.slane %v8150_v33, %v8479_v62 }
 0x831   :  { %2155 = vbcast.lane.b32.xlu1 %v2149_v23, 264 }
 0x834   :  { %2074 = vbcast.lane.b32.xlu0 %v8493_v17, 256  ;;  %v3131_v17 = vrot.slane %v8150_v33, %v8448_v56 }
 0x835   :  { %3115 = vbcast.lane.b32.xlu1 %v3109_v58, 264 }
 0x838   :  { %2151 = vbcast.lane.b32.xlu0 %v2149_v23, 256  ;;  %v3230_v23 = vrot.slane %v8153_v11, %v8458_v53 }
 0x839   :  { %3126 = vbcast.lane.b32.xlu1 %v3120_v20, 264 }
 0x83c   :  { %3111 = vbcast.lane.b32.xlu0 %v3109_v58, 256  ;;  %v3164_v58 = vrot.slane %v8150_v33, %v8489_v54 }
 0x83d   :  { %2089 = vbcast.lane.b32.xlu1 %v2083_v34, 264 }
 0x840   :  { %3122 = vbcast.lane.b32.xlu0 %v3120_v20, 256  ;;  %v4201_v20 = vrot.slane %v8461_v61, %v7409_v25 }
 0x841   :  { %2166 = vbcast.lane.b32.xlu1 %v2160_v3, 264 }
 0x844   :  { %2085 = vbcast.lane.b32.xlu0 %v2083_v34, 256  ;;  %v4212_v34 = vrot.slane %v8461_v61, %v8441_v6 }
 0x845   :  { %3137 = vbcast.lane.b32.xlu1 %v3131_v17, 264 }
 0x848   :  { %2162 = vbcast.lane.b32.xlu0 %v2160_v3, 256  ;;  %v3175_v3 = vrot.slane %v8150_v33, %v8596_v19 }
 0x849   :  { %3203 = vbcast.lane.b32.xlu1 %v3197_v60, 264 }
 0x84c   :  { %3133 = vbcast.lane.b32.xlu0 %v3131_v17, 256  ;;  %v3252_v17 = vrot.slane %v8153_v11, %v8489_v54 }
 0x84d   :  { %3214 = vbcast.lane.b32.xlu1 %v3208_v57, 264 }
 0x850   :  { %3199 = vbcast.lane.b32.xlu0 %v3197_v60, 256  ;;  %v4223_v60 = vrot.slane %v8461_v61, %v8448_v56 }
 0x851   :  { %2100 = vbcast.lane.b32.xlu1 %v2094_v4, 264 }
 0x854   :  { %3210 = vbcast.lane.b32.xlu0 %v3208_v57, 256  ;;  %v4289_v57 = vrot.slane %v8466_v21, %v7409_v25 }
 0x855   :  { %2177 = vbcast.lane.b32.xlu1 %v2171_v49, 264 }
 0x858   :  { %2096 = vbcast.lane.b32.xlu0 %v2094_v4, 256  ;;  %v4300_v4 = vrot.slane %v8466_v21, %v8441_v6 }
 0x8a7   :  { %v5273_v38 = vpop.xlane.xlu0 %5272 }
 0x8a8   :  { %v5275_v42 = vsub.f32 %v5267_v31, %v5273_v38  ;;  %v3142_v31 = vrot.slane %v8150_v33, %v8458_v53  ;;  %v3263_v38 = vrot.slane %v8153_v11, %v8596_v19 }
 0x8a9   :  { %v5270_v48 = vpop.xlane.xlu1 %5269 }
 0x8aa   :  { %v5278_v39 = vmul.f32 1.442695, %v5275_v42  ;;  %v5274_v26 = vsub.f32 %v5266_v9, %v5270_v48  ;;  %v3219_v9 = vrot.slane %v8153_v11, %v8448_v56 }
 0x8ab   :  { %v8693_v42 = vpop.permute.xlu0 %2074 }
 0x8ac   :  { %6793 = vpow2.f32 %v5278_v39  ;;  %v5276_v14 = vmul.f32 1.442695, %v5274_v26  ;;  %v4234_v39 = vrot.slane %v8461_v61, %v8458_v53 }
 0x8ad   :  { %v8695_v48 = vpop.permute.xlu1 %2155 }
 0x8ae   :  { %6795 = vpow2.f32 %v5276_v14 }
 0x8af   :  { %v8699_v26 = vpop.permute.xlu0 %2151 }
 0x8b1   :  { %v8703_v14 = vpop.permute.xlu1 %3115 }
 0x8b9   :  { %v8653_v1 = vpop.eup %6793 }
 0x8ba   :  { %v5283_v45 = vsel %vm1991_vm12, %v8653_v1, 0.0 }
 0x8bb   :  { %v8657_v46 = vpop.eup %6795  ;;  %5284 = vadd.xlane.f32.xlu0 %v5283_v45  ;;  %v3274_v45 = vrot.slane %v8153_v11, %v8609_v52  ;;  %v4256_v11 = vrot.slane %v8461_v61, %v8489_v54 }
 0x8bc   :  { %v5280_v27 = vsel %vm1991_vm12, %v8657_v46, 0.0 }
 0x8bd   :  { %5281 = vadd.xlane.f32.xlu1 %v5280_v27  ;;  %v8707_v27 = vpop.permute.xlu0 %3111 }
 0x8ce   :  { %3148 = vbcast.lane.b32.xlu1 %v3142_v31, 264 }
 0x8d1   :  { %2173 = vbcast.lane.b32.xlu0 %v2171_v49, 256  ;;  %v3186_v49 = vrot.slane %v8150_v33, %v8609_v52  ;;  %v4311_v33 = vrot.slane %v8466_v21, %v8448_v56 }
 0x8d2   :  { %3225 = vbcast.lane.b32.xlu1 %v3219_v9, 264 }
 0x8d5   :  { %3144 = vbcast.lane.b32.xlu0 %v3142_v31, 256  ;;  %v8709_v31 = vpop.permute.xlu1 %3126 }
 0x8d6   :  { %2188 = vbcast.lane.b32.xlu1 %v2182_v44, 264 }
 0x8d9   :  { %3221 = vbcast.lane.b32.xlu0 %v3219_v9, 256  ;;  %v4245_v9 = vrot.slane %v8461_v61, %v8479_v62 }
 0x8da   :  { %3159 = vbcast.lane.b32.xlu1 %v3153_v10, 264 }
 0x8dd   :  { %2184 = vbcast.lane.b32.xlu0 %v2182_v44, 256  ;;  %v8713_v44 = vpop.permute.xlu0 %3122 }
 0x8de   :  { %3236 = vbcast.lane.b32.xlu1 %v3230_v23, 264 }
 0x8e1   :  { %3155 = vbcast.lane.b32.xlu0 %v3153_v10, 256  ;;  %v4322_v10 = vrot.slane %v8466_v21, %v8458_v53 }
 0x8e2   :  { %3170 = vbcast.lane.b32.xlu1 %v3164_v58, 264 }
 0x8e5   :  { %3232 = vbcast.lane.b32.xlu0 %v3230_v23, 256  ;;  %v8717_v23 = vpop.permute.xlu1 %2089 }
 0x8e6   :  { %3247 = vbcast.lane.b32.xlu1 %v3241_v32, 264 }
 0x8e9   :  { %3166 = vbcast.lane.b32.xlu0 %v3164_v58, 256  ;;  %v8721_v58 = vpop.permute.xlu0 %2085 }
 0x8ea   :  { %4207 = vbcast.lane.b32.xlu1 %v4201_v20, 264 }
 0x8ed   :  { %3243 = vbcast.lane.b32.xlu0 %v3241_v32, 256  ;;  %v8723_v32 = vpop.permute.xlu1 %2166 }
 0x8ee   :  { %4218 = vbcast.lane.b32.xlu1 %v4212_v34, 264 }
 0x8f1   :  { %4203 = vbcast.lane.b32.xlu0 %v4201_v20, 256  ;;  %v4333_v20 = vrot.slane %v8466_v21, %v8479_v62 }
 0x8f2   :  { %3181 = vbcast.lane.b32.xlu1 %v3175_v3, 264 }
 0x8f5   :  { %4214 = vbcast.lane.b32.xlu0 %v4212_v34, 256  ;;  %v2191_v34 = vmul.f32 %v7413_v28, %v8617_v22  ;;  %v8743_v22 = vpop.permute.xlu1 %3137 }
 0x8f6   :  { %3258 = vbcast.lane.b32.xlu1 %v3252_v17, 264 }
 0x8f9   :  { %3177 = vbcast.lane.b32.xlu0 %v3175_v3, 256  ;;  %v2193_v3 = vmul.f32 %v7422_v35, %v8619_v18  ;;  %v2195_v35 = vmul.f32 %v7429_v41, %v8623_v16  ;;  %v9662_v16 = vld [vmem:[#allocation22_spill] sm:$0xff] }
 0x8fa   :  { %4229 = vbcast.lane.b32.xlu1 %v4223_v60, 264 }
 0x8fb   :  { %v2232_v28 = vsel %vm1602_vm3, %v2193_v3, 0.0 }
 0x8fd   :  { %3254 = vbcast.lane.b32.xlu0 %v3252_v17, 256  ;;  %v2190_v17 = vmul.f32 %v8615_v51, %v7416_v30  ;;  %v2207_v51 = vmul.f32 %v7487_v43, %v8627_v13  ;;  %v2241_v43 = vsel %vm1602_vm3, %v2195_v35, 0.0 }
 0x8fe   :  { %4295 = vbcast.lane.b32.xlu1 %v4289_v57, 264 }
 0x8ff   :  { %v2222_v30 = vsel %vm1602_vm3, %v2190_v17, 0.0  ;;  %v9665_v17 = vld [vmem:[#allocation12_spill] sm:$0xff] }
 0x901   :  { %4225 = vbcast.lane.b32.xlu0 %v4223_v60, 256  ;;  %v2192_v60 = vmul.f32 %v8621_v63, %v7425_v37 }
 0x902   :  { %4306 = vbcast.lane.b32.xlu1 %v4300_v4, 264 }
 0x903   :  { %v2231_v37 = vsel %vm1602_vm3, %v2192_v60, 0.0 }
 0x904   :  { %v2233_v63 = vadd.f32 %v2232_v28, %v2231_v37  ;;  %v8768_v28 = vpop.permute.xlu1 %3203 }
 0x905   :  { %4291 = vbcast.lane.b32.xlu0 %v4289_v57, 256  ;;  %v8735_v57 = vpop.permute.xlu0 %2162 }
 0x906   :  { %3192 = vbcast.lane.b32.xlu1 %v3186_v49, 264 }
 0x909   :  { %4302 = vbcast.lane.b32.xlu0 %v4300_v4, 256  ;;  %v4267_v4 = vrot.slane %v8461_v61, %v8596_v19  ;;  %v8760_v13 = vpop.permute.xlu0 %3133 }
 0x90a   :  { %3269 = vbcast.lane.b32.xlu1 %v3263_v38, 264 }
 0x90d   :  { %3188 = vbcast.lane.b32.xlu0 %v3186_v49, 256  ;;  %v2223_v49 = vsel %vm1602_vm3, %v2191_v34, 0.0  ;;  %v9664_v34 = vld [vmem:[#allocation23_spill] sm:$0xff] }
 0x90e   :  { %4240 = vbcast.lane.b32.xlu1 %v4234_v39, 264  ;;  %v2224_v18 = vadd.f32 %v2223_v49, %v2222_v30  ;;  %v2208_v3 = vmul.f32 %v8633_v50, %v9664_v34  ;;  %v2234_v49 = vrot.slane %v2233_v63, 4  ;;  %v8785_v34 = vpop.permute.xlu1 %3214 }
 0x910   :  { %v2225_v60 = vrot.slane %v2224_v18, 4 }
 0x911   :  { %3265 = vbcast.lane.b32.xlu0 %v3263_v38, 256  ;;  %v9660_v38 = vld [vmem:[#allocation10_spill] sm:$0xff] }
 0x912   :  { %4317 = vbcast.lane.b32.xlu1 %v4311_v33, 264 }
 0x915   :  { %4236 = vbcast.lane.b32.xlu0 %v4234_v39, 256  ;;  %v2194_v39 = vmul.f32 %v8625_v0, %v9660_v38  ;;  %v2295_v0 = vsel %vm1602_vm3, %v2207_v51, 0.0  ;;  %v9666_v38 = vld [vmem:[#allocation24_spill] sm:$0xff] }
 0x916   :  { %3280 = vbcast.lane.b32.xlu1 %v3274_v45, 264 }
 0x919   :  { %4313 = vbcast.lane.b32.xlu0 %v4311_v33, 256  ;;  %v4344_v33 = vrot.slane %v8466_v21, %v8489_v54 }
 0x91a   :  { %4251 = vbcast.lane.b32.xlu1 %v4245_v9, 264 }
 0x91d   :  { %3276 = vbcast.lane.b32.xlu0 %v3274_v45, 256  ;;  %v9661_v45 = vld [vmem:[#allocation21_spill] sm:$0xff] }
 0x91e   :  { %4328 = vbcast.lane.b32.xlu1 %v4322_v10, 264  ;;  %v2206_v41 = vmul.f32 %v8629_v40, %v9661_v45  ;;  %v2196_v40 = vmul.f32 %v8637_v55, %v9665_v17  ;;  %v2303_v55 = vsel %vm1602_vm3, %v2208_v3, 0.0  ;;  %v2226_v45 = vadd.f32 %v2225_v60, %v2224_v18  ;;  %v9668_v3 = vld [vmem:[#allocation13_spill] sm:$0xff]  ;;  %v9669_v18 = vld [vmem:[#allocation26_spill] sm:$0xff] }
 0x91f   :  { %v2199_v17 = vmul.f32 %v9668_v3, %v8643_v2  ;;  %v8803_v3 = vpop.permute.xlu1 %2100 }
 0x920   :  { %v2294_v35 = vsel %vm1602_vm3, %v2206_v41, 0.0  ;;  %v2249_v51 = vsel %vm1602_vm3, %v2196_v40, 0.0  ;;  %v4366_v40 = vrot.slane %v8466_v21, %v8609_v52  ;;  %v2227_v60 = vrot.slane %v2226_v45, 2 }
 0x921   :  { %4247 = vbcast.lane.b32.xlu0 %v4245_v9, 256  ;;  %v2209_v9 = vmul.f32 %v9662_v16, %v8631_v24  ;;  %v2240_v24 = vsel %vm1602_vm3, %v2194_v39, 0.0  ;;  %v2296_v50 = vadd.f32 %v2295_v0, %v2294_v35  ;;  %v2211_v39 = vmul.f32 %v9666_v38, %v8639_v8 }
 0x922   :  { %4262 = vbcast.lane.b32.xlu1 %v4256_v11, 264  ;;  %v2235_v16 = vadd.f32 %v2234_v49, %v2233_v63  ;;  %v2213_v63 = vmul.f32 %v9669_v18, %v8647_v29 }
 0x923   :  { %v2304_v30 = vsel %vm1602_vm3, %v2209_v9, 0.0  ;;  %v8781_v9 = vpop.permute.xlu0 %3199  ;;  %v2297_v0 = vrot.slane %v2296_v50, 4  ;;  %v2313_v8 = vsel %vm1602_vm3, %v2211_v39, 0.0 }
 0x924   :  { %v2305_v41 = vadd.f32 %v2304_v30, %v2303_v55  ;;  %v2236_v49 = vrot.slane %v2235_v16, 2  ;;  %v9670_v30 = vld [vmem:[#allocation14_spill] sm:$0xff]  ;;  %v9671_v55 = vld [vmem:[#allocation27_spill] sm:$0xff]  ;;  %v2322_v39 = vsel %vm1602_vm3, %v2213_v63, 0.0 }
 0x925   :  { %4324 = vbcast.lane.b32.xlu0 %v4322_v10, 256  ;;  %v9663_v10 = vld [vmem:[#allocation11_spill] sm:$0xff]  ;;  %v2298_v2 = vadd.f32 %v2297_v0, %v2296_v50 }
 0x926   :  { %4339 = vbcast.lane.b32.xlu1 %v4333_v20, 264 }
 0x927   :  { %v8799_v29 = vpop.permute.xlu0 %3210  ;;  %v2299_v0 = vrot.slane %v2298_v2, 2 }
 0x929   :  { %4258 = vbcast.lane.b32.xlu0 %v4256_v11, 256  ;;  %v2197_v11 = vmul.f32 %v9663_v10, %v8635_v36  ;;  %v4278_v36 = vrot.slane %v8461_v61, %v8609_v52  ;;  %v4355_v61 = vrot.slane %v8466_v21, %v8596_v19  ;;  %v2259_v21 = vsel %vm1602_vm3, %v2199_v17, 0.0 }
 0x92a   :  { %4273 = vbcast.lane.b32.xlu1 %v4267_v4, 264 }
 0x92b   :  { %v2250_v37 = vsel %vm1602_vm3, %v2197_v11, 0.0 }
 0x92c   :  { %v2251_v10 = vadd.f32 %v2250_v37, %v2249_v51  ;;  %v2198_v37 = vmul.f32 %v8645_v47, %v9670_v30  ;;  %v2212_v51 = vmul.f32 %v8649_v59, %v9671_v55  ;;  %v9674_v30 = vld [vmem:[#allocation29_spill] sm:$0xff] }
 0x92d   :  { %4335 = vbcast.lane.b32.xlu0 %v4333_v20, 256  ;;  %v2242_v20 = vadd.f32 %v2241_v43, %v2240_v24  ;;  %v2306_v24 = vrot.slane %v2305_v41, 4 }
 0x92e   :  { %4350 = vbcast.lane.b32.xlu1 %v4344_v33, 264  ;;  %v2258_v18 = vsel %vm1602_vm3, %v2198_v37, 0.0  ;;  %v2321_v59 = vsel %vm1602_vm3, %v2212_v51, 0.0 }
 0x92f   :  { %v2243_v11 = vrot.slane %v2242_v20, 4  ;;  %v2260_v17 = vadd.f32 %v2259_v21, %v2258_v18  ;;  %v8816_v21 = vpop.permute.xlu1 %2177 }
 0x931   :  { %4269 = vbcast.lane.b32.xlu0 %v4267_v4, 256  ;;  %v9667_v4 = vld [vmem:[#allocation25_spill] sm:$0xff]  ;;  %v2261_v55 = vrot.slane %v2260_v17, 4 }
 0x932   :  { %4284 = vbcast.lane.b32.xlu1 %v4278_v36, 264  ;;  %v2210_v43 = vmul.f32 %v8641_v5, %v9667_v4  ;;  %v2252_v5 = vrot.slane %v2251_v10, 4  ;;  %v2228_v4 = vadd.f32 %v2227_v60, %v2226_v45  ;;  %v9673_v45 = vld [vmem:[#allocation15_spill] sm:$0xff]  ;;  %v8811_v60 = vpop.permute.xlu0 %2096 }
 0x934   :  { %v2312_v35 = vsel %vm1602_vm3, %v2210_v43, 0.0  ;;  %v2253_v43 = vadd.f32 %v2252_v5, %v2251_v10 }
 0x935   :  { %4346 = vbcast.lane.b32.xlu0 %v4344_v33, 256  ;;  %v2244_v33 = vadd.f32 %v2243_v11, %v2242_v20  ;;  %v2314_v38 = vadd.f32 %v2313_v8, %v2312_v35  ;;  %v2237_v20 = vadd.f32 %v2236_v49, %v2235_v16  ;;  %v2307_v11 = vadd.f32 %v2306_v24, %v2305_v41 }
 0x936   :  { %4361 = vbcast.lane.b32.xlu1 %v4355_v61, 264  ;;  %v2323_v35 = vadd.f32 %v2322_v39, %v2321_v59  ;;  %v2201_v16 = vmul.f32 %v9673_v45, %v8651_v7  ;;  %v2229_v41 = vrot.slane %v2228_v4, 1  ;;  %v2254_v63 = vrot.slane %v2253_v43, 2  ;;  %v9675_v39 = vld [vmem:[#allocation28_spill] sm:$0xff] }
 0x937   :  { %v2245_v47 = vrot.slane %v2244_v33, 2  ;;  %v2315_v8 = vrot.slane %v2314_v38, 4  ;;  %v2308_v10 = vrot.slane %v2307_v11, 2  ;;  %v2238_v49 = vrot.slane %v2237_v20, 1 }
 0x938   :  { %v2324_v51 = vrot.slane %v2323_v35, 4  ;;  %v2268_v7 = vsel %vm1602_vm3, %v2201_v16, 0.0  ;;  %v2215_v18 = vmul.f32 %v9675_v39, %v8695_v48  ;;  %v2230_v59 = vadd.f32 %v2229_v41, %v2228_v4  ;;  %v9677_v4 = vld [vmem:[#allocation39_spill] sm:$0xff] }
 0x939   :  { %4280 = vbcast.lane.b32.xlu0 %v4278_v36, 256  ;;  %v9672_v36 = vld [vmem:[#allocation16_spill] sm:$0xff]  ;;  %v2246_v24 = vadd.f32 %v2245_v47, %v2244_v33  ;;  %v2316_v37 = vadd.f32 %v2315_v8, %v2314_v38  ;;  %v2255_v33 = vadd.f32 %v2254_v63, %v2253_v43  ;;  %v2239_v45 = vadd.f32 %v2238_v49, %v2237_v20 }
 0x93a   :  { %4372 = vbcast.lane.b32.xlu1 %v4366_v40, 264  ;;  %v2200_v50 = vmul.f32 %v8693_v42, %v9672_v36  ;;  %v2214_v42 = vmul.f32 %v8699_v26, %v9674_v30  ;;  %v2309_v36 = vadd.f32 %v2308_v10, %v2307_v11  ;;  %v2262_v38 = vadd.f32 %v2261_v55, %v2260_v17  ;;  %v9676_v30 = vld [vmem:[#allocation37_spill] sm:$0xff]  ;;  %v9678_v17 = vld [vmem:[#allocation36_spill] sm:$0xff]  ;;  %v9680_v55 = vld [vmem:[#allocation18_spill] sm:$0xff] }
 0x93b   :  { %v2247_v12 = vrot.slane %v2246_v24, 1  ;;  %v2331_v16 = vsel %vm1602_vm3, %v2215_v18, 0.0  ;;  %v3282_v48 = vmul.f32 %v8707_v27, %v9676_v30  ;;  %v3284_v11 = vmul.f32 %v8713_v44, %v9677_v4 }
 0x93c   :  { %v2267_v5 = vsel %vm1602_vm3, %v2200_v50, 0.0  ;;  %v2330_v26 = vsel %vm1602_vm3, %v2214_v42, 0.0  ;;  %v2310_v43 = vrot.slane %v2309_v36, 1  ;;  %v2256_v20 = vrot.slane %v2255_v33, 1 }
 0x93d   :  { %4357 = vbcast.lane.b32.xlu0 %v4355_v61, 256  ;;  %v2300_v61 = vadd.f32 %v2299_v0, %v2298_v2  ;;  %v2269_v47 = vadd.f32 %v2268_v7, %v2267_v5  ;;  %v2317_v2 = vrot.slane %v2316_v37, 2  ;;  %v2325_v0 = vadd.f32 %v2324_v51, %v2323_v35  ;;  %v9679_v5 = vld [vmem:[#allocation38_spill] sm:$0xff] }
 0x93e   :  { %v2332_v10 = vadd.f32 %v2331_v16, %v2330_v26  ;;  %v2388_v49 = vsel %vm1883_vm5, %v2239_v45, %v2230_v59  ;;  %v3283_v35 = vmul.f32 %v9678_v17, %v8703_v14  ;;  %v3285_v42 = vmul.f32 %v9679_v5, %v8709_v31  ;;  %v9681_v45 = vld [vmem:[#allocation17_spill] sm:$0xff] }
 0x93f   :  { %v2270_v41 = vrot.slane %v2269_v47, 4  ;;  %v2202_v27 = vmul.f32 %v8721_v58, %v9680_v55  ;;  %v2248_v51 = vadd.f32 %v2247_v12, %v2246_v24  ;;  %v2318_v7 = vadd.f32 %v2317_v2, %v2316_v37 }
 0x940   :  { %v2263_v39 = vrot.slane %v2262_v38, 2  ;;  %v3314_v26 = vsel %vm1602_vm3, %v3282_v48, 0.0  ;;  %v3323_v59 = vsel %vm1602_vm3, %v3284_v11, 0.0  ;;  %v2203_v14 = vmul.f32 %v9681_v45, %v8717_v23 }
 0x941   :  { %4368 = vbcast.lane.b32.xlu0 %v4366_v40, 256  ;;  %v2301_v40 = vrot.slane %v2300_v61, 1  ;;  %v2257_v16 = vadd.f32 %v2256_v20, %v2255_v33  ;;  %v2271_v31 = vadd.f32 %v2270_v41, %v2269_v47  ;;  %v2333_v30 = vrot.slane %v2332_v10, 4  ;;  %v9683_v47 = vld [vmem:[#allocation30_spill] sm:$0xff]  ;;  %v9684_v20 = vld [vmem:[#allocation41_spill] sm:$0xff] }
 0x942   :  { %v3315_v12 = vsel %vm1602_vm3, %v3283_v35, 0.0  ;;  %v3324_v58 = vsel %vm1602_vm3, %v3285_v42, 0.0  ;;  %v2276_v24 = vsel %vm1602_vm3, %v2202_v27, 0.0  ;;  %v2264_v2 = vadd.f32 %v2263_v39, %v2262_v38  ;;  %v9685_v27 = vld [vmem:[#allocation40_spill] sm:$0xff] }
 0x943   :  { %v2302_v44 = vadd.f32 %v2301_v40, %v2300_v61  ;;  %v9682_v61 = vld [vmem:[#allocation31_spill] sm:$0xff]  ;;  %v2319_v40 = vrot.slane %v2318_v7, 1  ;;  %v3316_v48 = vadd.f32 %v3315_v12, %v3314_v26  ;;  %v3325_v11 = vadd.f32 %v3324_v58, %v3323_v59  ;;  %v9686_v58 = vld [vmem:[#allocation20_spill] sm:$0xff] }
 0x944   :  { %v5285_v50 = vpop.xlane.xlu0 %5284  ;;  %v2216_v37 = vmul.f32 %v8735_v57, %v9682_v61  ;;  %v2277_v33 = vsel %vm1602_vm3, %v2203_v14, 0.0  ;;  %v3286_v41 = vmul.f32 %v8760_v13, %v9684_v20  ;;  %v2389_v17 = vsel %vm1885_vm6, %v2248_v51, %v2388_v49 }
 0x945   :  { %6797 = vrcp.f32 %v5285_v50  ;;  %v2326_v50 = vrot.slane %v2325_v0, 2  ;;  %v2272_v35 = vrot.slane %v2271_v31, 2  ;;  %v2334_v5 = vadd.f32 %v2333_v30, %v2332_v10 }
 0x946   :  { %v5282_v8 = vpop.xlane.xlu1 %5281  ;;  %v2278_v57 = vadd.f32 %v2277_v33, %v2276_v24  ;;  %v2390_v55 = vsel %vm1887_vm7, %v2257_v16, %v2389_v17  ;;  %v3287_v39 = vmul.f32 %v9685_v27, %v8743_v22  ;;  %v2265_v26 = vrot.slane %v2264_v2, 1 }
 0x947   :  { %6799 = vrcp.f32 %v5282_v8  ;;  %v2311_v8 = vadd.f32 %v2310_v43, %v2309_v36  ;;  %v2327_v36 = vadd.f32 %v2326_v50, %v2325_v0  ;;  %v2217_v43 = vmul.f32 %v9683_v47, %v8723_v32 }
 0x948   :  { %v8827_v63 = vpop.permute.xlu0 %2173  ;;  %v2339_v0 = vsel %vm1602_vm3, %v2216_v37, 0.0  ;;  %v2320_v50 = vadd.f32 %v2319_v40, %v2318_v7  ;;  %v3317_v13 = vrot.slane %v3316_v48, 4  ;;  %v3326_v59 = vrot.slane %v3325_v11, 4 }
 0x949   :  { %v2395_v38 = vsel %vm1883_vm5, %v2311_v8, %v2302_v44  ;;  %v2328_v10 = vrot.slane %v2327_v36, 1  ;;  %v2340_v51 = vsel %vm1602_vm3, %v2217_v43, 0.0  ;;  %v3332_v45 = vsel %vm1602_vm3, %v3286_v41, 0.0  ;;  %v9687_v41 = vld [vmem:[#allocation19_spill] sm:$0xff] }
 0x94a   :  { %v8836_v18 = vpop.permute.xlu1 %3148  ;;  %v2273_v8 = vadd.f32 %v2272_v35, %v2271_v31  ;;  %v2335_v16 = vrot.slane %v2334_v5, 2  ;;  %v2279_v30 = vrot.slane %v2278_v57, 4  ;;  %v2341_v22 = vadd.f32 %v2340_v51, %v2339_v0  ;;  %v9688_v0 = vld [vmem:[#allocation53_spill] sm:$0xff] }
 0x94b   :  { %v3333_v7 = vsel %vm1602_vm3, %v3287_v39, 0.0  ;;  %v2204_v24 = vmul.f32 %v8811_v60, %v9686_v58  ;;  %v3318_v40 = vadd.f32 %v3317_v13, %v3316_v48  ;;  %v3327_v31 = vadd.f32 %v3326_v59, %v3325_v11 }
 0x94c   :  { %v8842_v4 = vpop.permute.xlu0 %3144  ;;  %v3334_v33 = vadd.f32 %v3333_v7, %v3332_v45  ;;  %v2266_v43 = vadd.f32 %v2265_v26, %v2264_v2  ;;  %v2329_v20 = vadd.f32 %v2328_v10, %v2327_v36  ;;  %v2205_v17 = vmul.f32 %v9687_v41, %v8803_v3  ;;  %v9692_v41 = vld [vmem:[#allocation33_spill] sm:$0xff] }
 0x94d   :  { %v2274_v60 = vrot.slane %v2273_v8, 1  ;;  %v2342_v35 = vrot.slane %v2341_v22, 4  ;;  %v3298_v27 = vmul.f32 %v8781_v9, %v9688_v0  ;;  %v2336_v11 = vadd.f32 %v2335_v16, %v2334_v5 }
 0x94e   :  { %v8849_v23 = vpop.permute.xlu1 %3225  ;;  %v2285_v36 = vsel %vm1602_vm3, %v2204_v24, 0.0  ;;  %v3328_v39 = vrot.slane %v3327_v31, 2  ;;  %v3335_v9 = vrot.slane %v3334_v33, 4  ;;  %v2286_v59 = vsel %vm1602_vm3, %v2205_v17, 0.0 }
 0x94f   :  { %v2391_v10 = vsel %vm1889_vm8, %v2266_v43, %v2390_v55  ;;  %v2343_v45 = vadd.f32 %v2342_v35, %v2341_v22  ;;  %v2287_v16 = vadd.f32 %v2286_v59, %v2285_v36  ;;  %v2337_v7 = vrot.slane %v2336_v11, 1 }
 0x950   :  { %v8857_v42 = vpop.permute.xlu0 %3221  ;;  %v2218_v17 = vmul.f32 %v8827_v63, %v9692_v41 }
 0x951   :  { %v2344_v0 = vrot.slane %v2343_v45, 2 }
 0x952   :  { %v6798_v32 = vpop.eup %6797  ;;  %v8864_v49 = vpop.permute.xlu1 %2188 }
 0x953   :  { %v8869_v44 = vmul.f32 %v6798_v32, %v8653_v1  ;;  %v2396_v1 = vsel %vm1885_vm6, %v2320_v50, %v2395_v38  ;;  %v9689_v38 = vld [vmem:[#allocation55_spill] sm:$0xff]  ;;  %v9690_v32 = vld [vmem:[#allocation52_spill] sm:$0xff]  ;;  %v2345_v59 = vadd.f32 %v2344_v0, %v2343_v45 }
 0x954   :  { %v6800_v14 = vpop.eup %6799  ;;  %v8871_v12 = vpop.permute.xlu0 %2184  ;;  %v3300_v2 = vmul.f32 %v8799_v29, %v9689_v38  ;;  %v3299_v50 = vmul.f32 %v9690_v32, %v8768_v28  ;;  %v8904_v5 = vsel %vm1887_vm7, %v2329_v20, %v2396_v1  ;;  %v9691_v29 = vld [vmem:[#allocation54_spill] sm:$0xff]  ;;  %v3336_v1 = vadd.f32 %v3335_v9, %v3334_v33 }
 0x955   :  { %v8877_v61 = vmul.f32 %v6800_v14, %v8657_v46  ;;  %v5381_v37 = vrot.slane %v8869_v44, %v7409_v25  ;;  %v2280_v46 = vadd.f32 %v2279_v30, %v2278_v57  ;;  %v5392_v3 = vrot.slane %v8869_v44, %v8441_v6 }
 0x956   :  { %v8882_v47 = vpop.permute.xlu1 %3159  ;;  %v3319_v57 = vrot.slane %v3318_v40, 2  ;;  %v3301_v13 = vmul.f32 %v9691_v29, %v8785_v34  ;;  %v3386_v14 = vsel %vm1602_vm3, %v3298_v27, 0.0  ;;  %v2275_v30 = vadd.f32 %v2274_v60, %v2273_v8  ;;  %v9693_v8 = vld [vmem:[#allocation43_spill] sm:$0xff]  ;;  %v9694_v27 = vld [vmem:[#allocation32_spill] sm:$0xff] }
 0x957   :  { %5383 = vbcast.lane.b32.xlu0 %v5381_v37, 256  ;;  %5387 = vbcast.lane.b32.xlu1 %v5381_v37, 264  ;;  %v2281_v51 = vrot.slane %v2280_v46, 2  ;;  %v3395_v58 = vsel %vm1602_vm3, %v3300_v2, 0.0  ;;  %v5403_v34 = vrot.slane %v8869_v44, %v8448_v56  ;;  %v3329_v37 = vadd.f32 %v3328_v39, %v3327_v31  ;;  %v9695_v2 = vld [vmem:[#allocation42_spill] sm:$0xff] }
 0x958   :  { %6712 = vmatprep.mubr.msk.f32.mxu0 %vm1991_vm12, %v8877_v61  ;;  %v8890_v48 = vpop.permute.xlu0 %3155  ;;  %v3320_v24 = vadd.f32 %v3319_v57, %v3318_v40  ;;  %v3387_v20 = vsel %vm1602_vm3, %v3299_v50, 0.0  ;;  %v3396_v43 = vsel %vm1602_vm3, %v3301_v13, 0.0  ;;  %v3288_v60 = vmul.f32 %v8842_v4, %v9693_v8 }
 0x959   :  { %6713 = vmatmul.mubr.msk.f32.vlgmr.msra.gmra.mxu0 %vm1991_vm12, %v8869_v44  ;;  %v3388_v22 = vadd.f32 %v3387_v20, %v3386_v14  ;;  %v2282_v35 = vadd.f32 %v2281_v51, %v2280_v46  ;;  %v3397_v40 = vadd.f32 %v3396_v43, %v3395_v58  ;;  %v2288_v31 = vrot.slane %v2287_v16, 4 }
 0x95a   :  { %v8901_v26 = vpop.permute.xlu1 %3236  ;;  %v2219_v38 = vmul.f32 %v9694_v27, %v8816_v21  ;;  %v3289_v36 = vmul.f32 %v9695_v2, %v8836_v18  ;;  %v5414_v63 = vrot.slane %v8869_v44, %v8458_v53  ;;  %v2338_v4 = vadd.f32 %v2337_v7, %v2336_v11  ;;  %v9696_v21 = vld [vmem:[#allocation57_spill] sm:$0xff]  ;;  %v9697_v7 = vld [vmem:[#allocation56_spill] sm:$0xff] }
 0x95b   :  { %5394 = vbcast.lane.b32.xlu0 %v5392_v3, 256  ;;  %5398 = vbcast.lane.b32.xlu1 %v5392_v3, 264  ;;  %v2392_v3 = vsel %vm1891_vm9, %v2275_v30, %v2391_v10  ;;  %v3321_v57 = vrot.slane %v3320_v24, 1  ;;  %v3330_v39 = vrot.slane %v3329_v37, 1  ;;  %v3337_v46 = vrot.slane %v3336_v1, 2 }
 0x95c   :  { %v8911_v28 = vpop.permute.xlu0 %3232  ;;  %v3389_v32 = vrot.slane %v3388_v22, 4  ;;  %v2348_v50 = vsel %vm1602_vm3, %v2218_v17, 0.0  ;;  %v3341_v29 = vsel %vm1602_vm3, %v3288_v60, 0.0  ;;  %v3302_v13 = vmul.f32 %v8857_v42, %v9696_v21  ;;  %v9698_v60 = vld [vmem:[#allocation70_spill] sm:$0xff] }
 0x95d   :  { %v2283_v18 = vrot.slane %v2282_v35, 1  ;;  %v3398_v51 = vrot.slane %v3397_v40, 4  ;;  %v2289_v10 = vadd.f32 %v2288_v31, %v2287_v16  ;;  %v2349_v14 = vsel %vm1602_vm3, %v2219_v38, 0.0 }
 0x95e   :  { %v8917_v55 = vpop.permute.xlu1 %3170  ;;  %v3342_v30 = vsel %vm1602_vm3, %v3289_v36, 0.0  ;;  %v3303_v58 = vmul.f32 %v9697_v7, %v8849_v23  ;;  %v3322_v20 = vadd.f32 %v3321_v57, %v3320_v24  ;;  %v3331_v42 = vadd.f32 %v3330_v39, %v3329_v37  ;;  %v9699_v23 = vld [vmem:[#allocation35_spill] sm:$0xff] }
 0x95f   :  { %5405 = vbcast.lane.b32.xlu0 %v5403_v34, 256  ;;  %5409 = vbcast.lane.b32.xlu1 %v5403_v34, 264  ;;  %v5425_v34 = vrot.slane %v8869_v44, %v8479_v62  ;;  %v2350_v43 = vadd.f32 %v2349_v14, %v2348_v50  ;;  %v3343_v41 = vadd.f32 %v3342_v30, %v3341_v29  ;;  %v3404_v16 = vsel %vm1602_vm3, %v3302_v13, 0.0 }
 0x960   :  { %v8924_v33 = vpop.permute.xlu0 %3166  ;;  %v3338_v45 = vadd.f32 %v3337_v46, %v3336_v1  ;;  %v3390_v8 = vadd.f32 %v3389_v32, %v3388_v22  ;;  %v2284_v31 = vadd.f32 %v2283_v18, %v2282_v35  ;;  %v3399_v27 = vadd.f32 %v3398_v51, %v3397_v40  ;;  %v9701_v32 = vld [vmem:[#allocation34_spill] sm:$0xff] }
 0x961   :  { %v2290_v38 = vrot.slane %v2289_v10, 2  ;;  %v2220_v2 = vmul.f32 %v8871_v12, %v9699_v23  ;;  %v2346_v24 = vrot.slane %v2345_v59, 1  ;;  %v3405_v37 = vsel %vm1602_vm3, %v3303_v58, 0.0 }
 0x962   :  { %v8933_v9 = vpop.permute.xlu1 %3247  ;;  %v5436_v1 = vrot.slane %v8869_v44, %v8489_v54  ;;  %v2351_v22 = vrot.slane %v2350_v43, 4  ;;  %v3344_v39 = vrot.slane %v3343_v41, 4  ;;  %v3406_v46 = vadd.f32 %v3405_v37, %v3404_v16 }
 0x963   :  { %5416 = vbcast.lane.b32.xlu0 %v5414_v63, 256  ;;  %5420 = vbcast.lane.b32.xlu1 %v5414_v63, 264  ;;  %v9700_v63 = vld [vmem:[#allocation71_spill] sm:$0xff]  ;;  %v2221_v35 = vmul.f32 %v9701_v32, %v8864_v49  ;;  %v3339_v50 = vrot.slane %v3338_v45, 1  ;;  %v3391_v29 = vrot.slane %v3390_v8, 2  ;;  %v3400_v13 = vrot.slane %v3399_v27, 2 }
 0x964   :  { %v8939_v11 = vpop.permute.xlu0 %3243  ;;  %v2291_v18 = vadd.f32 %v2290_v38, %v2289_v10  ;;  %v2357_v51 = vsel %vm1602_vm3, %v2220_v2, 0.0  ;;  %v8967_v49 = vsel %vm1883_vm5, %v3331_v42, %v3322_v20  ;;  %v5447_v7 = vrot.slane %v8869_v44, %v8596_v19  ;;  %v9702_v20 = vld [vmem:[#allocation45_spill] sm:$0xff] }
 0x965   :  { %v2393_v58 = vsel %vm1893_vm10, %v2284_v31, %v2392_v3  ;;  %v3345_v10 = vadd.f32 %v3344_v39, %v3343_v41  ;;  %v3407_v16 = vrot.slane %v3406_v46, 4  ;;  %v8977_v38 = vadd.f32 %v2346_v24, %v2345_v59  ;;  %v9704_v41 = vld [vmem:[#allocation59_spill] sm:$0xff] }
 0x966   :  { %v4208_v17 = vpop.permute.xlu1 %4207  ;;  %v3290_v42 = vmul.f32 %v8890_v48, %v9702_v20  ;;  %v3340_v2 = vadd.f32 %v3339_v50, %v3338_v45  ;;  %v3392_v3 = vadd.f32 %v3391_v29, %v3390_v8  ;;  %v3401_v31 = vadd.f32 %v3400_v13, %v3399_v27  ;;  %v9706_v45 = vld [vmem:[#allocation49_spill] sm:$0xff]  ;;  %v9709_v29 = vld [vmem:[#allocation48_spill] sm:$0xff] }
 0x967   :  { %v4375_v0 = vmul.f32 %v9698_v60, %v4208_v17  ;;  %5427 = vbcast.lane.b32.xlu0 %v5425_v34, 256  ;;  %5431 = vbcast.lane.b32.xlu1 %v5425_v34, 264  ;;  %v8974_v34 = vsel %vm1889_vm8, %v2338_v4, %v8904_v5  ;;  %v2352_v17 = vadd.f32 %v2351_v22, %v2350_v43  ;;  %v2358_v60 = vsel %vm1602_vm3, %v2221_v35, 0.0  ;;  %v9703_v4 = vld [vmem:[#allocation44_spill] sm:$0xff] }
 0x968   :  { %v4204_v36 = vpop.permute.xlu0 %4203  ;;  %v2359_v23 = vadd.f32 %v2358_v60, %v2357_v51  ;;  %v3291_v43 = vmul.f32 %v9703_v4, %v8882_v47  ;;  %v3304_v37 = vmul.f32 %v8911_v28, %v9704_v41  ;;  %v5293_v24 = vrot.slane %v8877_v61, %v7409_v25  ;;  %v9707_v47 = vld [vmem:[#allocation58_spill] sm:$0xff] }
 0x969   :  { %v4374_v57 = vmul.f32 %v4204_v36, %v9700_v63  ;;  %v4407_v12 = vsel %vm1602_vm3, %v4375_v0, 0.0  ;;  %v2292_v36 = vrot.slane %v2291_v18, 1  ;;  %v9705_v63 = vld [vmem:[#allocation47_spill] sm:$0xff]  ;;  %v2353_v48 = vrot.slane %v2352_v17, 2  ;;  %v9708_v28 = vld [vmem:[#allocation46_spill] sm:$0xff] }
 0x96a   :  { %v8957_v40 = vpop.permute.xlu1 %4218  ;;  %v3292_v59 = vmul.f32 %v8924_v33, %v9705_v63  ;;  %v2360_v22 = vrot.slane %v2359_v23, 4  ;;  %v3350_v39 = vsel %vm1602_vm3, %v3290_v42, 0.0  ;;  %v3305_v32 = vmul.f32 %v9707_v47, %v8901_v26 }
 0x96b   :  { %v4406_v21 = vsel %vm1602_vm3, %v4374_v57, 0.0  ;;  %5438 = vbcast.lane.b32.xlu0 %v5436_v1, 256  ;;  %5442 = vbcast.lane.b32.xlu1 %v5436_v1, 264  ;;  %v3346_v57 = vrot.slane %v3345_v10, 2  ;;  %v3408_v1 = vadd.f32 %v3407_v16, %v3406_v46  ;;  %v3293_v35 = vmul.f32 %v9708_v28, %v8917_v55 }
 0x96c   :  { %v8962_v14 = vadd.f32 %v4407_v12, %v4406_v21  ;;  %v8964_v30 = vpop.permute.xlu0 %4214  ;;  %v3393_v33 = vrot.slane %v3392_v3, 1  ;;  %v3402_v25 = vrot.slane %v3401_v31, 1  ;;  %v2293_v50 = vadd.f32 %v2292_v36, %v2291_v18 }
 0x96d   :  { %v3351_v21 = vsel %vm1602_vm3, %v3291_v43, 0.0  ;;  %v3413_v13 = vsel %vm1602_vm3, %v3304_v37, 0.0  ;;  %v3359_v51 = vsel %vm1602_vm3, %v3292_v59, 0.0  ;;  %v5304_v26 = vrot.slane %v8877_v61, %v8441_v6  ;;  %v9710_v43 = vld [vmem:[#allocation61_spill] sm:$0xff] }
 0x96e   :  { %v3182_v0 = vpop.permute.xlu1 %3181  ;;  %v3409_v16 = vrot.slane %v3408_v1, 2  ;;  %v3352_v55 = vadd.f32 %v3351_v21, %v3350_v39  ;;  %v2354_v18 = vadd.f32 %v2353_v48, %v2352_v17  ;;  %v2361_v42 = vadd.f32 %v2360_v22, %v2359_v23  ;;  %v9714_v21 = vld [vmem:[#allocation63_spill] sm:$0xff] }
 0x96f   :  { %5449 = vbcast.lane.b32.xlu0 %v5447_v7, 256  ;;  %5453 = vbcast.lane.b32.xlu1 %v5447_v7, 264  ;;  %v3295_v46 = vmul.f32 %v9709_v29, %v3182_v0  ;;  %v3347_v7 = vadd.f32 %v3346_v57, %v3345_v10  ;;  %v3414_v0 = vsel %vm1602_vm3, %v3305_v32, 0.0  ;;  %v3360_v36 = vsel %vm1602_vm3, %v3293_v35, 0.0  ;;  %v9711_v57 = vld [vmem:[#allocation60_spill] sm:$0xff]  ;;  %v9713_v29 = vld [vmem:[#allocation73_spill] sm:$0xff] }
 0x970   :  { %v3178_v5 = vpop.permute.xlu0 %3177  ;;  %v3361_v4 = vadd.f32 %v3360_v36, %v3359_v51  ;;  %v3306_v6 = vmul.f32 %v8939_v11, %v9710_v43  ;;  %v3403_v37 = vadd.f32 %v3402_v25, %v3401_v31  ;;  %v5315_v17 = vrot.slane %v8877_v61, %v8448_v56  ;;  %v9716_v36 = vld [vmem:[#allocation62_spill] sm:$0xff] }
 0x971   :  { %v3294_v8 = vmul.f32 %v3178_v5, %v9706_v45  ;;  %v3415_v5 = vadd.f32 %v3414_v0, %v3413_v13  ;;  %v3369_v10 = vsel %vm1602_vm3, %v3295_v46, 0.0  ;;  %v2394_v23 = vsel %vm1895_vm11, %v2293_v50, %v2393_v58 }
 0x972   :  { %v8990_v27 = vpop.permute.xlu1 %3258  ;;  %v3348_v59 = vrot.slane %v3347_v7, 1  ;;  %v3353_v48 = vrot.slane %v3352_v55, 4  ;;  %v3307_v45 = vmul.f32 %v9711_v57, %v8933_v9  ;;  %v3481_v11 = vsel %vm1885_vm6, %v3340_v2, %v8967_v49  ;;  %v9712_v2 = vld [vmem:[#allocation69_spill] sm:$0xff]  ;;  %v9718_v57 = vld [vmem:[#allocation51_spill] sm:$0xff] }
 0x973   :  { %5299 = vbcast.lane.b32.xlu1 %v5293_v24, 264  ;;  %5295 = vbcast.lane.b32.xlu0 %v5293_v24, 256  ;;  %v3368_v60 = vsel %vm1602_vm3, %v3294_v8, 0.0  ;;  %v3410_v24 = vadd.f32 %v3409_v16, %v3408_v1  ;;  %v3394_v22 = vadd.f32 %v3393_v33, %v3392_v3  ;;  %v2355_v39 = vrot.slane %v2354_v18, 1 }
 0x974   :  { %v3255_v12 = vpop.permute.xlu0 %3254  ;;  %v3370_v63 = vadd.f32 %v3369_v10, %v3368_v60  ;;  %v9025_v56 = vsel %vm1891_vm9, %v8977_v38, %v8974_v34  ;;  %v2362_v58 = vrot.slane %v2361_v42, 2  ;;  %v3416_v31 = vrot.slane %v3415_v5, 4 }
 0x975   :  { %v3362_v1 = vrot.slane %v3361_v4, 4  ;;  %v3422_v47 = vsel %vm1602_vm3, %v3306_v6, 0.0  ;;  %v3487_v32 = vsel %vm1883_vm5, %v3403_v37, %v3394_v22  ;;  %v5326_v49 = vrot.slane %v8877_v61, %v8458_v53  ;;  %v9717_v37 = vld [vmem:[#allocation50_spill] sm:$0xff] }
 0x976   :  { %v9004_v20 = vpop.permute.xlu1 %4229  ;;  %v3371_v28 = vrot.slane %v3370_v63, 4  ;;  %v9034_v3 = vadd.f32 %v9712_v2, %v2394_v23  ;;  %v3349_v35 = vadd.f32 %v3348_v59, %v3347_v7  ;;  %v3411_v33 = vrot.slane %v3410_v24, 1  ;;  %v9715_v7 = vld [vmem:[#allocation72_spill] sm:$0xff] }
 0x977   :  { %5310 = vbcast.lane.b32.xlu1 %v5304_v26, 264  ;;  %5306 = vbcast.lane.b32.xlu0 %v5304_v26, 256  ;;  %v3354_v34 = vadd.f32 %v3353_v48, %v3352_v55  ;;  %v3423_v38 = vsel %vm1602_vm3, %v3307_v45, 0.0  ;;  %v4376_v46 = vmul.f32 %v8964_v30, %v9713_v29  ;;  %v3308_v13 = vmul.f32 %v3255_v12, %v9714_v21 }
 0x978   :  { %v9011_v41 = vpop.permute.xlu0 %4225  ;;  %v3424_v50 = vadd.f32 %v3423_v38, %v3422_v47  ;;  %v2356_v51 = vadd.f32 %v2355_v39, %v2354_v18  ;;  %v2363_v53 = vadd.f32 %v2362_v58, %v2361_v42  ;;  %v3417_v26 = vadd.f32 %v3416_v31, %v3415_v5 }
 0x979   :  { %v3363_v16 = vadd.f32 %v3362_v1, %v3361_v4  ;;  %v4377_v55 = vmul.f32 %v9715_v7, %v8957_v40  ;;  %v3372_v0 = vadd.f32 %v3371_v28, %v3370_v63  ;;  %v3309_v43 = vmul.f32 %v9716_v36, %v8990_v27 }
 0x97a   :  { %v9018_v8 = vpop.permute.xlu1 %4295  ;;  %v5337_v30 = vrot.slane %v8877_v61, %v8479_v62  ;;  %v9051_v12 = vsel %vm1887_vm7, %v3349_v35, %v3481_v11  ;;  %v3412_v6 = vadd.f32 %v3411_v33, %v3410_v24  ;;  %v3355_v18 = vrot.slane %v3354_v34, 2 }
 0x97b   :  { %5321 = vbcast.lane.b32.xlu1 %v5315_v17, 264  ;;  %5317 = vbcast.lane.b32.xlu0 %v5315_v17, 256  ;;  %v5348_v5 = vrot.slane %v8877_v61, %v8489_v54  ;;  %v3425_v4 = vrot.slane %v3424_v50, 4  ;;  %v4415_v10 = vsel %vm1602_vm3, %v4376_v46, 0.0  ;;  %v3431_v40 = vsel %vm1602_vm3, %v3308_v13, 0.0 }
 0x97c   :  { %v9028_v9 = vpop.permute.xlu0 %4291  ;;  %v2364_v27 = vrot.slane %v2363_v53, 1  ;;  %v3418_v62 = vrot.slane %v3417_v26, 2  ;;  %v3364_v17 = vrot.slane %v3363_v16, 2  ;;  %v5359_v59 = vrot.slane %v8877_v61, %v8596_v19  ;;  %v9719_v19 = vld [vmem:[#allocation64_spill] sm:$0xff] }
 0x97d   :  { %v4416_v24 = vsel %vm1602_vm3, %v4377_v55, 0.0  ;;  %v3373_v48 = vrot.slane %v3372_v0, 2  ;;  %v3432_v54 = vsel %vm1602_vm3, %v3309_v43, 0.0  ;;  %v3356_v11 = vadd.f32 %v3355_v18, %v3354_v34 }
 0x97e   :  { %v9037_v25 = vpop.permute.xlu1 %4306  ;;  %v4417_v22 = vadd.f32 %v4416_v24, %v4415_v10  ;;  %v3433_v39 = vadd.f32 %v3432_v54, %v3431_v40  ;;  %v5370_v31 = vrot.slane %v8877_v61, %v8609_v52  ;;  %v3426_v1 = vadd.f32 %v3425_v4, %v3424_v50  ;;  %v9720_v50 = vld [vmem:[#allocation65_spill] sm:$0xff]  ;;  %v9721_v10 = vld [vmem:[#allocation75_spill] sm:$0xff] }
 0x97f   :  { %5332 = vbcast.lane.b32.xlu1 %v5326_v49, 264  ;;  %5328 = vbcast.lane.b32.xlu0 %v5326_v49, 256  ;;  %v9069_v2 = vsel %vm1885_vm6, %v3412_v6, %v3487_v32  ;;  %v3365_v35 = vadd.f32 %v3364_v17, %v3363_v16  ;;  %v4409_v33 = vrot.slane %v8962_v14, 4  ;;  %v2365_v29 = vadd.f32 %v2364_v27, %v2363_v53 }
 0x980   :  { %v9042_v60 = vpop.permute.xlu0 %4302  ;;  %v3419_v46 = vadd.f32 %v3418_v62, %v3417_v26  ;;  %v3374_v61 = vadd.f32 %v3373_v48, %v3372_v0  ;;  %v4418_v13 = vrot.slane %v4417_v22, 4  ;;  %v3434_v7 = vrot.slane %v3433_v39, 4 }
 0x981   :  { %v2400_v43 = vsel %vm1893_vm10, %v2356_v51, %v9025_v56  ;;  %v3427_v32 = vrot.slane %v3426_v1, 2  ;;  %v3366_v53 = vrot.slane %v3365_v35, 1  ;;  %v4410_v26 = vadd.f32 %v4409_v33, %v8962_v14  ;;  %v9722_v14 = vld [vmem:[#allocation74_spill] sm:$0xff] }
 0x982   :  { %v3193_v42 = vpop.permute.xlu1 %3192  ;;  %v3375_v4 = vrot.slane %v3374_v61, 1  ;;  %v4378_v40 = vmul.f32 %v9011_v41, %v9721_v10  ;;  %v2401_v56 = vsel %vm1895_vm11, %v2365_v29, %v2400_v43  ;;  %v4419_v51 = vadd.f32 %v4418_v13, %v4417_v22  ;;  %v9724_v33 = vld [vmem:[#allocation66_spill] sm:$0xff]  ;;  %v9726_v13 = vld [vmem:[#allocation67_spill] sm:$0xff] }
 0x983   :  { %v3297_v63 = vmul.f32 %v9717_v37, %v3193_v42  ;;  %5343 = vbcast.lane.b32.xlu1 %v5337_v30, 264  ;;  %5339 = vbcast.lane.b32.xlu0 %v5337_v30, 256  ;;  %v3357_v30 = vrot.slane %v3356_v11, 1  ;;  %v3435_v37 = vadd.f32 %v3434_v7, %v3433_v39  ;;  %v3367_v24 = vadd.f32 %v3366_v53, %v3365_v35 }
 0x984   :  { %v3189_v23 = vpop.permute.xlu0 %3188  ;;  %v4411_v48 = vrot.slane %v4410_v26, 2  ;;  %v5458_v41 = vrot.slane %v8869_v44, %v8609_v52  ;;  %v4424_v22 = vsel %vm1602_vm3, %v4378_v40, 0.0 }
 0x985   :  { %v3296_v45 = vmul.f32 %v3189_v23, %v9718_v57  ;;  %v3378_v47 = vsel %vm1602_vm3, %v3297_v63, 0.0  ;;  %v3358_v17 = vadd.f32 %v3357_v30, %v3356_v11  ;;  %v3428_v23 = vadd.f32 %v3427_v32, %v3426_v1 }
 0x986   :  { %v3270_v58 = vpop.permute.xlu1 %3269  ;;  %v4412_v52 = vadd.f32 %v4411_v48, %v4410_v26  ;;  %v9728_v26 = vld [vmem:[#allocation76_spill] sm:$0xff] }
 0x987   :  { %v3377_v28 = vsel %vm1602_vm3, %v3296_v45, 0.0  ;;  %v3311_v49 = vmul.f32 %v9719_v19, %v3270_v58  ;;  %5354 = vbcast.lane.b32.xlu1 %v5348_v5, 264  ;;  %5350 = vbcast.lane.b32.xlu0 %v5348_v5, 256  ;;  %v3420_v5 = vrot.slane %v3419_v46, 1  ;;  %v3376_v45 = vadd.f32 %v3375_v4, %v3374_v61  ;;  %v9723_v58 = vld [vmem:[#allocation68_spill] sm:$0xff]  ;;  %v9729_v4 = vld [vmem:[#allocation86_spill] sm:$0xff] }
 0x988   :  { %v3379_v34 = vadd.f32 %v3378_v47, %v3377_v28  ;;  %v3266_v38 = vpop.permute.xlu0 %3265  ;;  %v2482_v11 = vadd.f32 %v9723_v58, %v2401_v56  ;;  %v4420_v47 = vrot.slane %v4419_v51, 2  ;;  %v3436_v28 = vrot.slane %v3435_v37, 2  ;;  %v9732_v48 = vld [vmem:[#allocation88_spill] sm:$0xff] }
 0x989   :  { %v3310_v21 = vmul.f32 %v3266_v38, %v9720_v50  ;;  %v3441_v16 = vsel %vm1602_vm3, %v3311_v49, 0.0  ;;  %v3421_v1 = vadd.f32 %v3420_v5, %v3419_v46  ;;  %v3429_v49 = vrot.slane %v3428_v23, 1  ;;  %v9725_v50 = vld [vmem:[#allocation77_spill] sm:$0xff] }
 0x98a   :  { %v3380_v55 = vrot.slane %v3379_v34, 4  ;;  %v4241_v36 = vpop.permute.xlu1 %4240  ;;  %v4421_v43 = vadd.f32 %v4420_v47, %v4419_v51  ;;  %v3437_v30 = vadd.f32 %v3436_v28, %v3435_v37  ;;  %v4413_v5 = vrot.slane %v4412_v52, 1  ;;  %v9730_v37 = vld [vmem:[#allocation103_spill] sm:$0xff] }
 0x98b   :  { %v3440_v6 = vsel %vm1602_vm3, %v3310_v21, 0.0  ;;  %5365 = vbcast.lane.b32.xlu1 %v5359_v59, 264  ;;  %5361 = vbcast.lane.b32.xlu0 %v5359_v59, 256  ;;  %v4379_v59 = vmul.f32 %v9722_v14, %v9004_v20  ;;  %v4391_v10 = vmul.f32 %v9729_v4, %v9018_v8  ;;  %v9733_v8 = vld [vmem:[#allocation89_spill] sm:$0xff] }
 0x98c   :  { %v3381_v0 = vadd.f32 %v3380_v55, %v3379_v34  ;;  %v3442_v18 = vadd.f32 %v3441_v16, %v3440_v6  ;;  %v4237_v42 = vpop.permute.xlu0 %4236  ;;  %v3489_v55 = vsel %vm1887_vm7, %v3421_v1, %v9069_v2  ;;  %v9727_v6 = vld [vmem:[#allocation87_spill] sm:$0xff]  ;;  %v3430_v2 = vadd.f32 %v3429_v49, %v3428_v23 }
 0x98d   :  { %v4425_v35 = vsel %vm1602_vm3, %v4379_v59, 0.0  ;;  %v4380_v21 = vmul.f32 %v4237_v42, %v9725_v50  ;;  %v4390_v53 = vmul.f32 %v9028_v9, %v9727_v6  ;;  %v9731_v59 = vld [vmem:[#allocation79_spill] sm:$0xff]  ;;  %v9124_v28 = vadd.f32 %v4413_v5, %v4412_v52 }
 0x98e   :  { %v3382_v63 = vrot.slane %v3381_v0, 2  ;;  %v3443_v27 = vrot.slane %v3442_v18, 4  ;;  %v9081_v62 = vpop.permute.xlu1 %4317  ;;  %v4426_v44 = vadd.f32 %v4425_v35, %v4424_v22  ;;  %v3490_v22 = vsel %vm1889_vm8, %v3430_v2, %v3489_v55  ;;  %v9736_v52 = vld [vmem:[#allocation91_spill] sm:$0xff]  ;;  %v9739_v2 = vld [vmem:[#allocation93_spill] sm:$0xff] }
 0x98f   :  { %5376 = vbcast.lane.b32.xlu1 %v5370_v31, 264  ;;  %5372 = vbcast.lane.b32.xlu0 %v5370_v31, 256  ;;  %v3483_v31 = vsel %vm1889_vm8, %v3358_v17, %v9051_v12  ;;  %v3438_v17 = vrot.slane %v3437_v30, 1  ;;  %v4478_v23 = vsel %vm1602_vm3, %v4390_v53, 0.0 }
 0x990   :  { %v3383_v54 = vadd.f32 %v3382_v63, %v3381_v0  ;;  %v9085_v57 = vpop.permute.xlu0 %4313  ;;  %v3444_v39 = vadd.f32 %v3443_v27, %v3442_v18  ;;  %v3484_v46 = vsel %vm1891_vm9, %v3367_v24, %v3483_v31  ;;  %v4381_v0 = vmul.f32 %v9728_v26, %v4241_v36 }
 0x991   :  { %v3485_v12 = vsel %vm1893_vm10, %v3376_v45, %v3484_v46  ;;  %v4427_v51 = vrot.slane %v4426_v44, 4  ;;  %v4433_v36 = vsel %vm1602_vm3, %v4380_v21, 0.0  ;;  %v4422_v27 = vrot.slane %v4421_v43, 1  ;;  %v9735_v46 = vld [vmem:[#allocation80_spill] sm:$0xff] }
 0x992   :  { %v3384_v20 = vrot.slane %v3383_v54, 1  ;;  %v3281_v19 = vpop.permute.xlu1 %3280  ;;  %v3445_v61 = vrot.slane %v3444_v39, 2  ;;  %v4434_v45 = vsel %vm1602_vm3, %v4381_v0, 0.0  ;;  %v3439_v31 = vadd.f32 %v3438_v17, %v3437_v30 }
 0x993   :  { %v3313_v34 = vmul.f32 %v9724_v33, %v3281_v19  ;;  %5464 = vbcast.lane.b32.xlu1 %v5458_v41, 264  ;;  %5460 = vbcast.lane.b32.xlu0 %v5458_v41, 256  ;;  %v4392_v41 = vmul.f32 %v9042_v60, %v9733_v8  ;;  %v4479_v19 = vsel %vm1602_vm3, %v4391_v10, 0.0 }
 0x994   :  { %v3385_v38 = vadd.f32 %v3384_v20, %v3383_v54  ;;  %v3277_v29 = vpop.permute.xlu0 %3276  ;;  %v3446_v9 = vadd.f32 %v3445_v61, %v3444_v39  ;;  %v4393_v54 = vmul.f32 %v9732_v48, %v9037_v25  ;;  %v4435_v39 = vadd.f32 %v4434_v45, %v4433_v36  ;;  %v9743_v45 = vld [vmem:[#allocation82_spill] sm:$0xff] }
 0x995   :  { %v3312_v7 = vmul.f32 %v3277_v29, %v9726_v13  ;;  %v3450_v18 = vsel %vm1602_vm3, %v3313_v34, 0.0  ;;  %v4428_v20 = vadd.f32 %v4427_v51, %v4426_v44  ;;  %v4480_v49 = vadd.f32 %v4479_v19, %v4478_v23 }
 0x996   :  { %v4252_v32 = vpop.permute.xlu1 %4251  ;;  %v3486_v16 = vsel %vm1895_vm11, %v3385_v38, %v3485_v12  ;;  %v3447_v25 = vrot.slane %v3446_v9, 1  ;;  %v4423_v34 = vadd.f32 %v4422_v27, %v4421_v43  ;;  %v4488_v38 = vsel %vm1602_vm3, %v4393_v54, 0.0  ;;  %v9741_v27 = vld [vmem:[#allocation95_spill] sm:$0xff] }
 0x997   :  { %v3449_v42 = vsel %vm1602_vm3, %v3312_v7, 0.0  ;;  %2487 = vrot.lane.b32.xlu0 %v9034_v3, %s6802_s9  ;;  %2489 = vrot.lane.b32.xlu1 %v2482_v11, %s6802_s9  ;;  %v3569_v63 = vadd.f32 %v9730_v37, %v3486_v16  ;;  %v9734_v11 = vld [vmem:[#allocation78_spill] sm:$0xff]  ;;  %v4487_v29 = vsel %vm1602_vm3, %v4392_v41, 0.0  ;;  %v4436_v50 = vrot.slane %v4435_v39, 4  ;;  %v9740_v37 = vld [vmem:[#allocation92_spill] sm:$0xff] }
 0x998   :  { %v3451_v40 = vadd.f32 %v3450_v18, %v3449_v42  ;;  %v4248_v56 = vpop.permute.xlu0 %4247  ;;  %v4383_v1 = vmul.f32 %v9734_v11, %v4252_v32  ;;  %v4394_v44 = vmul.f32 %v9085_v57, %v9736_v52  ;;  %v4429_v12 = vrot.slane %v4428_v20, 2  ;;  %v9737_v32 = vld [vmem:[#allocation81_spill] sm:$0xff]  ;;  %v9738_v18 = vld [vmem:[#allocation90_spill] sm:$0xff] }
 0x999   :  { %v4382_v3 = vmul.f32 %v4248_v56, %v9731_v59  ;;  %v3448_v55 = vadd.f32 %v3447_v25, %v3446_v9  ;;  %v4481_v43 = vrot.slane %v4480_v49, 4  ;;  %v4489_v6 = vadd.f32 %v4488_v38, %v4487_v29 }
 0x99a   :  { %v3452_v14 = vrot.slane %v3451_v40, 4  ;;  %v4329_v24 = vpop.permute.xlu1 %4328  ;;  %v4443_v13 = vsel %vm1602_vm3, %v4383_v1, 0.0  ;;  %v3491_v0 = vsel %vm1891_vm9, %v3439_v31, %v3490_v22  ;;  %v4395_v42 = vmul.f32 %v9738_v18, %v9081_v62 }
 0x99b   :  { %3579 = vrot.lane.b32.xlu0 %v3569_v63, %s6802_s9  ;;  %v4442_v35 = vsel %vm1602_vm3, %v4382_v3, 0.0  ;;  %v4437_v10 = vadd.f32 %v4436_v50, %v4435_v39  ;;  %v4397_v63 = vmul.f32 %v9740_v37, %v4329_v24  ;;  %v4430_v62 = vadd.f32 %v4429_v12, %v4428_v20  ;;  %v9742_v3 = vld [vmem:[#allocation94_spill] sm:$0xff] }
 0x99c   :  { %v3453_v58 = vadd.f32 %v3452_v14, %v3451_v40  ;;  %v4325_v47 = vpop.permute.xlu0 %4324  ;;  %v4444_v30 = vadd.f32 %v4443_v13, %v4442_v35  ;;  %v4496_v40 = vsel %vm1602_vm3, %v4394_v44, 0.0  ;;  %v3492_v14 = vsel %vm1893_vm10, %v3448_v55, %v3491_v0  ;;  %v9744_v39 = vld [vmem:[#allocation102_spill] sm:$0xff]  ;;  %v9746_v44 = vld [vmem:[#allocation96_spill] sm:$0xff] }
 0x99d   :  { %v4396_v57 = vmul.f32 %v4325_v47, %v9739_v2  ;;  %v4497_v8 = vsel %vm1602_vm3, %v4395_v42, 0.0  ;;  %v4482_v24 = vadd.f32 %v4481_v43, %v4480_v49  ;;  %v4490_v11 = vrot.slane %v4489_v6, 4 }
 0x99e   :  { %v3454_v60 = vrot.slane %v3453_v58, 2  ;;  %v4263_v33 = vpop.permute.xlu1 %4262  ;;  %v4445_v36 = vrot.slane %v4444_v30, 4  ;;  %v4498_v1 = vadd.f32 %v4497_v8, %v4496_v40  ;;  %v4438_v19 = vrot.slane %v4437_v10, 2 }
 0x99f   :  { %v4385_v61 = vmul.f32 %v9735_v46, %v4263_v33  ;;  %v4505_v41 = vsel %vm1602_vm3, %v4396_v57, 0.0  ;;  %v4506_v31 = vsel %vm1602_vm3, %v4397_v63, 0.0  ;;  %v4431_v33 = vrot.slane %v4430_v62, 1 }
 0x9a0   :  { %v3455_v21 = vadd.f32 %v3454_v60, %v3453_v58  ;;  %v4259_v7 = vpop.permute.xlu0 %4258  ;;  %v4446_v25 = vadd.f32 %v4445_v36, %v4444_v30  ;;  %v9745_v60 = vld [vmem:[#allocation83_spill] sm:$0xff]  ;;  %v4507_v38 = vadd.f32 %v4506_v31, %v4505_v41  ;;  %v4572_v13 = vsel %vm1883_vm5, %v4423_v34, %v9124_v28  ;;  %v9748_v28 = vld [vmem:[#allocation84_spill] sm:$0xff]  ;;  %v9750_v41 = vld [vmem:[#allocation98_spill] sm:$0xff] }
 0x9a1   :  { %v4384_v16 = vmul.f32 %v4259_v7, %v9737_v32  ;;  %v4452_v5 = vsel %vm1602_vm3, %v4385_v61, 0.0  ;;  %v4483_v7 = vrot.slane %v4482_v24, 2  ;;  %v4491_v12 = vadd.f32 %v4490_v11, %v4489_v6 }
 0x9a2   :  { %v3456_v53 = vrot.slane %v3455_v21, 1  ;;  %v4340_v26 = vpop.permute.xlu1 %4339  ;;  %v4439_v32 = vadd.f32 %v4438_v19, %v4437_v10  ;;  %v4447_v43 = vrot.slane %v4446_v25, 2  ;;  %v4432_v0 = vadd.f32 %v4431_v33, %v4430_v62  ;;  %v9751_v19 = vld [vmem:[#allocation99_spill] sm:$0xff] }
 0x9a3   :  { %v4451_v4 = vsel %vm1602_vm3, %v4384_v16, 0.0  ;;  %v4399_v23 = vmul.f32 %v9742_v3, %v4340_v26  ;;  %v4499_v16 = vrot.slane %v4498_v1, 4  ;;  %v4508_v18 = vrot.slane %v4507_v38, 4 }
 0x9a4   :  { %v3457_v56 = vadd.f32 %v3456_v53, %v3455_v21  ;;  %v4453_v51 = vadd.f32 %v4452_v5, %v4451_v4  ;;  %v4336_v9 = vpop.permute.xlu0 %4335  ;;  %v9747_v53 = vld [vmem:[#allocation97_spill] sm:$0xff]  ;;  %v9165_v6 = vadd.f32 %v4483_v7, %v4482_v24  ;;  %v4440_v36 = vrot.slane %v4439_v32, 1 }
 0x9a5   :  { %v4398_v17 = vmul.f32 %v4336_v9, %v9741_v27  ;;  %v4515_v46 = vsel %vm1602_vm3, %v4399_v23, 0.0  ;;  %v4500_v37 = vadd.f32 %v4499_v16, %v4498_v1  ;;  %v4448_v63 = vadd.f32 %v4447_v43, %v4446_v25  ;;  %v9749_v27 = vld [vmem:[#allocation85_spill] sm:$0xff] }
 0x9a6   :  { %v4454_v59 = vrot.slane %v4453_v51, 4  ;;  %v4274_v48 = vpop.permute.xlu1 %4273  ;;  %v3493_v54 = vsel %vm1895_vm11, %v3457_v56, %v3492_v14  ;;  %v4492_v56 = vrot.slane %v4491_v12, 2  ;;  %v4509_v14 = vadd.f32 %v4508_v18, %v4507_v38 }
 0x9a7   :  { %v4387_v22 = vmul.f32 %v9743_v45, %v4274_v48  ;;  %v3574_v58 = vadd.f32 %v9744_v39, %v3493_v54  ;;  %v4514_v47 = vsel %vm1602_vm3, %v4398_v17, 0.0  ;;  %v4501_v1 = vrot.slane %v4500_v37, 2 }
 0x9a8   :  { %v4270_v20 = vpop.permute.xlu0 %4269  ;;  %v4455_v29 = vadd.f32 %v4454_v59, %v4453_v51  ;;  %v4516_v49 = vadd.f32 %v4515_v46, %v4514_v47  ;;  %v4493_v39 = vadd.f32 %v4492_v56, %v4491_v12  ;;  %v4449_v47 = vrot.slane %v4448_v63, 1 }
 0x9a9   :  { %v4386_v35 = vmul.f32 %v4270_v20, %v9745_v60  ;;  %3581 = vrot.lane.b32.xlu1 %v3574_v58, %s6802_s9  ;;  %v4461_v50 = vsel %vm1602_vm3, %v4387_v22, 0.0  ;;  %v4573_v22 = vsel %vm1885_vm6, %v4432_v0, %v4572_v13  ;;  %v4441_v31 = vadd.f32 %v4440_v36, %v4439_v32  ;;  %v9753_v32 = vld [vmem:[#allocation101_spill] sm:$0xff] }
 0x9aa   :  { %v4351_v61 = vpop.permute.xlu1 %4350  ;;  %v4456_v42 = vrot.slane %v4455_v29, 2  ;;  %v4517_v5 = vrot.slane %v4516_v49, 4  ;;  %v4510_v60 = vrot.slane %v4509_v14, 2  ;;  %v4502_v12 = vadd.f32 %v4501_v1, %v4500_v37 }
 0x9ab   :  { %v4460_v52 = vsel %vm1602_vm3, %v4386_v35, 0.0  ;;  %v4401_v21 = vmul.f32 %v9746_v44, %v4351_v61  ;;  %v4574_v43 = vsel %vm1887_vm7, %v4441_v31, %v4573_v22 }
 0x9ac   :  { %v4462_v55 = vadd.f32 %v4461_v50, %v4460_v52  ;;  %v4347_v30 = vpop.permute.xlu0 %4346  ;;  %v4457_v62 = vadd.f32 %v4456_v42, %v4455_v29  ;;  %v4518_v48 = vadd.f32 %v4517_v5, %v4516_v49  ;;  %v9752_v49 = vld [vmem:[#allocation100_spill] sm:$0xff]  ;;  %v4494_v52 = vrot.slane %v4493_v39, 1 }
 0x9ad   :  { %v4400_v26 = vmul.f32 %v4347_v30, %v9747_v53  ;;  %v4524_v4 = vsel %vm1602_vm3, %v4401_v21, 0.0  ;;  %v4511_v53 = vadd.f32 %v4510_v60, %v4509_v14  ;;  %v4503_v56 = vrot.slane %v4502_v12, 1 }
 0x9ae   :  { %v4463_v2 = vrot.slane %v4462_v55, 4  ;;  %v4285_v57 = vpop.permute.xlu1 %4284  ;;  %v4458_v35 = vrot.slane %v4457_v62, 1  ;;  %v4519_v29 = vrot.slane %v4518_v48, 2 }
 0x9af   :  { %v4523_v40 = vsel %vm1602_vm3, %v4400_v26, 0.0  ;;  %v4389_v34 = vmul.f32 %v9748_v28, %v4285_v57 }
 0x9b0   :  { %v4464_v10 = vadd.f32 %v4463_v2, %v4462_v55  ;;  %v4525_v51 = vadd.f32 %v4524_v4, %v4523_v40  ;;  %v4281_v9 = vpop.permute.xlu0 %4280  ;;  %v4450_v55 = vadd.f32 %v4449_v47, %v4448_v63  ;;  %v4459_v18 = vadd.f32 %v4458_v35, %v4457_v62 }
 0x9b1   :  { %v4388_v17 = vmul.f32 %v4281_v9, %v9749_v27  ;;  %v4470_v54 = vsel %vm1602_vm3, %v4389_v34, 0.0  ;;  %v4520_v42 = vadd.f32 %v4519_v29, %v4518_v48  ;;  %v4485_v34 = vrot.slane %v9165_v6, 1 }
 0x9b2   :  { %v4465_v59 = vrot.slane %v4464_v10, 2  ;;  %v4526_v3 = vrot.slane %v4525_v51, 4  ;;  %v4362_v23 = vpop.permute.xlu1 %4361  ;;  %v4512_v9 = vrot.slane %v4511_v53, 1  ;;  %v4495_v27 = vadd.f32 %v4494_v52, %v4493_v39  ;;  %v19_v39 = vld [vmem:[%s9389_s2 + $0x28] sm:$0xff] }
 0x9b3   :  { %v4469_v8 = vsel %vm1602_vm3, %v4388_v17, 0.0  ;;  %v4403_v45 = vmul.f32 %v9750_v41, %v4362_v23  ;;  %v4521_v17 = vrot.slane %v4520_v42, 1  ;;  %v4486_v48 = vadd.f32 %v4485_v34, %v9165_v6  ;;  %6715 = vmatprep.subr.mxu0 %v19_v39 }
 0x9b4   :  { %v4527_v58 = vadd.f32 %v4526_v3, %v4525_v51  ;;  %v4471_v24 = vadd.f32 %v4470_v54, %v4469_v8  ;;  %v4358_v11 = vpop.permute.xlu0 %4357  ;;  %v4466_v20 = vadd.f32 %v4465_v59, %v4464_v10  ;;  %v4575_v10 = vsel %vm1889_vm8, %v4450_v55, %v4574_v43  ;;  %6716 = vmatpush3.msra.mxu0 %v19_v39 }
 0x9b5   :  { %v4402_v25 = vmul.f32 %v4358_v11, %v9751_v19  ;;  %v4533_v46 = vsel %vm1602_vm3, %v4403_v45, 0.0  ;;  %v4576_v14 = vsel %vm1891_vm9, %v4459_v18, %v4575_v10  ;;  %v4504_v54 = vadd.f32 %v4503_v56, %v4502_v12 }
 0x9b6   :  { %v4472_v33 = vrot.slane %v4471_v24, 4  ;;  %v4373_v38 = vpop.permute.xlu1 %4372  ;;  %v4528_v44 = vrot.slane %v4527_v58, 2  ;;  %v4467_v30 = vrot.slane %v4466_v20, 1  ;;  %v4513_v41 = vadd.f32 %v4512_v9, %v4511_v53  ;;  %v9757_v53 = vld [vmem:[#allocation123_spill] sm:$0xff]  ;;  %v9759_v9 = vld [vmem:[#allocation125_spill] sm:$0xff] }
 0x9b7   :  { %v4532_v61 = vsel %vm1602_vm3, %v4402_v25, 0.0  ;;  %v4405_v50 = vmul.f32 %v9752_v49, %v4373_v38  ;;  %v4579_v1 = vsel %vm1883_vm5, %v4495_v27, %v4486_v48 }
 0x9b8   :  { %v4473_v21 = vadd.f32 %v4472_v33, %v4471_v24  ;;  %v4534_v13 = vadd.f32 %v4533_v46, %v4532_v61  ;;  %v4369_v7 = vpop.permute.xlu0 %4368  ;;  %v4529_v5 = vadd.f32 %v4528_v44, %v4527_v58  ;;  %v4468_v51 = vadd.f32 %v4467_v30, %v4466_v20  ;;  %v9754_v61 = vld [vmem:[#allocation136_spill] sm:$0xff]  ;;  %v9755_v44 = vld [vmem:[#allocation121_spill] sm:$0xff] }
 0x9b9   :  { %v4404_v16 = vmul.f32 %v4369_v7, %v9753_v32  ;;  %v4542_v2 = vsel %vm1602_vm3, %v4405_v50, 0.0  ;;  %v4522_v24 = vadd.f32 %v4521_v17, %v4520_v42  ;;  %v4580_v20 = vsel %vm1885_vm6, %v4504_v54, %v4579_v1 }
 0x9ba   :  { %v4474_v26 = vrot.slane %v4473_v21, 2  ;;  %v4535_v0 = vrot.slane %v4534_v13, 4  ;;  %v4530_v62 = vrot.slane %v4529_v5, 1  ;;  %v4577_v8 = vsel %vm1893_vm10, %v4468_v51, %v4576_v14 }
 0x9bb   :  { %v4541_v57 = vsel %vm1602_vm3, %v4404_v16, 0.0  ;;  %v4581_v25 = vsel %vm1887_vm7, %v4513_v41, %v4580_v20 }
 0x9bc   :  { %v4475_v4 = vadd.f32 %v4474_v26, %v4473_v21  ;;  %v4536_v40 = vadd.f32 %v4535_v0, %v4534_v13  ;;  %v4543_v28 = vadd.f32 %v4542_v2, %v4541_v57  ;;  %v4531_v47 = vadd.f32 %v4530_v62, %v4529_v5  ;;  %v9756_v13 = vld [vmem:[#allocation120_spill] sm:$0xff]  ;;  %v9758_v0 = vld [vmem:[#allocation122_spill] sm:$0xff] }
 0x9bd   :  { %v4582_v60 = vsel %vm1889_vm8, %v4522_v24, %v4581_v25  ;;  %v9762_v24 = vld [vmem:[#allocation126_spill] sm:$0xff] }
 0x9be   :  { %v4476_v36 = vrot.slane %v4475_v4, 1  ;;  %v4537_v37 = vrot.slane %v4536_v40, 2  ;;  %v4544_v63 = vrot.slane %v4543_v28, 4  ;;  %v4583_v33 = vsel %vm1891_vm9, %v4531_v47, %v4582_v60  ;;  %v9763_v60 = vld [vmem:[#allocation129_spill] sm:$0xff] }
 0x9c0   :  { %v4477_v59 = vadd.f32 %v4476_v36, %v4475_v4  ;;  %v4538_v3 = vadd.f32 %v4537_v37, %v4536_v40  ;;  %v4545_v23 = vadd.f32 %v4544_v63, %v4543_v28  ;;  %v9760_v37 = vld [vmem:[#allocation124_spill] sm:$0xff] }
 0x9c2   :  { %v4539_v45 = vrot.slane %v4538_v3, 1  ;;  %v4546_v22 = vrot.slane %v4545_v23, 2  ;;  %v4578_v58 = vsel %vm1895_vm11, %v4477_v59, %v4577_v8 }
 0x9c3   :  { %v4661_v11 = vadd.f32 %v8575_v15, %v4578_v58  ;;  %v9761_v58 = vld [vmem:[#allocation127_spill] sm:$0xff] }
 0x9c4   :  { %v4547_v6 = vadd.f32 %v4546_v22, %v4545_v23  ;;  %v4540_v19 = vadd.f32 %v4539_v45, %v4538_v3 }
 0x9c5   :  { %4671 = vrot.lane.b32.xlu0 %v4661_v11, %s6802_s9 }
 0x9c6   :  { %v4548_v31 = vrot.slane %v4547_v6, 1  ;;  %v4584_v29 = vsel %vm1893_vm10, %v4540_v19, %v4583_v33  ;;  %v9764_v33 = vld [vmem:[#allocation128_spill] sm:$0xff] }
 0x9c8   :  { %v4549_v35 = vadd.f32 %v4548_v31, %v4547_v6 }
 0x9c9   :  { %v5384_v15 = vpop.permute.xlu0 %5383  ;;  %v5388_v38 = vpop.permute.xlu1 %5387 }
 0x9ca   :  { %v4585_v46 = vsel %vm1895_vm11, %v4549_v35, %v4584_v29  ;;  %v5482_v21 = vmul.f32 %v5384_v15, %v9755_v44  ;;  %v5483_v7 = vmul.f32 %v9756_v13, %v5388_v38  ;;  %v9765_v38 = vld [vmem:[#allocation131_spill] sm:$0xff] }
 0x9cb   :  { %v4666_v49 = vadd.f32 %v9754_v61, %v4585_v46  ;;  %v9766_v46 = vld [vmem:[#allocation130_spill] sm:$0xff] }
 0x9cc   :  { %v5570_v30 = vsel %vm1602_vm3, %v5482_v21, 0.0  ;;  %v5571_v32 = vsel %vm1602_vm3, %v5483_v7, 0.0  ;;  %v9767_v21 = vld [vmem:[#allocation133_spill] sm:$0xff]  ;;  %v9768_v7 = vld [vmem:[#allocation132_spill] sm:$0xff] }
 0x9cd   :  { %v5395_v50 = vpop.permute.xlu0 %5394  ;;  %4673 = vrot.lane.b32.xlu1 %v4666_v49, %s6802_s9  ;;  %v5399_v52 = vpop.permute.xlu1 %5398  ;;  %v5572_v42 = vadd.f32 %v5571_v32, %v5570_v30 }
 0x9ce   :  { %v5484_v26 = vmul.f32 %v5395_v50, %v9757_v53  ;;  %v5485_v18 = vmul.f32 %v9758_v0, %v5399_v52 }
 0x9cf   :  { %v5573_v40 = vrot.slane %v5572_v42, 4 }
 0x9d0   :  { %v5579_v5 = vsel %vm1602_vm3, %v5484_v26, 0.0  ;;  %v5580_v4 = vsel %vm1602_vm3, %v5485_v18, 0.0  ;;  %v9770_v26 = vld [vmem:[#allocation106_spill] sm:$0xff] }
 0x9d1   :  { %v5406_v12 = vpop.permute.xlu0 %5405  ;;  %v5410_v55 = vpop.permute.xlu1 %5409  ;;  %v5581_v28 = vadd.f32 %v5580_v4, %v5579_v5  ;;  %v5574_v10 = vadd.f32 %v5573_v40, %v5572_v42  ;;  %v9772_v5 = vld [vmem:[#allocation108_spill] sm:$0xff]  ;;  %v9773_v40 = vld [vmem:[#allocation105_spill] sm:$0xff] }
 0x9d2   :  { %v5486_v36 = vmul.f32 %v5406_v12, %v9759_v9  ;;  %v5487_v63 = vmul.f32 %v9760_v37, %v5410_v55  ;;  %v9776_v9 = vld [vmem:[#allocation110_spill] sm:$0xff] }
 0x9d3   :  { %v5582_v51 = vrot.slane %v5581_v28, 4  ;;  %v5575_v14 = vrot.slane %v5574_v10, 2 }
 0x9d4   :  { %v5588_v59 = vsel %vm1602_vm3, %v5486_v36, 0.0  ;;  %v5589_v3 = vsel %vm1602_vm3, %v5487_v63, 0.0 }
 0x9d5   :  { %v5417_v16 = vpop.permute.xlu0 %5416  ;;  %v5421_v43 = vpop.permute.xlu1 %5420  ;;  %v5583_v62 = vadd.f32 %v5582_v51, %v5581_v28  ;;  %v5576_v54 = vadd.f32 %v5575_v14, %v5574_v10  ;;  %v5590_v8 = vadd.f32 %v5589_v3, %v5588_v59  ;;  %v9775_v10 = vld [vmem:[#allocation111_spill] sm:$0xff] }
 0x9d6   :  { %v5488_v39 = vmul.f32 %v5417_v16, %v9761_v58  ;;  %v5489_v11 = vmul.f32 %v9762_v24, %v5421_v43  ;;  %v9769_v43 = vld [vmem:[#allocation107_spill] sm:$0xff] }
 0x9d7   :  { %v5584_v41 = vrot.slane %v5583_v62, 2  ;;  %v5577_v1 = vrot.slane %v5576_v54, 1  ;;  %v5591_v47 = vrot.slane %v5590_v8, 4 }
 0x9d8   :  { %v5597_v25 = vsel %vm1602_vm3, %v5488_v39, 0.0  ;;  %v5598_v31 = vsel %vm1602_vm3, %v5489_v11, 0.0 }
 0x9d9   :  { %v5428_v2 = vpop.permute.xlu0 %5427  ;;  %v5432_v57 = vpop.permute.xlu1 %5431  ;;  %v9214_v6 = vadd.f32 %v5584_v41, %v5583_v62  ;;  %v9222_v49 = vadd.f32 %v5577_v1, %v5576_v54  ;;  %v5592_v50 = vadd.f32 %v5591_v47, %v5590_v8  ;;  %v5599_v44 = vadd.f32 %v5598_v31, %v5597_v25  ;;  %v9777_v54 = vld [vmem:[#allocation113_spill] sm:$0xff]  ;;  %v9778_v8 = vld [vmem:[#allocation112_spill] sm:$0xff] }
 0x9da   :  { %v5490_v35 = vmul.f32 %v5428_v2, %v9763_v60  ;;  %v5491_v15 = vmul.f32 %v9764_v33, %v5432_v57  ;;  %v9771_v2 = vld [vmem:[#allocation109_spill] sm:$0xff] }
 0x9db   :  { %v5586_v52 = vrot.slane %v9214_v6, 1  ;;  %v5593_v37 = vrot.slane %v5592_v50, 2  ;;  %v5600_v63 = vrot.slane %v5599_v44, 4 }
 0x9dc   :  { %v5606_v32 = vsel %vm1602_vm3, %v5490_v35, 0.0  ;;  %v5607_v16 = vsel %vm1602_vm3, %v5491_v15, 0.0  ;;  %v9779_v15 = vld [vmem:[#allocation115_spill] sm:$0xff] }
 0x9dd   :  { %v5439_v34 = vpop.permute.xlu0 %5438  ;;  %v5443_v56 = vpop.permute.xlu1 %5442  ;;  %v5608_v41 = vadd.f32 %v5607_v16, %v5606_v32  ;;  %v5601_v35 = vadd.f32 %v5600_v63, %v5599_v44  ;;  %v9260_v16 = vadd.f32 %v5586_v52, %v9214_v6 }
 0x9de   :  { %v5492_v29 = vmul.f32 %v5439_v34, %v9765_v38  ;;  %v5493_v61 = vmul.f32 %v9766_v46, %v5443_v56  ;;  %v9774_v34 = vld [vmem:[#allocation104_spill] sm:$0xff] }
 0x9e0   :  { %v5615_v18 = vsel %vm1602_vm3, %v5492_v29, 0.0  ;;  %v5616_v42 = vsel %vm1602_vm3, %v5493_v61, 0.0  ;;  %v9780_v29 = vld [vmem:[#allocation114_spill] sm:$0xff]  ;;  %v9255_v61 = vadd.f32 %v5593_v37, %v5592_v50 }
 0x9e1   :  { %v5450_v27 = vpop.permute.xlu0 %5449  ;;  %v5454_v17 = vpop.permute.xlu1 %5453 }
 0x9e2   :  { %v5494_v13 = vmul.f32 %v5450_v27, %v9767_v21  ;;  %v5495_v12 = vmul.f32 %v9768_v7, %v5454_v17  ;;  %v5609_v21 = vrot.slane %v5608_v41, 4 }
 0x9e4   :  { %v5624_v27 = vsel %vm1602_vm3, %v5494_v13, 0.0  ;;  %v5625_v17 = vsel %vm1602_vm3, %v5495_v12, 0.0 }
 0x9e5   :  { %v5296_v23 = vpop.permute.xlu0 %5295  ;;  %v5300_v48 = vpop.permute.xlu1 %5299  ;;  %v5626_v47 = vadd.f32 %v5625_v17, %v5624_v27 }
 0x9e6   :  { %v5466_v28 = vmul.f32 %v5296_v23, %v9773_v40  ;;  %v5467_v56 = vmul.f32 %v9774_v34, %v5300_v48  ;;  %v5610_v40 = vadd.f32 %v5609_v21, %v5608_v41 }
 0x9e7   :  { %v5627_v44 = vrot.slane %v5626_v47, 4 }
 0x9e8   :  { %v5498_v39 = vsel %vm1602_vm3, %v5466_v28, 0.0  ;;  %v5499_v24 = vsel %vm1602_vm3, %v5467_v56, 0.0 }
 0x9e9   :  { %v5307_v45 = vpop.permute.xlu0 %5306  ;;  %v5311_v22 = vpop.permute.xlu1 %5310  ;;  %v5500_v13 = vadd.f32 %v5499_v24, %v5498_v39 }
 0x9ea   :  { %v5468_v53 = vmul.f32 %v5307_v45, %v9769_v43  ;;  %v5469_v0 = vmul.f32 %v9770_v26, %v5311_v22  ;;  %v5617_v45 = vadd.f32 %v5616_v42, %v5615_v18  ;;  %v5602_v18 = vrot.slane %v5601_v35, 2  ;;  %v9781_v42 = vld [vmem:[#allocation117_spill] sm:$0xff] }
 0x9eb   :  { %v5501_v28 = vrot.slane %v5500_v13, 4 }
 0x9ec   :  { %v5507_v59 = vsel %vm1602_vm3, %v5468_v53, 0.0  ;;  %v5508_v3 = vsel %vm1602_vm3, %v5469_v0, 0.0  ;;  %v5618_v12 = vrot.slane %v5617_v45, 4  ;;  %v5603_v17 = vadd.f32 %v5602_v18, %v5601_v35 }
 0x9ed   :  { %v5318_v20 = vpop.permute.xlu0 %5317  ;;  %v5322_v19 = vpop.permute.xlu1 %5321 }
 0x9ee   :  { %v5470_v57 = vmul.f32 %v5318_v20, %v9771_v2  ;;  %v5471_v4 = vmul.f32 %v9772_v5, %v5322_v19  ;;  %v5509_v20 = vadd.f32 %v5508_v3, %v5507_v59  ;;  %v5619_v56 = vadd.f32 %v5618_v12, %v5617_v45  ;;  %v9784_v3 = vld [vmem:[#allocation118_spill] sm:$0xff] }
 0x9f0   :  { %v5516_v22 = vsel %vm1602_vm3, %v5470_v57, 0.0  ;;  %v5517_v58 = vsel %vm1602_vm3, %v5471_v4, 0.0  ;;  %v5510_v43 = vrot.slane %v5509_v20, 4  ;;  %v9782_v57 = vld [vmem:[#allocation116_spill] sm:$0xff]  ;;  %v5595_v4 = vrot.slane %v9255_v61, 1 }
 0x9f1   :  { %v5329_v55 = vpop.permute.xlu0 %5328  ;;  %v5333_v30 = vpop.permute.xlu1 %5332  ;;  %v5518_v33 = vadd.f32 %v5517_v58, %v5516_v22  ;;  %v5620_v45 = vrot.slane %v5619_v56, 2 }
 0x9f2   :  { %v5472_v51 = vmul.f32 %v5329_v55, %v9775_v10  ;;  %v5473_v36 = vmul.f32 %v9776_v9, %v5333_v30  ;;  %v5511_v9 = vadd.f32 %v5510_v43, %v5509_v20 }
 0x9f3   :  { %v5519_v50 = vrot.slane %v5518_v33, 4 }
 0x9f4   :  { %v5525_v11 = vsel %vm1602_vm3, %v5472_v51, 0.0  ;;  %v5526_v1 = vsel %vm1602_vm3, %v5473_v36, 0.0  ;;  %v5628_v51 = vadd.f32 %v5627_v44, %v5626_v47 }
 0x9f5   :  { %v5340_v14 = vpop.permute.xlu0 %5339  ;;  %v5344_v62 = vpop.permute.xlu1 %5343  ;;  %v5527_v7 = vadd.f32 %v5526_v1, %v5525_v11  ;;  %v5512_v11 = vrot.slane %v5511_v9, 2 }
 0x9f6   :  { %v5474_v23 = vmul.f32 %v5340_v14, %v9777_v54  ;;  %v5475_v48 = vmul.f32 %v9778_v8, %v5344_v62  ;;  %v5520_v14 = vadd.f32 %v5519_v50, %v5518_v33  ;;  %v9783_v62 = vld [vmem:[#allocation119_spill] sm:$0xff]  ;;  %v5502_v8 = vadd.f32 %v5501_v28, %v5500_v13  ;;  %v9786_v33 = vld [vmem:[#allocation134_spill] sm:$0xff] }
 0x9f7   :  { %v5528_v34 = vrot.slane %v5527_v7, 4  ;;  %v5629_v24 = vrot.slane %v5628_v51, 2  ;;  %v5621_v13 = vadd.f32 %v5620_v45, %v5619_v56 }
 0x9f8   :  { %v5534_v19 = vsel %vm1602_vm3, %v5474_v23, 0.0  ;;  %v5535_v25 = vsel %vm1602_vm3, %v5475_v48, 0.0  ;;  %v5611_v23 = vrot.slane %v5610_v40, 2 }
 0x9f9   :  { %v5351_v31 = vpop.permute.xlu0 %5350  ;;  %v5355_v60 = vpop.permute.xlu1 %5354  ;;  %v5536_v55 = vadd.f32 %v5535_v25, %v5534_v19  ;;  %v5529_v48 = vadd.f32 %v5528_v34, %v5527_v7  ;;  %v5521_v25 = vrot.slane %v5520_v14, 2  ;;  %v5622_v56 = vrot.slane %v5621_v13, 1 }
 0x9fa   :  { %v5476_v38 = vmul.f32 %v5351_v31, %v9779_v15  ;;  %v5477_v46 = vmul.f32 %v9780_v29, %v5355_v60  ;;  %v9785_v60 = vld [vmem:[#allocation135_spill] sm:$0xff]  ;;  %v5503_v29 = vrot.slane %v5502_v8, 2 }
 0x9fb   :  { %v5537_v10 = vrot.slane %v5536_v55, 4 }
 0x9fc   :  { %v5543_v30 = vsel %vm1602_vm3, %v5476_v38, 0.0  ;;  %v5544_v32 = vsel %vm1602_vm3, %v5477_v46, 0.0  ;;  %v5612_v38 = vadd.f32 %v5611_v23, %v5610_v40  ;;  %v5530_v46 = vrot.slane %v5529_v48, 2  ;;  %v17_v23 = vld [vmem:[%s9389_s2 + $0x18] sm:$0xff] }
 0x9fd   :  { %v5545_v53 = vadd.f32 %v5544_v32, %v5543_v30  ;;  %v5362_v26 = vpop.permute.xlu0 %5361  ;;  %v5366_v0 = vpop.permute.xlu1 %5365  ;;  %v5538_v22 = vadd.f32 %v5537_v10, %v5536_v55  ;;  %v5513_v30 = vadd.f32 %v5512_v11, %v5511_v9  ;;  %v5504_v50 = vadd.f32 %v5503_v29, %v5502_v8  ;;  %v16_v11 = vld [vmem:[%s9389_s2 + $0x10] sm:$0xff] }
 0x9fe   :  { %v5478_v2 = vmul.f32 %v5362_v26, %v9781_v42  ;;  %v5479_v5 = vmul.f32 %v9782_v57, %v5366_v0  ;;  %v5630_v26 = vadd.f32 %v5629_v24, %v5628_v51  ;;  %v5522_v0 = vadd.f32 %v5521_v25, %v5520_v14 }
 0x9ff   :  { %v5546_v36 = vrot.slane %v5545_v53, 4  ;;  %v5539_v7 = vrot.slane %v5538_v22, 2  ;;  %v5531_v42 = vadd.f32 %v5530_v46, %v5529_v48  ;;  %v5596_v40 = vadd.f32 %v5595_v4, %v9255_v61 }
 0xa00   :  { %v5552_v6 = vsel %vm1602_vm3, %v5478_v2, 0.0  ;;  %v5553_v52 = vsel %vm1602_vm3, %v5479_v5, 0.0  ;;  %v5671_v5 = vsel %vm1883_vm5, %v9260_v16, %v9222_v49  ;;  %v5613_v28 = vrot.slane %v5612_v38, 1  ;;  %v18_v49 = vld [vmem:[%s9389_s2 + $0x20] sm:$0xff] }
 0xa01   :  { %v5554_v37 = vadd.f32 %v5553_v52, %v5552_v6  ;;  %v5373_v63 = vpop.permute.xlu0 %5372  ;;  %v5377_v27 = vpop.permute.xlu1 %5376  ;;  %v5547_v1 = vadd.f32 %v5546_v36, %v5545_v53  ;;  %v5604_v53 = vrot.slane %v5603_v17, 1  ;;  %v5540_v34 = vadd.f32 %v5539_v7, %v5538_v22  ;;  %6717 = vmatprep.subr.mxu0 %v18_v49 }
 0xa02   :  { %v5480_v59 = vmul.f32 %v5373_v63, %v9783_v62  ;;  %v5481_v54 = vmul.f32 %v9784_v3, %v5377_v27  ;;  %v5514_v10 = vrot.slane %v5513_v30, 1  ;;  %v5631_v51 = vrot.slane %v5630_v26, 1  ;;  %6718 = vmatpush3.msra.mxu0 %v18_v49 }
 0xa03   :  { %v5555_v41 = vrot.slane %v5554_v37, 4  ;;  %v5548_v32 = vrot.slane %v5547_v1, 2  ;;  %v5605_v9 = vadd.f32 %v5604_v53, %v5603_v17  ;;  %v5523_v36 = vrot.slane %v5522_v0, 1  ;;  %6719 = vmatprep.subr.mxu0 %v17_v23  ;;  %v9787_v53 = vld [vmem:[#allocation2_spill] sm:$0xff] }
 0xa04   :  { %v5561_v58 = vsel %vm1602_vm3, %v5480_v59, 0.0  ;;  %v5562_v39 = vsel %vm1602_vm3, %v5481_v54, 0.0  ;;  %v5505_v63 = vrot.slane %v5504_v50, 1  ;;  %v5532_v27 = vrot.slane %v5531_v42, 1  ;;  %6720 = vmatpush3.msra.mxu0 %v17_v23  ;;  %v24_v23 = vld [vmem:[%s9389_s2 + $0x50] sm:$0xff] }
 0xa05   :  { %v5563_v47 = vadd.f32 %v5562_v39, %v5561_v58  ;;  %v5461_v20 = vpop.permute.xlu0 %5460  ;;  %v5465_v19 = vpop.permute.xlu1 %5464  ;;  %v5556_v31 = vadd.f32 %v5555_v41, %v5554_v37  ;;  %v5549_v6 = vadd.f32 %v5548_v32, %v5547_v1  ;;  %v5614_v16 = vadd.f32 %v5613_v28, %v5612_v38  ;;  %6721 = vmatprep.subr.mxu0 %v16_v11 }
 0xa06   :  { %v5496_v35 = vmul.f32 %v5461_v20, %v9785_v60  ;;  %v5497_v15 = vmul.f32 %v9786_v33, %v5465_v19  ;;  %v5541_v61 = vrot.slane %v5540_v34, 1  ;;  %v5672_v4 = vsel %vm1885_vm6, %v5596_v40, %v5671_v5  ;;  %6722 = vmatpush3.msra.mxu0 %v16_v11  ;;  %v9790_v5 = vld [vmem:[#allocation5_spill] sm:$0xff] }
 0xa07   :  { %v5564_v21 = vrot.slane %v5563_v47, 4  ;;  %v5557_v18 = vrot.slane %v5556_v31, 2  ;;  %v5623_v59 = vadd.f32 %v5622_v56, %v5621_v13  ;;  %v5515_v3 = vadd.f32 %v5514_v10, %v5513_v30 }
 0xa08   :  { %v5633_v12 = vsel %vm1602_vm3, %v5496_v35, 0.0  ;;  %v5634_v55 = vsel %vm1602_vm3, %v5497_v15, 0.0  ;;  %v5550_v54 = vrot.slane %v5549_v6, 1  ;;  %v5524_v8 = vadd.f32 %v5523_v36, %v5522_v0  ;;  %v9793_v36 = vld [vmem:[#allocation8_spill] sm:$0xff] }
 0xa09   :  { %v5565_v44 = vadd.f32 %v5564_v21, %v5563_v47  ;;  %v5635_v43 = vadd.f32 %v5634_v55, %v5633_v12  ;;  %v5558_v37 = vadd.f32 %v5557_v18, %v5556_v31  ;;  %v5632_v41 = vadd.f32 %v5631_v51, %v5630_v26  ;;  %v2488_v7 = vpop.permute.xlu0 %2487  ;;  %v2490_v30 = vpop.permute.xlu1 %2489  ;;  %v9788_v18 = vld [vmem:[#allocation3_spill] sm:$0xff] }
 0xa0a   :  { %v5673_v45 = vsel %vm1887_vm7, %v5605_v9, %v5672_v4  ;;  %v5506_v22 = vadd.f32 %v5505_v63, %v5504_v50  ;;  %v5533_v58 = vadd.f32 %v5532_v27, %v5531_v42  ;;  %v5542_v1 = vadd.f32 %v5541_v61, %v5540_v34  ;;  %v9791_v34 = vld [vmem:[#allocation7_spill] sm:$0xff]  ;;  %v28_v9 = vld [vmem:[%s9389_s2 + $0x70] sm:$0xff]  ;;  %v9794_v27 = vld [vmem:[#allocation9_spill] sm:$0xff] }
 0xa0b   :  { %v5566_v2 = vrot.slane %v5565_v44, 2  ;;  %v5636_v57 = vrot.slane %v5635_v43, 4  ;;  %v5559_v48 = vrot.slane %v5558_v37, 1  ;;  %v5674_v47 = vsel %vm1889_vm8, %v5614_v16, %v5673_v45  ;;  %6735 = vmatprep.subr.mxu0 %v28_v9  ;;  %v27_v16 = vld [vmem:[%s9389_s2 + $0x68] sm:$0xff]  ;;  %v26_v61 = vld [vmem:[%s9389_s2 + $0x60] sm:$0xff] }
 0xa0c   :  { %v5664_v20 = vsel %vm1883_vm5, %v5515_v3, %v5506_v22  ;;  %v5551_v19 = vadd.f32 %v5550_v54, %v5549_v6  ;;  %v5675_v31 = vsel %vm1891_vm9, %v5623_v59, %v5674_v47  ;;  %v2494_v26 = vadd.f32 %v9787_v53, %v2490_v30  ;;  %v9792_v6 = vld [vmem:[#allocation6_spill] sm:$0xff]  ;;  %v25_v3 = vld [vmem:[%s9389_s2 + $0x58] sm:$0xff] }
 0xa0d   :  { %v5637_v52 = vadd.f32 %v5636_v57, %v5635_v43  ;;  %v5567_v14 = vadd.f32 %v5566_v2, %v5565_v44  ;;  %v5676_v60 = vsel %vm1893_vm10, %v5632_v41, %v5675_v31  ;;  %v5560_v35 = vadd.f32 %v5559_v48, %v5558_v37  ;;  %v3580_v42 = vpop.permute.xlu0 %3579  ;;  %v9789_v2 = vld [vmem:[#allocation4_spill] sm:$0xff]  ;;  %v22_v48 = vld [vmem:[%s9389_s2 + $0x40] sm:$0xff]  ;;  %v21_v41 = vld [vmem:[%s9389_s2 + $0x38] sm:$0xff] }
 0xa0e   :  { %v5665_v33 = vsel %vm1885_vm6, %v5524_v8, %v5664_v20  ;;  %v2493_v50 = vadd.f32 %v2488_v7, %v9788_v18  ;;  %v3585_v40 = vadd.f32 %v3580_v42, %v9790_v5  ;;  %v23_v8 = vld [vmem:[%s9389_s2 + $0x48] sm:$0xff] }
 0xa0f   :  { %v5638_v62 = vrot.slane %v5637_v52, 2  ;;  %v5568_v24 = vrot.slane %v5567_v14, 1  ;;  %v5666_v29 = vsel %vm1887_vm7, %v5533_v58, %v5665_v33  ;;  %v6235_v58 = vld [vmem:[%s9389_s2 + $0x30] ss:$0 sm:$0xff] }
 0xa10   :  { %v5667_v46 = vsel %vm1889_vm8, %v5542_v1, %v5666_v29 }
 0xa11   :  { %v5639_v17 = vadd.f32 %v5638_v62, %v5637_v52  ;;  %v5569_v38 = vadd.f32 %v5568_v24, %v5567_v14  ;;  %v5668_v13 = vsel %vm1891_vm9, %v5551_v19, %v5667_v46 }
 0xa12   :  { %v5669_v55 = vsel %vm1893_vm10, %v5560_v35, %v5668_v13 }
 0xa13   :  { %v5640_v39 = vrot.slane %v5639_v17, 1  ;;  %v5670_v32 = vsel %vm1895_vm11, %v5569_v38, %v5669_v55 }
 0xa15   :  { %v5641_v25 = vadd.f32 %v5640_v39, %v5639_v17 }
 0xa17   :  { %v5677_v15 = vsel %vm1895_vm11, %v5641_v25, %v5676_v60 }
 0xa19   :  { %v6714_v21 = vpop.f32.mrf.mxu0 }
 0xa1a   :  { %v5758_v12 = vadd.f32 %v6714_v21, %v5677_v15 }
 0xa1b   :  { %v5752_v44 = vpop.f32.mrf.mxu0  ;;  %v3582_v0 = vpop.permute.xlu1 %3581 }
 0xa1c   :  { %v5753_v43 = vadd.f32 %v5752_v44, %v5670_v32  ;;  %5765 = vrot.lane.b32.xlu1 %v5758_v12, %s6802_s9  ;;  %v3586_v57 = vadd.f32 %v9789_v2, %v3582_v0 }
 0xa1e   :  { %5763 = vrot.lane.b32.xlu0 %v5753_v43, %s6802_s9  ;;  %v6244_v43 = vld [vmem:[%s9389_s2 + $0x78] ss:$0 sm:$0xff] }
 0xa20   :  { %5785 = vrot.lane.b32.xlu1 %v2494_v26, %s6804_s18 }
 0xa22   :  { %5783 = vrot.lane.b32.xlu0 %v2493_v50, %s6804_s18 }
 0xa24   :  { %5789 = vrot.lane.b32.xlu1 %v3586_v57, %s6804_s18 }
 0xa26   :  { %5787 = vrot.lane.b32.xlu0 %v3585_v40, %s6804_s18 }
 0xa37   :  { %v4672_v28 = vpop.permute.xlu0 %4671 }
 0xa38   :  { %v4677_v56 = vadd.f32 %v4672_v28, %v9791_v34 }
 0xa3a   :  { %5791 = vrot.lane.b32.xlu0 %v4677_v56, %s6804_s18 }
 0xa3f   :  { %v4674_v10 = vpop.permute.xlu1 %4673 }
 0xa40   :  { %v4678_v52 = vadd.f32 %v9792_v6, %v4674_v10 }
 0xa42   :  { %5793 = vrot.lane.b32.xlu1 %v4678_v52, %s6804_s18 }
 0xa8e   :  { %v5766_v51 = vpop.permute.xlu1 %5765 }
 0xa8f   :  { %v5770_v37 = vadd.f32 %v9793_v36, %v5766_v51 }
 0xa90   :  { %v5764_v63 = vpop.permute.xlu0 %5763 }
 0xa91   :  { %v5769_v14 = vadd.f32 %v5764_v63, %v9794_v27  ;;  %5797 = vrot.lane.b32.xlu1 %v5770_v37, %s6804_s18 }
 0xa92   :  { %v5786_v62 = vpop.permute.xlu1 %5785 }
 0xa93   :  { %5795 = vrot.lane.b32.xlu0 %v5769_v14, %s6804_s18 }
 0xa94   :  { %v5784_v49 = vpop.permute.xlu0 %5783 }
 0xa95   :  { %6723 = vmatprep.mubr.msk.f32.mxu0 %vm1602_vm3, %v5784_v49 }
 0xa96   :  { %6724 = vmatmul.mubr.msk.f32.vlgmr.msra.gmra.mxu0 %vm1602_vm3, %v5786_v62  ;;  %v5790_v59 = vpop.permute.xlu1 %5789 }
 0xa97   :  { %6736 = vmatpush3.msra.mxu0 %v28_v9 }
 0xa98   :  { %v5788_v4 = vpop.permute.xlu0 %5787  ;;  %6737 = vmatprep.subr.mxu0 %v27_v16 }
 0xa99   :  { %6726 = vmatprep.mubr.msk.f32.mxu0 %vm1602_vm3, %v5788_v4  ;;  %6738 = vmatpush3.msra.mxu0 %v27_v16 }
 0xa9a   :  { %6727 = vmatmul.mubr.msk.f32.gmra.mxu0 %vm1602_vm3, %v5790_v59  ;;  %6739 = vmatprep.subr.mxu0 %v26_v61 }
 0xa9b   :  { %6740 = vmatpush3.msra.mxu0 %v26_v61 }
 0xa9c   :  { %6741 = vmatprep.subr.mxu0 %v25_v3 }
 0xa9d   :  { %6742 = vmatpush3.msra.mxu0 %v25_v3 }
 0xa9e   :  { %6743 = vmatprep.subr.mxu0 %v24_v23 }
 0xa9f   :  { %6744 = vmatpush3.msra.mxu0 %v24_v23 }
 0xaa0   :  { %6745 = vmatprep.subr.mxu0 %v23_v8 }
 0xaa1   :  { %6746 = vmatpush3.msra.mxu0 %v23_v8 }
 0xaa2   :  { %6747 = vmatprep.subr.mxu0 %v22_v48 }
 0xaa3   :  { %6748 = vmatpush3.msra.mxu0 %v22_v48 }
 0xaa4   :  { %6749 = vmatprep.subr.mxu0 %v21_v41 }
 0xaa5   :  { %6750 = vmatpush3.msra.mxu0 %v21_v41 }
 0xaac   :  { %v5792_v54 = vpop.permute.xlu0 %5791 }
 0xaad   :  { %6729 = vmatprep.mubr.msk.f32.mxu0 %vm1602_vm3, %v5792_v54 }
 0xab4   :  { %v5794_v17 = vpop.permute.xlu1 %5793 }
 0xab5   :  { %6730 = vmatmul.mubr.msk.f32.gmra.mxu0 %vm1602_vm3, %v5794_v17 }
 0xb03   :  { %v5798_v22 = vpop.permute.xlu1 %5797 }
 0xb05   :  { %v5796_v45 = vpop.permute.xlu0 %5795 }
 0xb06   :  { %6732 = vmatprep.mubr.msk.f32.mxu0 %vm1602_vm3, %v5796_v45 }
 0xb07   :  { %6733 = vmatmul.mubr.msk.f32.gmra.mxu0 %vm1602_vm3, %v5798_v22 }
 0xb56   :  { %v6725_v39 = vpop.f32.mrf.mxu0 }
 0xb57   :  { %v5887_v24 = vadd.f32 %v6725_v39, %v6235_v58 }
 0xb58   :  { %v5881_v11 = vpop.f32.mrf.mxu0 }
 0xb59   :  { %v5882_v1 = vadd.f32 %v6235_v58, %v5881_v11  ;;  %v5921_v19 = vmax.f32 %v5887_v24, 0.0 }
 0xb5a   :  { %v6728_v47 = vpop.f32.mrf.mxu0 }
 0xb5b   :  { %v5920_v20 = vmax.f32 %v5882_v1, 0.0  ;;  %v5897_v25 = vadd.f32 %v6728_v47, %v6235_v58 }
 0xb5c   :  { %v5891_v31 = vpop.f32.mrf.mxu0 }
 0xb5d   :  { %v5892_v60 = vadd.f32 %v6235_v58, %v5891_v31  ;;  %6751 = vmatprep.mubr.msk.f32.mxu0 %vm5932_vm13, %v5920_v20  ;;  %v5923_v33 = vmax.f32 %v5897_v25, 0.0 }
 0xb5e   :  { %6752 = vmatmul.mubr.msk.f32.vlgmr.msra.gmra.mxu0 %vm5932_vm13, %v5921_v19 }
 0xb5f   :  { %v5922_v35 = vmax.f32 %v5892_v60, 0.0 }
 0xb61   :  { %6754 = vmatprep.mubr.msk.f32.mxu0 %vm5932_vm13, %v5922_v35 }
 0xb62   :  { %6755 = vmatmul.mubr.msk.f32.gmra.mxu0 %vm5932_vm13, %v5923_v33 }
 0xb75   :  { %v6731_v15 = vpop.f32.mrf.mxu0 }
 0xb76   :  { %v5907_v38 = vadd.f32 %v6731_v15, %v6235_v58 }
 0xb77   :  { %v5901_v29 = vpop.f32.mrf.mxu0 }
 0xb78   :  { %v5902_v46 = vadd.f32 %v6235_v58, %v5901_v29  ;;  %v5925_v13 = vmax.f32 %v5907_v38, 0.0 }
 0xb7a   :  { %v5924_v21 = vmax.f32 %v5902_v46, 0.0 }
 0xb7c   :  { %6757 = vmatprep.mubr.msk.f32.mxu0 %vm5932_vm13, %v5924_v21 }
 0xb7d   :  { %6758 = vmatmul.mubr.msk.f32.gmra.mxu0 %vm5932_vm13, %v5925_v13 }
 0xbc7   :  { %v6734_v7 = vpop.f32.mrf.mxu0 }
 0xbc8   :  { %v5917_v12 = vadd.f32 %v6734_v7, %v6235_v58 }
 0xbc9   :  { %v5911_v55 = vpop.f32.mrf.mxu0 }
 0xbca   :  { %v5912_v30 = vadd.f32 %v6235_v58, %v5911_v55  ;;  %v5927_v44 = vmax.f32 %v5917_v12, 0.0 }
 0xbcc   :  { %v5926_v32 = vmax.f32 %v5912_v30, 0.0 }
 0xbce   :  { %6760 = vmatprep.mubr.msk.f32.mxu0 %vm5932_vm13, %v5926_v32 }
 0xbcf   :  { %6761 = vmatmul.mubr.msk.f32.gmra.mxu0 %vm5932_vm13, %v5927_v44 }
 0xc1e   :  { %v6753_v53 = vpop.f32.mrf.mxu0 }
 0xc1f   :  { %v6029_v26 = vadd.f32 %v6753_v53, %v6244_v43 }
 0xc20   :  { %v6023_v0 = vpop.f32.mrf.mxu0 }
 0xc21   :  { %6063 = vst.msk [vmem:[%s9392_s3 + $0x8] sm:$0xff] %vm38_vm0, %v6029_v26  ;;  %v6024_v18 = vadd.f32 %v6244_v43, %v6023_v0 }
 0xc22   :  { %v6756_v50 = vpop.f32.mrf.mxu0 }
 0xc23   :  { %6062 = vst.msk [vmem:[%s9392_s3] sm:$0xff] %vm38_vm0, %v6024_v18  ;;  %v6039_v42 = vadd.f32 %v6756_v50, %v6244_v43 }
 0xc24   :  { %v6033_v2 = vpop.f32.mrf.mxu0 }
 0xc25   :  { %6065 = vst.msk [vmem:[%s9392_s3 + $0x18] sm:$0xff] %vm38_vm0, %v6039_v42  ;;  %v6034_v57 = vadd.f32 %v6244_v43, %v6033_v2 }
 0xc27   :  { %6064 = vst.msk [vmem:[%s9392_s3 + $0x10] sm:$0xff] %vm38_vm0, %v6034_v57 }
 0xc3d   :  { %v6759_v5 = vpop.f32.mrf.mxu0 }
 0xc3e   :  { %v6049_v40 = vadd.f32 %v6759_v5, %v6244_v43 }
 0xc3f   :  { %v6043_v28 = vpop.f32.mrf.mxu0 }
 0xc40   :  { %6067 = vst.msk [vmem:[%s9392_s3 + $0x28] sm:$0xff] %vm38_vm0, %v6049_v40  ;;  %v6044_v34 = vadd.f32 %v6244_v43, %v6043_v28 }
 0xc42   :  { %6066 = vst.msk [vmem:[%s9392_s3 + $0x20] sm:$0xff] %vm38_vm0, %v6044_v34 }
 0xc8f   :  { %v6762_v56 = vpop.f32.mrf.mxu0 }
 0xc90   :  { %v6059_v10 = vadd.f32 %v6762_v56, %v6244_v43 }
 0xc91   :  { %v6053_v6 = vpop.f32.mrf.mxu0 }
 0xc92   :  { %6069 = vst.msk [vmem:[%s9392_s3 + $0x38] sm:$0xff] %vm38_vm0, %v6059_v10  ;;  %v6054_v52 = vadd.f32 %v6244_v43, %v6053_v6 }
 0xc94   :  { %6068 = vst.msk [vmem:[%s9392_s3 + $0x30] sm:$0xff] %vm38_vm0, %v6054_v52 }

</bundles_post_ra>
